<compile_context>
chip_gen: v7x
topology: tpu7x:2x2x1
jax: 0.10.0
libtpu: 0.0.40
codegen_flags: <defaults>
</compile_context>

<pallas_src>
import jax
import jax.numpy as jnp
from jax import lax
from jax.experimental import pallas as pl
from jax.experimental.pallas import tpu as pltpu

EPS = 1e-5
_VMEM_LIMIT_BYTES = 32 * 1024 * 1024  # explicit scoped-VMEM cap; safe on v5e/v6e/v7x


def _round_up(x, m):
    return (x + m - 1) // m * m


def _tap_offsets(W, p0):
    """Flat offsets of the 9 conv taps in the padded (lead + (H+2)*(W+2)) lattice."""
    wp2 = W + 2
    return [p0 + dh * wp2 + dw for dh in (-1, 0, 1) for dw in (-1, 0, 1)]


def _conv_taps(src_ref, w_ref, offsets, L, cp):
    """3x3 conv as 9 shifted (L, Cin) @ (Cin, Cp) MXU matmuls into one f32 accumulator."""
    acc = jnp.zeros((L, cp), jnp.float32)
    for k, off in enumerate(offsets):
        acc = acc + jnp.dot(src_ref[pl.ds(off, L), :], w_ref[k],
                            preferred_element_type=jnp.float32)
    return acc


def _make_conv_stats_kernel(W, p0, L, cp):
    offsets = _tap_offsets(W, p0)

    def kernel(x_ref, w_ref, mask_ref, y_ref, s_ref, q_ref):
        # x_ref: (mp_pad, Cin_p) padded-flat activation for one batch element.
        acc = _conv_taps(x_ref, w_ref, offsets, L, cp)          # (L, Cp) pre-BN conv out
        y_ref[...] = acc
        ym = acc * mask_ref[...]                                # zero the padding columns
        s_ref[...] = jnp.sum(ym, axis=0, keepdims=True)         # per-channel sum
        q_ref[...] = jnp.sum(ym * ym, axis=0, keepdims=True)    # per-channel sum of squares

    return kernel


def _make_bn_relu_conv_stats_kernel(W, p0, L, cp, mp_pad):
    offsets = _tap_offsets(W, p0)
    tail = mp_pad - (p0 + L)   # rows after the band (bottom padding row + slack)

    def kernel(yin_ref, sc_ref, sh_ref, w_ref, mask_ref, y_ref, s_ref, q_ref, xp_ref):
        # BatchNorm affine (precomputed scale/shift) + ReLU; padding columns forced to 0.
        a = jnp.maximum(yin_ref[...] * sc_ref[...] + sh_ref[...], 0.0) * mask_ref[...]
        # Repack into the zero-padded flat lattice entirely in VMEM (no HBM round trip).
        # Only the small head/tail padding slices need zeroing; the band itself is fully
        # overwritten below (p0 and L are sublane-aligned -> unmasked vst).
        xp_ref[pl.ds(0, p0), :] = jnp.zeros((p0, cp), jnp.float32)
        xp_ref[pl.ds(p0 + L, tail), :] = jnp.zeros((tail, cp), jnp.float32)
        xp_ref[pl.ds(p0, L), :] = a
        # Second conv + its batch statistics.
        acc = _conv_taps(xp_ref, w_ref, offsets, L, cp)
        y_ref[...] = acc
        ym = acc * mask_ref[...]
        s_ref[...] = jnp.sum(ym, axis=0, keepdims=True)
        q_ref[...] = jnp.sum(ym * ym, axis=0, keepdims=True)

    return kernel


def _bn_relu_kernel(yin_ref, sc_ref, sh_ref, o_ref):
    o_ref[...] = jnp.maximum(yin_ref[...] * sc_ref[...] + sh_ref[...], 0.0)


def _prep_weight(w_oihw, cin_p, cout_p):
    """PyTorch (O, I, 3, 3) -> (9, Cin_p, Cout_p), tap order (kh, kw), zero-padded."""
    co, ci = w_oihw.shape[0], w_oihw.shape[1]
    wt = jnp.transpose(w_oihw, (2, 3, 1, 0)).reshape(9, ci, co).astype(jnp.float32)
    return jnp.pad(wt, ((0, 0), (0, cin_p - ci), (0, cout_p - co)))


def _scale_shift(ysum, ysq, gamma_p, beta_p, count):
    """Fold batch statistics into a per-channel affine y*scale + shift."""
    tot = jnp.sum(ysum, axis=(0, 1))
    tot2 = jnp.sum(ysq, axis=(0, 1))
    mean = tot / count
    var = jnp.maximum(tot2 / count - mean * mean, 0.0)   # biased variance (PyTorch fwd)
    scale = gamma_p * lax.rsqrt(var + EPS)
    shift = beta_p - mean * scale
    return scale[None, :], shift[None, :]


def _conv_stats_call(x_flat, w_p, mask, W, p0, L, cp):
    n, mp_pad, cin_p = x_flat.shape
    out_shapes = [
        jax.ShapeDtypeStruct((n, L, cp), jnp.float32),
        jax.ShapeDtypeStruct((n, 1, cp), jnp.float32),
        jax.ShapeDtypeStruct((n, 1, cp), jnp.float32),
    ]
    return pl.pallas_call(
        _make_conv_stats_kernel(W, p0, L, cp),
        grid=(n,),
        in_specs=[
            pl.BlockSpec((None, mp_pad, cin_p), lambda i: (i, 0, 0)),
            pl.BlockSpec((9, cin_p, cp), lambda i: (0, 0, 0)),
            pl.BlockSpec((L, 1), lambda i: (0, 0)),
        ],
        out_specs=[
            pl.BlockSpec((None, L, cp), lambda i: (i, 0, 0)),
            pl.BlockSpec((None, 1, cp), lambda i: (i, 0, 0)),
            pl.BlockSpec((None, 1, cp), lambda i: (i, 0, 0)),
        ],
        out_shape=out_shapes,
        compiler_params=pltpu.CompilerParams(
            dimension_semantics=("parallel",),
            vmem_limit_bytes=_VMEM_LIMIT_BYTES),
    )(x_flat, w_p, mask)


def _bn_relu_conv_stats_call(y_in, scale, shift, w_p, mask, W, p0, mp_pad):
    n, L, cp = y_in.shape
    out_shapes = [
        jax.ShapeDtypeStruct((n, L, cp), jnp.float32),
        jax.ShapeDtypeStruct((n, 1, cp), jnp.float32),
        jax.ShapeDtypeStruct((n, 1, cp), jnp.float32),
    ]
    return pl.pallas_call(
        _make_bn_relu_conv_stats_kernel(W, p0, L, cp, mp_pad),
        grid=(n,),
        in_specs=[
            pl.BlockSpec((None, L, cp), lambda i: (i, 0, 0)),
            pl.BlockSpec((1, cp), lambda i: (0, 0)),
            pl.BlockSpec((1, cp), lambda i: (0, 0)),
            pl.BlockSpec((9, cp, cp), lambda i: (0, 0, 0)),
            pl.BlockSpec((L, 1), lambda i: (0, 0)),
        ],
        out_specs=[
            pl.BlockSpec((None, L, cp), lambda i: (i, 0, 0)),
            pl.BlockSpec((None, 1, cp), lambda i: (i, 0, 0)),
            pl.BlockSpec((None, 1, cp), lambda i: (i, 0, 0)),
        ],
        out_shape=out_shapes,
        scratch_shapes=[pltpu.VMEM((mp_pad, cp), jnp.float32)],
        compiler_params=pltpu.CompilerParams(
            dimension_semantics=("parallel",),
            vmem_limit_bytes=_VMEM_LIMIT_BYTES),
    )(y_in, scale, shift, w_p, mask)


def _bn_relu_call(y_in, scale, shift):
    n, L, cp = y_in.shape
    return pl.pallas_call(
        _bn_relu_kernel,
        grid=(n,),
        in_specs=[
            pl.BlockSpec((None, L, cp), lambda i: (i, 0, 0)),
            pl.BlockSpec((1, cp), lambda i: (0, 0)),
            pl.BlockSpec((1, cp), lambda i: (0, 0)),
        ],
        out_specs=pl.BlockSpec((None, L, cp), lambda i: (i, 0, 0)),
        out_shape=jax.ShapeDtypeStruct((n, L, cp), jnp.float32),
        compiler_params=pltpu.CompilerParams(
            dimension_semantics=("parallel",),
            vmem_limit_bytes=_VMEM_LIMIT_BYTES),
    )(y_in, scale, shift)


def double_conv(x_nchw, params):
    """DoubleConv forward. x_nchw: (N, Cin, H, W) -> (N, Cout, H, W)."""
    w1, g1, b1, w2, g2, b2 = params
    N, Cin, H, W = x_nchw.shape
    Cout = w1.shape[0]

    cin_p = _round_up(max(Cin, 8), 8)            # sublane-friendly K
    cp = _round_up(max(Cout, 128), 128)          # lane-dense Cout
    wp2 = W + 2
    L = H * wp2                                  # rows of the conv-output "band"
    mp = (H + 2) * wp2                           # padded-lattice length
    lead = (-(W + 3)) % 8                        # align band start to a sublane boundary
    p0 = lead + W + 3                            # flat lattice index of output pixel (0, 0)
    mp_pad = _round_up(lead + mp + 2, 8)         # +slack for the extreme tap shifts
    count = float(N * H * W)

    # ---- layout prep (plain-JAX glue; single pass over the input) ----------------------
    x = jnp.transpose(x_nchw, (0, 2, 3, 1)).astype(jnp.float32)        # NCHW -> NHWC
    xpad = jnp.pad(x, ((0, 0), (1, 1), (1, 1), (0, cin_p - Cin)))      # spatial+channel pad
    x_flat = jnp.pad(xpad.reshape(N, mp, cin_p),
                     ((0, 0), (lead, mp_pad - mp - lead), (0, 0)))

    w1p = _prep_weight(w1, cin_p, cp)
    w2p = _prep_weight(w2, cp, cp)
    g1p = jnp.pad(g1.astype(jnp.float32), (0, cp - Cout))
    b1p = jnp.pad(b1.astype(jnp.float32), (0, cp - Cout))
    g2p = jnp.pad(g2.astype(jnp.float32), (0, cp - Cout))
    b2p = jnp.pad(b2.astype(jnp.float32), (0, cp - Cout))

    # Validity mask over the band rows (padding columns of the lattice -> 0).
    cols = jnp.arange(L, dtype=jnp.int32) % wp2
    mask = (cols < W).astype(jnp.float32)[:, None]                     # (L, 1)

    # ---- block 1: conv1 + batch-stat accumulation ---------------------------------------
    y1, s1, q1 = _conv_stats_call(x_flat, w1p, mask, W, p0, L, cp)
    sc1, sh1 = _scale_shift(s1, q1, g1p, b1p, count)

    # ---- block 2 (fused): BN1+ReLU1 repack in VMEM, conv2, stats2 ------------------------
    y2, s2, q2 = _bn_relu_conv_stats_call(y1, sc1, sh1, w2p, mask, W, p0, mp_pad)
    sc2, sh2 = _scale_shift(s2, q2, g2p, b2p, count)

    # ---- BN2 + ReLU2, then slice the valid region and return NCHW ------------------------
    a2 = _bn_relu_call(y2, sc2, sh2)                                   # (N, L, Cp) band
    out = a2.reshape(N, H, wp2, cp)[:, :, :W, :Cout]                   # (N, H, W, Cout)
    return jnp.transpose(out, (0, 3, 1, 2))                            # NHWC -> NCHW


# --- pure-JAX reference (correctness check only) ------------------------------------------
def _ref_block(x, w, g, b):
    y = jax.lax.conv_general_dilated(
        x, w, window_strides=(1, 1), padding="SAME",
        dimension_numbers=("NCHW", "OIHW", "NCHW"))
    mean = y.mean(axis=(0, 2, 3), keepdims=True)
    var = ((y - mean) ** 2).mean(axis=(0, 2, 3), keepdims=True)
    y = (y - mean) * jax.lax.rsqrt(var + EPS)
    y = y * g.reshape(1, -1, 1, 1) + b.reshape(1, -1, 1, 1)
    return jnp.maximum(y, 0.0)


def double_conv_ref(x_nchw, params):
    w1, g1, b1, w2, g2, b2 = params
    return _ref_block(_ref_block(x_nchw, w1, g1, b1), w2, g2, b2)


if __name__ == "__main__":
    N, Cin, Cout, H, W = 2, 4, 8, 16, 16

    key = jax.random.PRNGKey(0)
    kx, kw1, kw2 = jax.random.split(key, 3)

    x = jax.random.normal(kx, (N, Cin, H, W), dtype=jnp.float32)
    # Conv weights (PyTorch OIHW layout, no bias); BN affine params at default init.
    w1 = 0.1 * jax.random.normal(kw1, (Cout, Cin, 3, 3), dtype=jnp.float32)
    w2 = 0.1 * jax.random.normal(kw2, (Cout, Cout, 3, 3), dtype=jnp.float32)
    g1 = jnp.ones((Cout,), jnp.float32)
    b1 = jnp.zeros((Cout,), jnp.float32)
    g2 = jnp.ones((Cout,), jnp.float32)
    b2 = jnp.zeros((Cout,), jnp.float32)
    params = (w1, g1, b1, w2, g2, b2)

    out = jax.jit(double_conv)(x, params)
    out = jax.block_until_ready(out)

    ref = double_conv_ref(x, params)
    assert out.shape == (N, Cout, H, W), out.shape
    assert jnp.allclose(out, ref, atol=2e-3, rtol=2e-3), float(jnp.max(jnp.abs(out - ref)))

    print("KERNEL_OK")
</pallas_src>

<mosaic_0001>
module attributes {stable_mosaic.version = 11 : i64} {
  func.func @kernel(%arg0: i32, %arg1: memref<1x336x8xf32, #tpu.memory_space<vmem>>, %arg2: memref<9x8x128xf32, #tpu.memory_space<vmem>>, %arg3: memref<288x1xf32, #tpu.memory_space<vmem>>, %arg4: memref<1x288x128xf32, #tpu.memory_space<vmem>>, %arg5: memref<1x1x128xf32, #tpu.memory_space<vmem>>, %arg6: memref<1x1x128xf32, #tpu.memory_space<vmem>>) attributes {dimension_semantics = [#tpu.dimension_semantics<parallel>], iteration_bounds = array<i64: 2>, scalar_prefetch = 0 : i64, scratch_operands = 0 : i64, tpu.core_type = #tpu.core_type<tc>, window_params = [{transform_indices = @transform_0, window_bounds = array<i64: 1, 336, 8>}, {pipeline_mode = #tpu.pipeline_mode<synchronous>, transform_indices = @transform_1, window_bounds = array<i64: 9, 8, 128>}, {pipeline_mode = #tpu.pipeline_mode<synchronous>, transform_indices = @transform_2, window_bounds = array<i64: 288, 1>}, {transform_indices = @transform_3, window_bounds = array<i64: 1, 288, 128>}, {transform_indices = @transform_4, window_bounds = array<i64: 1, 1, 128>}, {transform_indices = @transform_5, window_bounds = array<i64: 1, 1, 128>}]} {
    %cst = arith.constant 0.000000e+00 : f32
    %0 = vector.broadcast %cst : f32 to vector<288x128xf32>
    %c0 = arith.constant 0 : index
    %c5 = arith.constant 5 : index
    %c0_0 = arith.constant 0 : index
    %1 = vector.load %arg1[%c0, %c5, %c0_0] : memref<1x336x8xf32, #tpu.memory_space<vmem>>, vector<1x288x8xf32>
    %2 = vector.shape_cast %1 : vector<1x288x8xf32> to vector<288x8xf32>
    %c0_1 = arith.constant 0 : index
    %c0_2 = arith.constant 0 : index
    %c0_3 = arith.constant 0 : index
    %3 = vector.load %arg2[%c0_1, %c0_2, %c0_3] : memref<9x8x128xf32, #tpu.memory_space<vmem>>, vector<1x8x128xf32>
    %4 = vector.shape_cast %3 : vector<1x8x128xf32> to vector<8x128xf32>
    %cst_4 = arith.constant dense<0.000000e+00> : vector<288x128xf32>
    %5 = tpu.matmul %2, %4, %cst_4 {dimension_numbers = #tpu.dot_dimension_numbers<[1], [0], [0], [1], [0, 0, 1, 1], [], []>} : vector<288x8xf32>, vector<8x128xf32>, vector<288x128xf32> -> vector<288x128xf32>
    %6 = arith.addf %0, %5 : vector<288x128xf32>
    %c0_5 = arith.constant 0 : index
    %c6 = arith.constant 6 : index
    %c0_6 = arith.constant 0 : index
    %7 = vector.load %arg1[%c0_5, %c6, %c0_6] : memref<1x336x8xf32, #tpu.memory_space<vmem>>, vector<1x288x8xf32>
    %8 = vector.shape_cast %7 : vector<1x288x8xf32> to vector<288x8xf32>
    %c1 = arith.constant 1 : index
    %c0_7 = arith.constant 0 : index
    %c0_8 = arith.constant 0 : index
    %9 = vector.load %arg2[%c1, %c0_7, %c0_8] : memref<9x8x128xf32, #tpu.memory_space<vmem>>, vector<1x8x128xf32>
    %10 = vector.shape_cast %9 : vector<1x8x128xf32> to vector<8x128xf32>
    %cst_9 = arith.constant dense<0.000000e+00> : vector<288x128xf32>
    %11 = tpu.matmul %8, %10, %cst_9 {dimension_numbers = #tpu.dot_dimension_numbers<[1], [0], [0], [1], [0, 0, 1, 1], [], []>} : vector<288x8xf32>, vector<8x128xf32>, vector<288x128xf32> -> vector<288x128xf32>
    %12 = arith.addf %6, %11 : vector<288x128xf32>
    %c0_10 = arith.constant 0 : index
    %c7 = arith.constant 7 : index
    %c0_11 = arith.constant 0 : index
    %13 = vector.load %arg1[%c0_10, %c7, %c0_11] : memref<1x336x8xf32, #tpu.memory_space<vmem>>, vector<1x288x8xf32>
    %14 = vector.shape_cast %13 : vector<1x288x8xf32> to vector<288x8xf32>
    %c2 = arith.constant 2 : index
    %c0_12 = arith.constant 0 : index
    %c0_13 = arith.constant 0 : index
    %15 = vector.load %arg2[%c2, %c0_12, %c0_13] : memref<9x8x128xf32, #tpu.memory_space<vmem>>, vector<1x8x128xf32>
    %16 = vector.shape_cast %15 : vector<1x8x128xf32> to vector<8x128xf32>
    %cst_14 = arith.constant dense<0.000000e+00> : vector<288x128xf32>
    %17 = tpu.matmul %14, %16, %cst_14 {dimension_numbers = #tpu.dot_dimension_numbers<[1], [0], [0], [1], [0, 0, 1, 1], [], []>} : vector<288x8xf32>, vector<8x128xf32>, vector<288x128xf32> -> vector<288x128xf32>
    %18 = arith.addf %12, %17 : vector<288x128xf32>
    %c0_15 = arith.constant 0 : index
    %c23 = arith.constant 23 : index
    %c0_16 = arith.constant 0 : index
    %19 = vector.load %arg1[%c0_15, %c23, %c0_16] : memref<1x336x8xf32, #tpu.memory_space<vmem>>, vector<1x288x8xf32>
    %20 = vector.shape_cast %19 : vector<1x288x8xf32> to vector<288x8xf32>
    %c3 = arith.constant 3 : index
    %c0_17 = arith.constant 0 : index
    %c0_18 = arith.constant 0 : index
    %21 = vector.load %arg2[%c3, %c0_17, %c0_18] : memref<9x8x128xf32, #tpu.memory_space<vmem>>, vector<1x8x128xf32>
    %22 = vector.shape_cast %21 : vector<1x8x128xf32> to vector<8x128xf32>
    %cst_19 = arith.constant dense<0.000000e+00> : vector<288x128xf32>
    %23 = tpu.matmul %20, %22, %cst_19 {dimension_numbers = #tpu.dot_dimension_numbers<[1], [0], [0], [1], [0, 0, 1, 1], [], []>} : vector<288x8xf32>, vector<8x128xf32>, vector<288x128xf32> -> vector<288x128xf32>
    %24 = arith.addf %18, %23 : vector<288x128xf32>
    %c0_20 = arith.constant 0 : index
    %c24 = arith.constant 24 : index
    %c0_21 = arith.constant 0 : index
    %25 = vector.load %arg1[%c0_20, %c24, %c0_21] : memref<1x336x8xf32, #tpu.memory_space<vmem>>, vector<1x288x8xf32>
    %26 = vector.shape_cast %25 : vector<1x288x8xf32> to vector<288x8xf32>
    %c4 = arith.constant 4 : index
    %c0_22 = arith.constant 0 : index
    %c0_23 = arith.constant 0 : index
    %27 = vector.load %arg2[%c4, %c0_22, %c0_23] : memref<9x8x128xf32, #tpu.memory_space<vmem>>, vector<1x8x128xf32>
    %28 = vector.shape_cast %27 : vector<1x8x128xf32> to vector<8x128xf32>
    %cst_24 = arith.constant dense<0.000000e+00> : vector<288x128xf32>
    %29 = tpu.matmul %26, %28, %cst_24 {dimension_numbers = #tpu.dot_dimension_numbers<[1], [0], [0], [1], [0, 0, 1, 1], [], []>} : vector<288x8xf32>, vector<8x128xf32>, vector<288x128xf32> -> vector<288x128xf32>
    %30 = arith.addf %24, %29 : vector<288x128xf32>
    %c0_25 = arith.constant 0 : index
    %c25 = arith.constant 25 : index
    %c0_26 = arith.constant 0 : index
    %31 = vector.load %arg1[%c0_25, %c25, %c0_26] : memref<1x336x8xf32, #tpu.memory_space<vmem>>, vector<1x288x8xf32>
    %32 = vector.shape_cast %31 : vector<1x288x8xf32> to vector<288x8xf32>
    %c5_27 = arith.constant 5 : index
    %c0_28 = arith.constant 0 : index
    %c0_29 = arith.constant 0 : index
    %33 = vector.load %arg2[%c5_27, %c0_28, %c0_29] : memref<9x8x128xf32, #tpu.memory_space<vmem>>, vector<1x8x128xf32>
    %34 = vector.shape_cast %33 : vector<1x8x128xf32> to vector<8x128xf32>
    %cst_30 = arith.constant dense<0.000000e+00> : vector<288x128xf32>
    %35 = tpu.matmul %32, %34, %cst_30 {dimension_numbers = #tpu.dot_dimension_numbers<[1], [0], [0], [1], [0, 0, 1, 1], [], []>} : vector<288x8xf32>, vector<8x128xf32>, vector<288x128xf32> -> vector<288x128xf32>
    %36 = arith.addf %30, %35 : vector<288x128xf32>
    %c0_31 = arith.constant 0 : index
    %c41 = arith.constant 41 : index
    %c0_32 = arith.constant 0 : index
    %37 = vector.load %arg1[%c0_31, %c41, %c0_32] : memref<1x336x8xf32, #tpu.memory_space<vmem>>, vector<1x288x8xf32>
    %38 = vector.shape_cast %37 : vector<1x288x8xf32> to vector<288x8xf32>
    %c6_33 = arith.constant 6 : index
    %c0_34 = arith.constant 0 : index
    %c0_35 = arith.constant 0 : index
    %39 = vector.load %arg2[%c6_33, %c0_34, %c0_35] : memref<9x8x128xf32, #tpu.memory_space<vmem>>, vector<1x8x128xf32>
    %40 = vector.shape_cast %39 : vector<1x8x128xf32> to vector<8x128xf32>
    %cst_36 = arith.constant dense<0.000000e+00> : vector<288x128xf32>
    %41 = tpu.matmul %38, %40, %cst_36 {dimension_numbers = #tpu.dot_dimension_numbers<[1], [0], [0], [1], [0, 0, 1, 1], [], []>} : vector<288x8xf32>, vector<8x128xf32>, vector<288x128xf32> -> vector<288x128xf32>
    %42 = arith.addf %36, %41 : vector<288x128xf32>
    %c0_37 = arith.constant 0 : index
    %c42 = arith.constant 42 : index
    %c0_38 = arith.constant 0 : index
    %43 = vector.load %arg1[%c0_37, %c42, %c0_38] : memref<1x336x8xf32, #tpu.memory_space<vmem>>, vector<1x288x8xf32>
    %44 = vector.shape_cast %43 : vector<1x288x8xf32> to vector<288x8xf32>
    %c7_39 = arith.constant 7 : index
    %c0_40 = arith.constant 0 : index
    %c0_41 = arith.constant 0 : index
    %45 = vector.load %arg2[%c7_39, %c0_40, %c0_41] : memref<9x8x128xf32, #tpu.memory_space<vmem>>, vector<1x8x128xf32>
    %46 = vector.shape_cast %45 : vector<1x8x128xf32> to vector<8x128xf32>
    %cst_42 = arith.constant dense<0.000000e+00> : vector<288x128xf32>
    %47 = tpu.matmul %44, %46, %cst_42 {dimension_numbers = #tpu.dot_dimension_numbers<[1], [0], [0], [1], [0, 0, 1, 1], [], []>} : vector<288x8xf32>, vector<8x128xf32>, vector<288x128xf32> -> vector<288x128xf32>
    %48 = arith.addf %42, %47 : vector<288x128xf32>
    %c0_43 = arith.constant 0 : index
    %c43 = arith.constant 43 : index
    %c0_44 = arith.constant 0 : index
    %49 = vector.load %arg1[%c0_43, %c43, %c0_44] : memref<1x336x8xf32, #tpu.memory_space<vmem>>, vector<1x288x8xf32>
    %50 = vector.shape_cast %49 : vector<1x288x8xf32> to vector<288x8xf32>
    %c8 = arith.constant 8 : index
    %c0_45 = arith.constant 0 : index
    %c0_46 = arith.constant 0 : index
    %51 = vector.load %arg2[%c8, %c0_45, %c0_46] : memref<9x8x128xf32, #tpu.memory_space<vmem>>, vector<1x8x128xf32>
    %52 = vector.shape_cast %51 : vector<1x8x128xf32> to vector<8x128xf32>
    %cst_47 = arith.constant dense<0.000000e+00> : vector<288x128xf32>
    %53 = tpu.matmul %50, %52, %cst_47 {dimension_numbers = #tpu.dot_dimension_numbers<[1], [0], [0], [1], [0, 0, 1, 1], [], []>} : vector<288x8xf32>, vector<8x128xf32>, vector<288x128xf32> -> vector<288x128xf32>
    %54 = arith.addf %48, %53 : vector<288x128xf32>
    %c0_48 = arith.constant 0 : index
    %c0_49 = arith.constant 0 : index
    %c0_50 = arith.constant 0 : index
    %55 = vector.load %arg4[%c0_48, %c0_49, %c0_50] : memref<1x288x128xf32, #tpu.memory_space<vmem>>, vector<1x288x128xf32>
    %56 = vector.shape_cast %55 : vector<1x288x128xf32> to vector<288x128xf32>
    %57 = vector.shape_cast %54 : vector<288x128xf32> to vector<1x288x128xf32>
    tpu.vector_store %arg4[%c0_48, %c0_49, %c0_50], %57 {strides = array<i32>} : memref<1x288x128xf32, #tpu.memory_space<vmem>>, vector<1x288x128xf32>,
    %c0_51 = arith.constant 0 : index
    %c0_52 = arith.constant 0 : index
    %58 = vector.load %arg3[%c0_51, %c0_52] : memref<288x1xf32, #tpu.memory_space<vmem>>, vector<288x1xf32>
    %59 = vector.broadcast %58 : vector<288x1xf32> to vector<288x128xf32>
    %60 = arith.mulf %54, %59 : vector<288x128xf32>
    %cst_53 = arith.constant dense<0.000000e+00> : vector<128xf32>
    %61 = vector.multi_reduction <add>, %60, %cst_53 [0] : vector<288x128xf32> to vector<128xf32>
    %62 = vector.shape_cast %61 : vector<128xf32> to vector<1x128xf32>
    %c0_54 = arith.constant 0 : index
    %c0_55 = arith.constant 0 : index
    %c0_56 = arith.constant 0 : index
    %63 = vector.load %arg5[%c0_54, %c0_55, %c0_56] : memref<1x1x128xf32, #tpu.memory_space<vmem>>, vector<1x1x128xf32>
    %64 = vector.shape_cast %63 : vector<1x1x128xf32> to vector<1x128xf32>
    %65 = vector.shape_cast %62 : vector<1x128xf32> to vector<1x1x128xf32>
    tpu.vector_store %arg5[%c0_54, %c0_55, %c0_56], %65 {strides = array<i32>} : memref<1x1x128xf32, #tpu.memory_space<vmem>>, vector<1x1x128xf32>,
    %66 = arith.mulf %60, %60 : vector<288x128xf32>
    %cst_57 = arith.constant dense<0.000000e+00> : vector<128xf32>
    %67 = vector.multi_reduction <add>, %66, %cst_57 [0] : vector<288x128xf32> to vector<128xf32>
    %68 = vector.shape_cast %67 : vector<128xf32> to vector<1x128xf32>
    %c0_58 = arith.constant 0 : index
    %c0_59 = arith.constant 0 : index
    %c0_60 = arith.constant 0 : index
    %69 = vector.load %arg6[%c0_58, %c0_59, %c0_60] : memref<1x1x128xf32, #tpu.memory_space<vmem>>, vector<1x1x128xf32>
    %70 = vector.shape_cast %69 : vector<1x1x128xf32> to vector<1x128xf32>
    %71 = vector.shape_cast %68 : vector<1x128xf32> to vector<1x1x128xf32>
    tpu.vector_store %arg6[%c0_58, %c0_59, %c0_60], %71 {strides = array<i32>} : memref<1x1x128xf32, #tpu.memory_space<vmem>>, vector<1x1x128xf32>,
    return
  }
  func.func @transform_0(%arg0: i32) -> (i32, i32, i32) {
    %c0_i32 = arith.constant 0 : i32
    %c0_i32_0 = arith.constant 0 : i32
    %c0_i32_1 = arith.constant 0 : i32
    return %arg0, %c0_i32, %c0_i32_0 : i32, i32, i32
  }
  func.func @transform_1(%arg0: i32) -> (i32, i32, i32) {
    %c0_i32 = arith.constant 0 : i32
    %c0_i32_0 = arith.constant 0 : i32
    %c0_i32_1 = arith.constant 0 : i32
    %c0_i32_2 = arith.constant 0 : i32
    return %c0_i32, %c0_i32_0, %c0_i32_1 : i32, i32, i32
  }
  func.func @transform_2(%arg0: i32) -> (i32, i32) {
    %c0_i32 = arith.constant 0 : i32
    %c0_i32_0 = arith.constant 0 : i32
    %c0_i32_1 = arith.constant 0 : i32
    return %c0_i32, %c0_i32_0 : i32, i32
  }
  func.func @transform_3(%arg0: i32) -> (i32, i32, i32) {
    %c0_i32 = arith.constant 0 : i32
    %c0_i32_0 = arith.constant 0 : i32
    %c0_i32_1 = arith.constant 0 : i32
    return %arg0, %c0_i32, %c0_i32_0 : i32, i32, i32
  }
  func.func @transform_4(%arg0: i32) -> (i32, i32, i32) {
    %c0_i32 = arith.constant 0 : i32
    %c0_i32_0 = arith.constant 0 : i32
    %c0_i32_1 = arith.constant 0 : i32
    return %arg0, %c0_i32, %c0_i32_0 : i32, i32, i32
  }
  func.func @transform_5(%arg0: i32) -> (i32, i32, i32) {
    %c0_i32 = arith.constant 0 : i32
    %c0_i32_0 = arith.constant 0 : i32
    %c0_i32_1 = arith.constant 0 : i32
    return %arg0, %c0_i32, %c0_i32_0 : i32, i32, i32
  }
}

module attributes {stable_mosaic.version = 11 : i64} {
  func.func @_bn_relu_kernel(%arg0: i32, %arg1: memref<1x288x128xf32, #tpu.memory_space<vmem>>, %arg2: memref<1x128xf32, #tpu.memory_space<vmem>>, %arg3: memref<1x128xf32, #tpu.memory_space<vmem>>, %arg4: memref<1x288x128xf32, #tpu.memory_space<vmem>>) attributes {dimension_semantics = [#tpu.dimension_semantics<parallel>], iteration_bounds = array<i64: 2>, scalar_prefetch = 0 : i64, scratch_operands = 0 : i64, tpu.core_type = #tpu.core_type<tc>, window_params = [{transform_indices = @transform_0, window_bounds = array<i64: 1, 288, 128>}, {pipeline_mode = #tpu.pipeline_mode<synchronous>, transform_indices = @transform_1, window_bounds = array<i64: 1, 128>}, {pipeline_mode = #tpu.pipeline_mode<synchronous>, transform_indices = @transform_2, window_bounds = array<i64: 1, 128>}, {transform_indices = @transform_3, window_bounds = array<i64: 1, 288, 128>}]} {
    %c0 = arith.constant 0 : index
    %c0_0 = arith.constant 0 : index
    %c0_1 = arith.constant 0 : index
    %0 = vector.load %arg1[%c0, %c0_0, %c0_1] : memref<1x288x128xf32, #tpu.memory_space<vmem>>, vector<1x288x128xf32>
    %1 = vector.shape_cast %0 : vector<1x288x128xf32> to vector<288x128xf32>
    %c0_2 = arith.constant 0 : index
    %c0_3 = arith.constant 0 : index
    %2 = vector.load %arg2[%c0_2, %c0_3] : memref<1x128xf32, #tpu.memory_space<vmem>>, vector<1x128xf32>
    %3 = vector.broadcast %2 : vector<1x128xf32> to vector<288x128xf32>
    %4 = arith.mulf %1, %3 : vector<288x128xf32>
    %c0_4 = arith.constant 0 : index
    %c0_5 = arith.constant 0 : index
    %5 = vector.load %arg3[%c0_4, %c0_5] : memref<1x128xf32, #tpu.memory_space<vmem>>, vector<1x128xf32>
    %6 = vector.broadcast %5 : vector<1x128xf32> to vector<288x128xf32>
    %7 = arith.addf %4, %6 : vector<288x128xf32>
    %cst = arith.constant 0.000000e+00 : f32
    %8 = vector.broadcast %cst : f32 to vector<288x128xf32>
    %9 = arith.maximumf %7, %8 : vector<288x128xf32>
    %c0_6 = arith.constant 0 : index
    %c0_7 = arith.constant 0 : index
    %c0_8 = arith.constant 0 : index
    %10 = vector.load %arg4[%c0_6, %c0_7, %c0_8] : memref<1x288x128xf32, #tpu.memory_space<vmem>>, vector<1x288x128xf32>
    %11 = vector.shape_cast %10 : vector<1x288x128xf32> to vector<288x128xf32>
    %12 = vector.shape_cast %9 : vector<288x128xf32> to vector<1x288x128xf32>
    tpu.vector_store %arg4[%c0_6, %c0_7, %c0_8], %12 {strides = array<i32>} : memref<1x288x128xf32, #tpu.memory_space<vmem>>, vector<1x288x128xf32>,
    return
  }
  func.func @transform_0(%arg0: i32) -> (i32, i32, i32) {
    %c0_i32 = arith.constant 0 : i32
    %c0_i32_0 = arith.constant 0 : i32
    %c0_i32_1 = arith.constant 0 : i32
    return %arg0, %c0_i32, %c0_i32_0 : i32, i32, i32
  }
  func.func @transform_1(%arg0: i32) -> (i32, i32) {
    %c0_i32 = arith.constant 0 : i32
    %c0_i32_0 = arith.constant 0 : i32
    %c0_i32_1 = arith.constant 0 : i32
    return %c0_i32, %c0_i32_0 : i32, i32
  }
  func.func @transform_2(%arg0: i32) -> (i32, i32) {
    %c0_i32 = arith.constant 0 : i32
    %c0_i32_0 = arith.constant 0 : i32
    %c0_i32_1 = arith.constant 0 : i32
    return %c0_i32, %c0_i32_0 : i32, i32
  }
  func.func @transform_3(%arg0: i32) -> (i32, i32, i32) {
    %c0_i32 = arith.constant 0 : i32
    %c0_i32_0 = arith.constant 0 : i32
    %c0_i32_1 = arith.constant 0 : i32
    return %arg0, %c0_i32, %c0_i32_0 : i32, i32, i32
  }
}

module attributes {stable_mosaic.version = 11 : i64} {
  func.func @kernel(%arg0: i32, %arg1: memref<1x288x128xf32, #tpu.memory_space<vmem>>, %arg2: memref<1x128xf32, #tpu.memory_space<vmem>>, %arg3: memref<1x128xf32, #tpu.memory_space<vmem>>, %arg4: memref<9x128x128xf32, #tpu.memory_space<vmem>>, %arg5: memref<288x1xf32, #tpu.memory_space<vmem>>, %arg6: memref<1x288x128xf32, #tpu.memory_space<vmem>>, %arg7: memref<1x1x128xf32, #tpu.memory_space<vmem>>, %arg8: memref<1x1x128xf32, #tpu.memory_space<vmem>>, %arg9: memref<336x128xf32, #tpu.memory_space<vmem>>) attributes {dimension_semantics = [#tpu.dimension_semantics<parallel>], iteration_bounds = array<i64: 2>, scalar_prefetch = 0 : i64, scratch_operands = 1 : i64, tpu.core_type = #tpu.core_type<tc>, window_params = [{transform_indices = @transform_0, window_bounds = array<i64: 1, 288, 128>}, {pipeline_mode = #tpu.pipeline_mode<synchronous>, transform_indices = @transform_1, window_bounds = array<i64: 1, 128>}, {pipeline_mode = #tpu.pipeline_mode<synchronous>, transform_indices = @transform_2, window_bounds = array<i64: 1, 128>}, {pipeline_mode = #tpu.pipeline_mode<synchronous>, transform_indices = @transform_3, window_bounds = array<i64: 9, 128, 128>}, {pipeline_mode = #tpu.pipeline_mode<synchronous>, transform_indices = @transform_4, window_bounds = array<i64: 288, 1>}, {transform_indices = @transform_5, window_bounds = array<i64: 1, 288, 128>}, {transform_indices = @transform_6, window_bounds = array<i64: 1, 1, 128>}, {transform_indices = @transform_7, window_bounds = array<i64: 1, 1, 128>}]} {
    %c0 = arith.constant 0 : index
    %c0_0 = arith.constant 0 : index
    %c0_1 = arith.constant 0 : index
    %0 = vector.load %arg1[%c0, %c0_0, %c0_1] : memref<1x288x128xf32, #tpu.memory_space<vmem>>, vector<1x288x128xf32>
    %1 = vector.shape_cast %0 : vector<1x288x128xf32> to vector<288x128xf32>
    %c0_2 = arith.constant 0 : index
    %c0_3 = arith.constant 0 : index
    %2 = vector.load %arg2[%c0_2, %c0_3] : memref<1x128xf32, #tpu.memory_space<vmem>>, vector<1x128xf32>
    %3 = vector.broadcast %2 : vector<1x128xf32> to vector<288x128xf32>
    %4 = arith.mulf %1, %3 : vector<288x128xf32>
    %c0_4 = arith.constant 0 : index
    %c0_5 = arith.constant 0 : index
    %5 = vector.load %arg3[%c0_4, %c0_5] : memref<1x128xf32, #tpu.memory_space<vmem>>, vector<1x128xf32>
    %6 = vector.broadcast %5 : vector<1x128xf32> to vector<288x128xf32>
    %7 = arith.addf %4, %6 : vector<288x128xf32>
    %cst = arith.constant 0.000000e+00 : f32
    %8 = vector.broadcast %cst : f32 to vector<288x128xf32>
    %9 = arith.maximumf %7, %8 : vector<288x128xf32>
    %c0_6 = arith.constant 0 : index
    %c0_7 = arith.constant 0 : index
    %10 = vector.load %arg5[%c0_6, %c0_7] : memref<288x1xf32, #tpu.memory_space<vmem>>, vector<288x1xf32>
    %11 = vector.broadcast %10 : vector<288x1xf32> to vector<288x128xf32>
    %12 = arith.mulf %9, %11 : vector<288x128xf32>
    %cst_8 = arith.constant 0.000000e+00 : f32
    %13 = vector.broadcast %cst_8 : f32 to vector<24x128xf32>
    %c0_9 = arith.constant 0 : index
    %c0_10 = arith.constant 0 : index
    %14 = vector.load %arg9[%c0_9, %c0_10] : memref<336x128xf32, #tpu.memory_space<vmem>>, vector<24x128xf32>
    tpu.vector_store %arg9[%c0_9, %c0_10], %13 {strides = array<i32>} : memref<336x128xf32, #tpu.memory_space<vmem>>, vector<24x128xf32>,
    %cst_11 = arith.constant 0.000000e+00 : f32
    %15 = vector.broadcast %cst_11 : f32 to vector<24x128xf32>
    %c312 = arith.constant 312 : index
    %c0_12 = arith.constant 0 : index
    %16 = vector.load %arg9[%c312, %c0_12] : memref<336x128xf32, #tpu.memory_space<vmem>>, vector<24x128xf32>
    tpu.vector_store %arg9[%c312, %c0_12], %15 {strides = array<i32>} : memref<336x128xf32, #tpu.memory_space<vmem>>, vector<24x128xf32>,
    %c24 = arith.constant 24 : index
    %c0_13 = arith.constant 0 : index
    %17 = vector.load %arg9[%c24, %c0_13] : memref<336x128xf32, #tpu.memory_space<vmem>>, vector<288x128xf32>
    tpu.vector_store %arg9[%c24, %c0_13], %12 {strides = array<i32>} : memref<336x128xf32, #tpu.memory_space<vmem>>, vector<288x128xf32>,
    %cst_14 = arith.constant 0.000000e+00 : f32
    %18 = vector.broadcast %cst_14 : f32 to vector<288x128xf32>
    %c5 = arith.constant 5 : index
    %c0_15 = arith.constant 0 : index
    %19 = vector.load %arg9[%c5, %c0_15] : memref<336x128xf32, #tpu.memory_space<vmem>>, vector<288x128xf32>
    %c0_16 = arith.constant 0 : index
    %c0_17 = arith.constant 0 : index
    %c0_18 = arith.constant 0 : index
    %20 = vector.load %arg4[%c0_16, %c0_17, %c0_18] : memref<9x128x128xf32, #tpu.memory_space<vmem>>, vector<1x128x128xf32>
    %21 = vector.shape_cast %20 : vector<1x128x128xf32> to vector<128x128xf32>
    %cst_19 = arith.constant dense<0.000000e+00> : vector<288x128xf32>
    %22 = tpu.matmul %19, %21, %cst_19 {dimension_numbers = #tpu.dot_dimension_numbers<[1], [0], [0], [1], [0, 0, 1, 1], [], []>} : vector<288x128xf32>, vector<128x128xf32>, vector<288x128xf32> -> vector<288x128xf32>
    %23 = arith.addf %18, %22 : vector<288x128xf32>
    %c6 = arith.constant 6 : index
    %c0_20 = arith.constant 0 : index
    %24 = vector.load %arg9[%c6, %c0_20] : memref<336x128xf32, #tpu.memory_space<vmem>>, vector<288x128xf32>
    %c1 = arith.constant 1 : index
    %c0_21 = arith.constant 0 : index
    %c0_22 = arith.constant 0 : index
    %25 = vector.load %arg4[%c1, %c0_21, %c0_22] : memref<9x128x128xf32, #tpu.memory_space<vmem>>, vector<1x128x128xf32>
    %26 = vector.shape_cast %25 : vector<1x128x128xf32> to vector<128x128xf32>
    %cst_23 = arith.constant dense<0.000000e+00> : vector<288x128xf32>
    %27 = tpu.matmul %24, %26, %cst_23 {dimension_numbers = #tpu.dot_dimension_numbers<[1], [0], [0], [1], [0, 0, 1, 1], [], []>} : vector<288x128xf32>, vector<128x128xf32>, vector<288x128xf32> -> vector<288x128xf32>
    %28 = arith.addf %23, %27 : vector<288x128xf32>
    %c7 = arith.constant 7 : index
    %c0_24 = arith.constant 0 : index
    %29 = vector.load %arg9[%c7, %c0_24] : memref<336x128xf32, #tpu.memory_space<vmem>>, vector<288x128xf32>
    %c2 = arith.constant 2 : index
    %c0_25 = arith.constant 0 : index
    %c0_26 = arith.constant 0 : index
    %30 = vector.load %arg4[%c2, %c0_25, %c0_26] : memref<9x128x128xf32, #tpu.memory_space<vmem>>, vector<1x128x128xf32>
    %31 = vector.shape_cast %30 : vector<1x128x128xf32> to vector<128x128xf32>
    %cst_27 = arith.constant dense<0.000000e+00> : vector<288x128xf32>
    %32 = tpu.matmul %29, %31, %cst_27 {dimension_numbers = #tpu.dot_dimension_numbers<[1], [0], [0], [1], [0, 0, 1, 1], [], []>} : vector<288x128xf32>, vector<128x128xf32>, vector<288x128xf32> -> vector<288x128xf32>
    %33 = arith.addf %28, %32 : vector<288x128xf32>
    %c23 = arith.constant 23 : index
    %c0_28 = arith.constant 0 : index
    %34 = vector.load %arg9[%c23, %c0_28] : memref<336x128xf32, #tpu.memory_space<vmem>>, vector<288x128xf32>
    %c3 = arith.constant 3 : index
    %c0_29 = arith.constant 0 : index
    %c0_30 = arith.constant 0 : index
    %35 = vector.load %arg4[%c3, %c0_29, %c0_30] : memref<9x128x128xf32, #tpu.memory_space<vmem>>, vector<1x128x128xf32>
    %36 = vector.shape_cast %35 : vector<1x128x128xf32> to vector<128x128xf32>
    %cst_31 = arith.constant dense<0.000000e+00> : vector<288x128xf32>
    %37 = tpu.matmul %34, %36, %cst_31 {dimension_numbers = #tpu.dot_dimension_numbers<[1], [0], [0], [1], [0, 0, 1, 1], [], []>} : vector<288x128xf32>, vector<128x128xf32>, vector<288x128xf32> -> vector<288x128xf32>
    %38 = arith.addf %33, %37 : vector<288x128xf32>
    %c24_32 = arith.constant 24 : index
    %c0_33 = arith.constant 0 : index
    %39 = vector.load %arg9[%c24_32, %c0_33] : memref<336x128xf32, #tpu.memory_space<vmem>>, vector<288x128xf32>
    %c4 = arith.constant 4 : index
    %c0_34 = arith.constant 0 : index
    %c0_35 = arith.constant 0 : index
    %40 = vector.load %arg4[%c4, %c0_34, %c0_35] : memref<9x128x128xf32, #tpu.memory_space<vmem>>, vector<1x128x128xf32>
    %41 = vector.shape_cast %40 : vector<1x128x128xf32> to vector<128x128xf32>
    %cst_36 = arith.constant dense<0.000000e+00> : vector<288x128xf32>
    %42 = tpu.matmul %39, %41, %cst_36 {dimension_numbers = #tpu.dot_dimension_numbers<[1], [0], [0], [1], [0, 0, 1, 1], [], []>} : vector<288x128xf32>, vector<128x128xf32>, vector<288x128xf32> -> vector<288x128xf32>
    %43 = arith.addf %38, %42 : vector<288x128xf32>
    %c25 = arith.constant 25 : index
    %c0_37 = arith.constant 0 : index
    %44 = vector.load %arg9[%c25, %c0_37] : memref<336x128xf32, #tpu.memory_space<vmem>>, vector<288x128xf32>
    %c5_38 = arith.constant 5 : index
    %c0_39 = arith.constant 0 : index
    %c0_40 = arith.constant 0 : index
    %45 = vector.load %arg4[%c5_38, %c0_39, %c0_40] : memref<9x128x128xf32, #tpu.memory_space<vmem>>, vector<1x128x128xf32>
    %46 = vector.shape_cast %45 : vector<1x128x128xf32> to vector<128x128xf32>
    %cst_41 = arith.constant dense<0.000000e+00> : vector<288x128xf32>
    %47 = tpu.matmul %44, %46, %cst_41 {dimension_numbers = #tpu.dot_dimension_numbers<[1], [0], [0], [1], [0, 0, 1, 1], [], []>} : vector<288x128xf32>, vector<128x128xf32>, vector<288x128xf32> -> vector<288x128xf32>
    %48 = arith.addf %43, %47 : vector<288x128xf32>
    %c41 = arith.constant 41 : index
    %c0_42 = arith.constant 0 : index
    %49 = vector.load %arg9[%c41, %c0_42] : memref<336x128xf32, #tpu.memory_space<vmem>>, vector<288x128xf32>
    %c6_43 = arith.constant 6 : index
    %c0_44 = arith.constant 0 : index
    %c0_45 = arith.constant 0 : index
    %50 = vector.load %arg4[%c6_43, %c0_44, %c0_45] : memref<9x128x128xf32, #tpu.memory_space<vmem>>, vector<1x128x128xf32>
    %51 = vector.shape_cast %50 : vector<1x128x128xf32> to vector<128x128xf32>
    %cst_46 = arith.constant dense<0.000000e+00> : vector<288x128xf32>
    %52 = tpu.matmul %49, %51, %cst_46 {dimension_numbers = #tpu.dot_dimension_numbers<[1], [0], [0], [1], [0, 0, 1, 1], [], []>} : vector<288x128xf32>, vector<128x128xf32>, vector<288x128xf32> -> vector<288x128xf32>
    %53 = arith.addf %48, %52 : vector<288x128xf32>
    %c42 = arith.constant 42 : index
    %c0_47 = arith.constant 0 : index
    %54 = vector.load %arg9[%c42, %c0_47] : memref<336x128xf32, #tpu.memory_space<vmem>>, vector<288x128xf32>
    %c7_48 = arith.constant 7 : index
    %c0_49 = arith.constant 0 : index
    %c0_50 = arith.constant 0 : index
    %55 = vector.load %arg4[%c7_48, %c0_49, %c0_50] : memref<9x128x128xf32, #tpu.memory_space<vmem>>, vector<1x128x128xf32>
    %56 = vector.shape_cast %55 : vector<1x128x128xf32> to vector<128x128xf32>
    %cst_51 = arith.constant dense<0.000000e+00> : vector<288x128xf32>
    %57 = tpu.matmul %54, %56, %cst_51 {dimension_numbers = #tpu.dot_dimension_numbers<[1], [0], [0], [1], [0, 0, 1, 1], [], []>} : vector<288x128xf32>, vector<128x128xf32>, vector<288x128xf32> -> vector<288x128xf32>
    %58 = arith.addf %53, %57 : vector<288x128xf32>
    %c43 = arith.constant 43 : index
    %c0_52 = arith.constant 0 : index
    %59 = vector.load %arg9[%c43, %c0_52] : memref<336x128xf32, #tpu.memory_space<vmem>>, vector<288x128xf32>
    %c8 = arith.constant 8 : index
    %c0_53 = arith.constant 0 : index
    %c0_54 = arith.constant 0 : index
    %60 = vector.load %arg4[%c8, %c0_53, %c0_54] : memref<9x128x128xf32, #tpu.memory_space<vmem>>, vector<1x128x128xf32>
    %61 = vector.shape_cast %60 : vector<1x128x128xf32> to vector<128x128xf32>
    %cst_55 = arith.constant dense<0.000000e+00> : vector<288x128xf32>
    %62 = tpu.matmul %59, %61, %cst_55 {dimension_numbers = #tpu.dot_dimension_numbers<[1], [0], [0], [1], [0, 0, 1, 1], [], []>} : vector<288x128xf32>, vector<128x128xf32>, vector<288x128xf32> -> vector<288x128xf32>
    %63 = arith.addf %58, %62 : vector<288x128xf32>
    %c0_56 = arith.constant 0 : index
    %c0_57 = arith.constant 0 : index
    %c0_58 = arith.constant 0 : index
    %64 = vector.load %arg6[%c0_56, %c0_57, %c0_58] : memref<1x288x128xf32, #tpu.memory_space<vmem>>, vector<1x288x128xf32>
    %65 = vector.shape_cast %64 : vector<1x288x128xf32> to vector<288x128xf32>
    %66 = vector.shape_cast %63 : vector<288x128xf32> to vector<1x288x128xf32>
    tpu.vector_store %arg6[%c0_56, %c0_57, %c0_58], %66 {strides = array<i32>} : memref<1x288x128xf32, #tpu.memory_space<vmem>>, vector<1x288x128xf32>,
    %c0_59 = arith.constant 0 : index
    %c0_60 = arith.constant 0 : index
    %67 = vector.load %arg5[%c0_59, %c0_60] : memref<288x1xf32, #tpu.memory_space<vmem>>, vector<288x1xf32>
    %68 = vector.broadcast %67 : vector<288x1xf32> to vector<288x128xf32>
    %69 = arith.mulf %63, %68 : vector<288x128xf32>
    %cst_61 = arith.constant dense<0.000000e+00> : vector<128xf32>
    %70 = vector.multi_reduction <add>, %69, %cst_61 [0] : vector<288x128xf32> to vector<128xf32>
    %71 = vector.shape_cast %70 : vector<128xf32> to vector<1x128xf32>
    %c0_62 = arith.constant 0 : index
    %c0_63 = arith.constant 0 : index
    %c0_64 = arith.constant 0 : index
    %72 = vector.load %arg7[%c0_62, %c0_63, %c0_64] : memref<1x1x128xf32, #tpu.memory_space<vmem>>, vector<1x1x128xf32>
    %73 = vector.shape_cast %72 : vector<1x1x128xf32> to vector<1x128xf32>
    %74 = vector.shape_cast %71 : vector<1x128xf32> to vector<1x1x128xf32>
    tpu.vector_store %arg7[%c0_62, %c0_63, %c0_64], %74 {strides = array<i32>} : memref<1x1x128xf32, #tpu.memory_space<vmem>>, vector<1x1x128xf32>,
    %75 = arith.mulf %69, %69 : vector<288x128xf32>
    %cst_65 = arith.constant dense<0.000000e+00> : vector<128xf32>
    %76 = vector.multi_reduction <add>, %75, %cst_65 [0] : vector<288x128xf32> to vector<128xf32>
    %77 = vector.shape_cast %76 : vector<128xf32> to vector<1x128xf32>
    %c0_66 = arith.constant 0 : index
    %c0_67 = arith.constant 0 : index
    %c0_68 = arith.constant 0 : index
    %78 = vector.load %arg8[%c0_66, %c0_67, %c0_68] : memref<1x1x128xf32, #tpu.memory_space<vmem>>, vector<1x1x128xf32>
    %79 = vector.shape_cast %78 : vector<1x1x128xf32> to vector<1x128xf32>
    %80 = vector.shape_cast %77 : vector<1x128xf32> to vector<1x1x128xf32>
    tpu.vector_store %arg8[%c0_66, %c0_67, %c0_68], %80 {strides = array<i32>} : memref<1x1x128xf32, #tpu.memory_space<vmem>>, vector<1x1x128xf32>,
    return
  }
  func.func @transform_0(%arg0: i32) -> (i32, i32, i32) {
    %c0_i32 = arith.constant 0 : i32
    %c0_i32_0 = arith.constant 0 : i32
    %c0_i32_1 = arith.constant 0 : i32
    return %arg0, %c0_i32, %c0_i32_0 : i32, i32, i32
  }
  func.func @transform_1(%arg0: i32) -> (i32, i32) {
    %c0_i32 = arith.constant 0 : i32
    %c0_i32_0 = arith.constant 0 : i32
    %c0_i32_1 = arith.constant 0 : i32
    return %c0_i32, %c0_i32_0 : i32, i32
  }
  func.func @transform_2(%arg0: i32) -> (i32, i32) {
    %c0_i32 = arith.constant 0 : i32
    %c0_i32_0 = arith.constant 0 : i32
    %c0_i32_1 = arith.constant 0 : i32
    return %c0_i32, %c0_i32_0 : i32, i32
  }
  func.func @transform_3(%arg0: i32) -> (i32, i32, i32) {
    %c0_i32 = arith.constant 0 : i32
    %c0_i32_0 = arith.constant 0 : i32
    %c0_i32_1 = arith.constant 0 : i32
    %c0_i32_2 = arith.constant 0 : i32
    return %c0_i32, %c0_i32_0, %c0_i32_1 : i32, i32, i32
  }
  func.func @transform_4(%arg0: i32) -> (i32, i32) {
    %c0_i32 = arith.constant 0 : i32
    %c0_i32_0 = arith.constant 0 : i32
    %c0_i32_1 = arith.constant 0 : i32
    return %c0_i32, %c0_i32_0 : i32, i32
  }
  func.func @transform_5(%arg0: i32) -> (i32, i32, i32) {
    %c0_i32 = arith.constant 0 : i32
    %c0_i32_0 = arith.constant 0 : i32
    %c0_i32_1 = arith.constant 0 : i32
    return %arg0, %c0_i32, %c0_i32_0 : i32, i32, i32
  }
  func.func @transform_6(%arg0: i32) -> (i32, i32, i32) {
    %c0_i32 = arith.constant 0 : i32
    %c0_i32_0 = arith.constant 0 : i32
    %c0_i32_1 = arith.constant 0 : i32
    return %arg0, %c0_i32, %c0_i32_0 : i32, i32, i32
  }
  func.func @transform_7(%arg0: i32) -> (i32, i32, i32) {
    %c0_i32 = arith.constant 0 : i32
    %c0_i32_0 = arith.constant 0 : i32
    %c0_i32_1 = arith.constant 0 : i32
    return %arg0, %c0_i32, %c0_i32_0 : i32, i32, i32
  }
}

</mosaic_0001>

<bundles_post_ra>
// kernel: double_conv.5
= control target key start
LH: loop header
LB: loop body
LE: loop exit
PB: predicated region body
PF: predicated region fallthrough
CT: control target
= control target key end

     0   :  { %s468_s12 = smov 0   ;;  %s643_s0 = inlined_call_operand.vmem [shape: f32[2,288,128], index: 0, kind: input, shape index: {}]   ;;  %s644_s1 = inlined_call_operand.vmem [shape: f32[1,128], index: 1, kind: input, shape index: {}]   ;;  %s645_s2 = inlined_call_operand.vmem [shape: f32[1,128], index: 2, kind: input, shape index: {}]   ;;  %s646_s3 = inlined_call_operand.vmem [shape: f32[2,288,128], index: 3, kind: output, shape index: {}]  }
   0x1 LB: > { %s420_s13 = sadd.s32 4294967295, %s446_s12   ;;  %p424_p0 = scmp.ge.s32.totalorder %s446_s12, 1  ;;  %s446_s12 = sphi %s468_s12, %s13_s12  }
   0x2   : > { %p137_p1 = scmp.lt.s32.totalorder %s446_s12, 3 }
   0x4   : > { %p138_p2 = pnand %p424_p0, %p137_p1 }
   0x5   : > { %p161_p3 = scmp.lt.s32.totalorder (!%p138_p2), %s420_s13, 1  ;;  %v479_v0 = vld [vmem:[%s644_s1] ss:$0 sm:$0xff] (!%p138_p2) }
   0x6   : > { %141 = sbr.rel (%p138_p2) target bundleno = 50 (0x32), region = 32  ;;  %v489_v1 = vld [vmem:[%s645_s2] ss:$0 sm:$0xff] (!%p138_p2) }
   0xd   : > { %s648_s13 = smov (!%p161_p3, %s420_s13), 1 }
   0xe   : > { %s431_s14 = smul.u32 288, %s648_s13 }
  0x10   : > { %s484_s19 = scalar_lea.vmem %s643_s0, %s431_s14  ;;  %s512_s24 = scalar_lea.vmem %s646_s3, %s431_s14 }
  0x11   : > { %v171_v2 = vld [vmem:[%s484_s19] sm:$0xff]  ;;  %v172_v3 = vld [vmem:[%s484_s19 + $0x8] sm:$0xff]  ;;  %v173_v4 = vld [vmem:[%s484_s19 + $0x10] sm:$0xff] }
  0x12   : > { %v214_v5 = vmul.f32 %v479_v0, %v171_v2  ;;  %v215_v6 = vmul.f32 %v479_v0, %v172_v3  ;;  %v216_v7 = vmul.f32 %v479_v0, %v173_v4  ;;  %v174_v8 = vld [vmem:[%s484_s19 + $0x18] sm:$0xff]  ;;  %v175_v9 = vld [vmem:[%s484_s19 + $0x20] sm:$0xff]  ;;  %v176_v10 = vld [vmem:[%s484_s19 + $0x28] sm:$0xff] }
  0x13   : > { %v217_v11 = vmul.f32 %v479_v0, %v174_v8  ;;  %v218_v12 = vmul.f32 %v479_v0, %v175_v9  ;;  %v219_v13 = vmul.f32 %v479_v0, %v176_v10  ;;  %v177_v14 = vld [vmem:[%s484_s19 + $0x30] sm:$0xff]  ;;  %v178_v15 = vld [vmem:[%s484_s19 + $0x38] sm:$0xff]  ;;  %v179_v24 = vld [vmem:[%s484_s19 + $0x40] sm:$0xff] }
  0x14   : > { %v257_v16 = vadd.f32 %v489_v1, %v214_v5  ;;  %v258_v17 = vadd.f32 %v489_v1, %v215_v6  ;;  %v259_v18 = vadd.f32 %v489_v1, %v216_v7  ;;  %v220_v19 = vmul.f32 %v479_v0, %v177_v14  ;;  %v180_v25 = vld [vmem:[%s484_s19 + $0x48] sm:$0xff]  ;;  %v181_v26 = vld [vmem:[%s484_s19 + $0x50] sm:$0xff]  ;;  %v182_v31 = vld [vmem:[%s484_s19 + $0x58] sm:$0xff] }
  0x15   : > { %v260_v20 = vadd.f32 %v489_v1, %v217_v11  ;;  %v261_v21 = vadd.f32 %v489_v1, %v218_v12  ;;  %v262_v22 = vadd.f32 %v489_v1, %v219_v13  ;;  %v221_v23 = vmul.f32 %v479_v0, %v178_v15  ;;  %v183_v32 = vld [vmem:[%s484_s19 + $0x60] sm:$0xff]  ;;  %v184_v33 = vld [vmem:[%s484_s19 + $0x68] sm:$0xff]  ;;  %v185_v38 = vld [vmem:[%s484_s19 + $0x70] sm:$0xff] }
  0x16   : > { %v293_v27 = vmax.f32 %v257_v16, 0.0  ;;  %v294_v28 = vmax.f32 %v258_v17, 0.0  ;;  %v295_v29 = vmax.f32 %v259_v18, 0.0  ;;  %v263_v30 = vadd.f32 %v489_v1, %v220_v19  ;;  %v186_v43 = vld [vmem:[%s484_s19 + $0x78] sm:$0xff]  ;;  %v187_v56 = vld [vmem:[%s484_s19 + $0x80] sm:$0xff]  ;;  %v188_v57 = vld [vmem:[%s484_s19 + $0x88] sm:$0xff] }
  0x17   : > { %v296_v34 = vmax.f32 %v260_v20, 0.0  ;;  %v297_v35 = vmax.f32 %v261_v21, 0.0  ;;  %v298_v36 = vmax.f32 %v262_v22, 0.0  ;;  %v264_v37 = vadd.f32 %v489_v1, %v221_v23  ;;  %v189_v58 = vld [vmem:[%s484_s19 + $0x90] sm:$0xff]  ;;  %v190_v63 = vld [vmem:[%s484_s19 + $0x98] sm:$0xff]  ;;  %v191_v2 = vld [vmem:[%s484_s19 + $0xa0] sm:$0xff] }
  0x18   : > { %329 = vst [vmem:[%s512_s24] sm:$0xff] %v293_v27  ;;  %330 = vst [vmem:[%s512_s24 + $0x8] sm:$0xff] %v294_v28  ;;  %v299_v39 = vmax.f32 %v263_v30, 0.0  ;;  %v222_v40 = vmul.f32 %v479_v0, %v179_v24  ;;  %v223_v41 = vmul.f32 %v479_v0, %v180_v25  ;;  %v224_v42 = vmul.f32 %v479_v0, %v181_v26  ;;  %v192_v3 = vld [vmem:[%s484_s19 + $0xa8] sm:$0xff]  ;;  %v193_v8 = vld [vmem:[%s484_s19 + $0xb0] sm:$0xff] }
  0x19   : > { %331 = vst [vmem:[%s512_s24 + $0x10] sm:$0xff] %v295_v29  ;;  %332 = vst [vmem:[%s512_s24 + $0x18] sm:$0xff] %v296_v34  ;;  %v300_v44 = vmax.f32 %v264_v37, 0.0  ;;  %v225_v45 = vmul.f32 %v479_v0, %v182_v31  ;;  %v226_v46 = vmul.f32 %v479_v0, %v183_v32  ;;  %v227_v47 = vmul.f32 %v479_v0, %v184_v33  ;;  %v194_v13 = vld [vmem:[%s484_s19 + $0xb8] sm:$0xff]  ;;  %v195_v26 = vld [vmem:[%s484_s19 + $0xc0] sm:$0xff] }
  0x1a   : > { %333 = vst [vmem:[%s512_s24 + $0x20] sm:$0xff] %v297_v35  ;;  %334 = vst [vmem:[%s512_s24 + $0x28] sm:$0xff] %v298_v36  ;;  %v265_v48 = vadd.f32 %v489_v1, %v222_v40  ;;  %v266_v49 = vadd.f32 %v489_v1, %v223_v41  ;;  %v267_v50 = vadd.f32 %v489_v1, %v224_v42  ;;  %v196_v27 = vld [vmem:[%s484_s19 + $0xc8] sm:$0xff]  ;;  %v197_v28 = vld [vmem:[%s484_s19 + $0xd0] sm:$0xff] }
  0x1b   : > { %335 = vst [vmem:[%s512_s24 + $0x30] sm:$0xff] %v299_v39  ;;  %v228_v51 = vmul.f32 %v479_v0, %v185_v38  ;;  %336 = vst [vmem:[%s512_s24 + $0x38] sm:$0xff] %v300_v44  ;;  %v268_v52 = vadd.f32 %v489_v1, %v225_v45  ;;  %v269_v53 = vadd.f32 %v489_v1, %v226_v46  ;;  %v198_v33 = vld [vmem:[%s484_s19 + $0xd8] sm:$0xff]  ;;  %v199_v34 = vld [vmem:[%s484_s19 + $0xe0] sm:$0xff] }
  0x1c   : > { %v270_v54 = vadd.f32 %v489_v1, %v227_v47  ;;  %v229_v55 = vmul.f32 %v479_v0, %v186_v43  ;;  %v301_v59 = vmax.f32 %v265_v48, 0.0  ;;  %v302_v60 = vmax.f32 %v266_v49, 0.0  ;;  %v200_v35 = vld [vmem:[%s484_s19 + $0xe8] sm:$0xff]  ;;  %v201_v40 = vld [vmem:[%s484_s19 + $0xf0] sm:$0xff]  ;;  %v202_v45 = vld [vmem:[%s484_s19 + $0xf8] sm:$0xff] }
  0x1d   : > { %v303_v61 = vmax.f32 %v267_v50, 0.0  ;;  %v271_v62 = vadd.f32 %v489_v1, %v228_v51  ;;  %v304_v4 = vmax.f32 %v268_v52, 0.0  ;;  %v305_v5 = vmax.f32 %v269_v53, 0.0 }
  0x1e   : > { %v306_v6 = vmax.f32 %v270_v54, 0.0  ;;  %v272_v7 = vadd.f32 %v489_v1, %v229_v55  ;;  %337 = vst [vmem:[%s512_s24 + $0x40] sm:$0xff] %v301_v59  ;;  %338 = vst [vmem:[%s512_s24 + $0x48] sm:$0xff] %v302_v60  ;;  %v230_v10 = vmul.f32 %v479_v0, %v187_v56  ;;  %v231_v11 = vmul.f32 %v479_v0, %v188_v57  ;;  %v204_v59 = vld [vmem:[%s484_s19 + $0x108] sm:$0xff]  ;;  %v205_v60 = vld [vmem:[%s484_s19 + $0x110] sm:$0xff] }
  0x1f   : > { %339 = vst [vmem:[%s512_s24 + $0x50] sm:$0xff] %v303_v61  ;;  %v307_v9 = vmax.f32 %v271_v62, 0.0  ;;  %v232_v12 = vmul.f32 %v479_v0, %v189_v58  ;;  %340 = vst [vmem:[%s512_s24 + $0x58] sm:$0xff] %v304_v4  ;;  %v233_v15 = vmul.f32 %v479_v0, %v190_v63  ;;  %v234_v16 = vmul.f32 %v479_v0, %v191_v2  ;;  %v203_v58 = vld [vmem:[%s484_s19 + $0x100] sm:$0xff] }
  0x20   : > { %341 = vst [vmem:[%s512_s24 + $0x60] sm:$0xff] %v305_v5  ;;  %342 = vst [vmem:[%s512_s24 + $0x68] sm:$0xff] %v306_v6  ;;  %v308_v14 = vmax.f32 %v272_v7, 0.0  ;;  %v235_v17 = vmul.f32 %v479_v0, %v192_v3  ;;  %v273_v18 = vadd.f32 %v489_v1, %v230_v10  ;;  %v274_v19 = vadd.f32 %v489_v1, %v231_v11  ;;  %v206_v3 = vld [vmem:[%s484_s19 + $0x118] sm:$0xff] }
  0x21   : > { %343 = vst [vmem:[%s512_s24 + $0x70] sm:$0xff] %v307_v9  ;;  %v275_v20 = vadd.f32 %v489_v1, %v232_v12  ;;  %v236_v21 = vmul.f32 %v479_v0, %v193_v8  ;;  %v276_v22 = vadd.f32 %v489_v1, %v233_v15  ;;  %v277_v23 = vadd.f32 %v489_v1, %v234_v16 }
  0x22   : > { %344 = vst [vmem:[%s512_s24 + $0x78] sm:$0xff] %v308_v14  ;;  %v278_v24 = vadd.f32 %v489_v1, %v235_v17  ;;  %v237_v25 = vmul.f32 %v479_v0, %v194_v13  ;;  %v309_v29 = vmax.f32 %v273_v18, 0.0  ;;  %v310_v30 = vmax.f32 %v274_v19, 0.0 }
  0x23   : > { %v311_v31 = vmax.f32 %v275_v20, 0.0  ;;  %v279_v32 = vadd.f32 %v489_v1, %v236_v21  ;;  %v312_v36 = vmax.f32 %v276_v22, 0.0  ;;  %v313_v37 = vmax.f32 %v277_v23, 0.0 }
  0x24   : > { %v314_v38 = vmax.f32 %v278_v24, 0.0  ;;  %v280_v39 = vadd.f32 %v489_v1, %v237_v25  ;;  %345 = vst [vmem:[%s512_s24 + $0x80] sm:$0xff] %v309_v29  ;;  %346 = vst [vmem:[%s512_s24 + $0x88] sm:$0xff] %v310_v30  ;;  %v238_v42 = vmul.f32 %v479_v0, %v195_v26  ;;  %v239_v43 = vmul.f32 %v479_v0, %v196_v27 }
  0x25   : > { %347 = vst [vmem:[%s512_s24 + $0x90] sm:$0xff] %v311_v31  ;;  %v315_v41 = vmax.f32 %v279_v32, 0.0  ;;  %v240_v44 = vmul.f32 %v479_v0, %v197_v28  ;;  %348 = vst [vmem:[%s512_s24 + $0x98] sm:$0xff] %v312_v36  ;;  %v241_v47 = vmul.f32 %v479_v0, %v198_v33  ;;  %v242_v48 = vmul.f32 %v479_v0, %v199_v34 }
  0x26   : > { %349 = vst [vmem:[%s512_s24 + $0xa0] sm:$0xff] %v313_v37  ;;  %350 = vst [vmem:[%s512_s24 + $0xa8] sm:$0xff] %v314_v38  ;;  %v316_v46 = vmax.f32 %v280_v39, 0.0  ;;  %v243_v49 = vmul.f32 %v479_v0, %v200_v35  ;;  %v281_v50 = vadd.f32 %v489_v1, %v238_v42  ;;  %v282_v51 = vadd.f32 %v489_v1, %v239_v43 }
  0x27   : > { %351 = vst [vmem:[%s512_s24 + $0xb0] sm:$0xff] %v315_v41  ;;  %v283_v52 = vadd.f32 %v489_v1, %v240_v44  ;;  %v244_v53 = vmul.f32 %v479_v0, %v201_v40  ;;  %v284_v54 = vadd.f32 %v489_v1, %v241_v47  ;;  %v285_v55 = vadd.f32 %v489_v1, %v242_v48 }
  0x28   : > { %352 = vst [vmem:[%s512_s24 + $0xb8] sm:$0xff] %v316_v46  ;;  %v286_v56 = vadd.f32 %v489_v1, %v243_v49  ;;  %v245_v57 = vmul.f32 %v479_v0, %v202_v45  ;;  %v317_v61 = vmax.f32 %v281_v50, 0.0  ;;  %v318_v62 = vmax.f32 %v282_v51, 0.0 }
  0x29   : > { %v319_v63 = vmax.f32 %v283_v52, 0.0  ;;  %v287_v2 = vadd.f32 %v489_v1, %v244_v53  ;;  %v320_v4 = vmax.f32 %v284_v54, 0.0  ;;  %v321_v5 = vmax.f32 %v285_v55, 0.0 }
  0x2a   : > { %v322_v6 = vmax.f32 %v286_v56, 0.0  ;;  %v288_v7 = vadd.f32 %v489_v1, %v245_v57  ;;  %353 = vst [vmem:[%s512_s24 + $0xc0] sm:$0xff] %v317_v61  ;;  %354 = vst [vmem:[%s512_s24 + $0xc8] sm:$0xff] %v318_v62  ;;  %v246_v9 = vmul.f32 %v479_v0, %v203_v58  ;;  %v247_v10 = vmul.f32 %v479_v0, %v204_v59 }
  0x2b   : > { %355 = vst [vmem:[%s512_s24 + $0xd0] sm:$0xff] %v319_v63  ;;  %v323_v8 = vmax.f32 %v287_v2, 0.0  ;;  %v248_v11 = vmul.f32 %v479_v0, %v205_v60  ;;  %356 = vst [vmem:[%s512_s24 + $0xd8] sm:$0xff] %v320_v4  ;;  %v249_v13 = vmul.f32 %v479_v0, %v206_v3 }
  0x2c   : > { %357 = vst [vmem:[%s512_s24 + $0xe0] sm:$0xff] %v321_v5  ;;  %358 = vst [vmem:[%s512_s24 + $0xe8] sm:$0xff] %v322_v6  ;;  %v324_v12 = vmax.f32 %v288_v7, 0.0  ;;  %v289_v14 = vadd.f32 %v489_v1, %v246_v9  ;;  %v290_v15 = vadd.f32 %v489_v1, %v247_v10 }
  0x2d   : > { %359 = vst [vmem:[%s512_s24 + $0xf0] sm:$0xff] %v323_v8  ;;  %v291_v16 = vadd.f32 %v489_v1, %v248_v11  ;;  %v292_v17 = vadd.f32 %v489_v1, %v249_v13 }
  0x2e   : > { %360 = vst [vmem:[%s512_s24 + $0xf8] sm:$0xff] %v324_v12  ;;  %v325_v18 = vmax.f32 %v289_v14, 0.0  ;;  %v326_v19 = vmax.f32 %v290_v15, 0.0 }
  0x2f   : > { %v327_v20 = vmax.f32 %v291_v16, 0.0  ;;  %v328_v21 = vmax.f32 %v292_v17, 0.0 }
  0x30   : > { %361 = vst [vmem:[%s512_s24 + $0x100] sm:$0xff] %v325_v18  ;;  %362 = vst [vmem:[%s512_s24 + $0x108] sm:$0xff] %v326_v19 }
  0x31   : > { %363 = vst [vmem:[%s512_s24 + $0x110] sm:$0xff] %v327_v20  ;;  %364 = vst [vmem:[%s512_s24 + $0x118] sm:$0xff] %v328_v21 }
  0x32 PF: > { %s13_s12 = sadd.s32 1, %s446_s12  }
  0x33   : > { %p10_p4 = scmp.ge.s32.totalorder %s13_s12, 4  }
  0x35   :  { %12 = sbr.rel (!%p10_p4) target bundleno = 1 (0x1), region = 62 }

// kernel: double_conv.3
= control target key start
LH: loop header
LB: loop body
LE: loop exit
PB: predicated region body
PF: predicated region fallthrough
CT: control target
= control target key end

     0   :  { %s6047_s18 = smov 0   ;;  %s7230_s0 = inlined_call_operand.vmem [shape: f32[2,336,8], index: 0, kind: input, shape index: {}]   ;;  %s7231_s1 = inlined_call_operand.vmem [shape: f32[9,8,128], index: 1, kind: input, shape index: {}]   ;;  %s7232_s2 = inlined_call_operand.vmem [shape: f32[288,1], index: 2, kind: input, shape index: {}]   ;;  %s7233_s3 = inlined_call_operand.vmem [shape: f32[2,288,128], index: 3, kind: output, shape index: {0}]   ;;  %s7234_s4 = inlined_call_operand.vmem [shape: f32[2,1,128], index: 4, kind: output, shape index: {1}]   ;;  %s7235_s5 = inlined_call_operand.vmem [shape: f32[2,1,128], index: 5, kind: output, shape index: {2}]  }
   0x1 LB: > { %s4526_s19 = sadd.s32 4294967295, %s6014_s18   ;;  %p4530_p0 = scmp.ge.s32.totalorder %s6014_s18, 1  ;;  %s6014_s18 = sphi %s6047_s18, %s16_s18  }
   0x2   : > { %p192_p1 = scmp.lt.s32.totalorder %s6014_s18, 3 }
   0x4   : > { %p193_p2 = pnand %p4530_p0, %p192_p1 }
   0x5   : > { %v4533_v0 = vld [vmem:[%s7231_s1 + $0x8] sm:$0xff] (!%p193_p2)  ;;  %v6061_v1 = vld [vmem:[%s7231_s1 + $0x20] sm:$0xff] (!%p193_p2)  ;;  %p226_p3 = scmp.lt.s32.totalorder (!%p193_p2), %s4526_s19, 1  ;;  %vm317_vm0 = vcmask (!%p193_p2), 64512   ;;  %v6092_v10 = vld [vmem:[%s7231_s1 + $0x30] sm:$0xff] (!%p193_p2) }
   0x6   : > { %196 = sbr.rel (%p193_p2) target bundleno = 575 (0x23f), region = 32  ;;  %v278_v2 = vld [vmem:[%s7231_s1] sm:$0xff] (!%p193_p2)  ;;  %5200 = vmatprep.subr.mxu1 (!%p193_p2), %v4533_v0  ;;  %5424 = vmatprep.subr.mxu0 (!%p193_p2), %v6061_v1  ;;  %v4717_v3 = vld [vmem:[%s7231_s1 + $0x28] sm:$0xff] (!%p193_p2)  ;;  %v6097_v11 = vld [vmem:[%s7231_s1 + $0x10] sm:$0xff] (!%p193_p2) }
   0x7   : > { %5201 = vmatpush3.msra.mxu1 (!%p193_p2), %v4533_v0  ;;  %5425 = vmatpush3.msra.mxu0 (!%p193_p2), %v6061_v1  ;;  %v6176_v48 = vld [vmem:[%s7231_s1 + $0x38] sm:$0xff] (!%p193_p2) }
   0x8   : > { %5256 = vmatprep.subr.mxu1 (!%p193_p2), %v278_v2  ;;  %5480 = vmatprep.subr.mxu0 (!%p193_p2), %v4717_v3 }
   0xd   : > { %s7237_s19 = smov (!%p226_p3, %s4526_s19), 1 }
   0xe   : > { %s5994_s28 = smul.u32 336, %s7237_s19  ;;  %s238_s8 = scalar_lea.vmem %s7234_s4, %s7237_s19 }
   0xf   : > { %s241_s11 = scalar_lea.vmem %s7235_s5, %s7237_s19 }
  0x10   : > { %s6077_s6 = scalar_lea.vmem %s7230_s0, %s5994_s28 }
  0x11   : > { %v279_v4 = vld [vmem:[%s6077_s6 + $0x6] sm:$0xff]  ;;  %v1878_v5 = vld [vmem:[%s6077_s6 + $0x18] sm:$0xff]  ;;  %v280_v6 = vld [vmem:[%s6077_s6 + $0xe] sm:$0xff] }
  0x12   : > { %5202 = vmatprep.mubr.msk.f32.mxu1 %vm317_vm0, %v279_v4  ;;  %5426 = vmatprep.mubr.msk.f32.mxu0 %vm317_vm0, %v1878_v5  ;;  %v1879_v7 = vld [vmem:[%s6077_s6 + $0x20] sm:$0xff]  ;;  %v281_v8 = vld [vmem:[%s6077_s6 + $0x16] sm:$0xff]  ;;  %v1880_v9 = vld [vmem:[%s6077_s6 + $0x28] sm:$0xff] }
  0x13   : > { %5203 = vmatmul.mubr.msk.f32.vlgmr.msra.gmra.mrb[0].mxu1 %vm317_vm0, %v280_v6  ;;  %5427 = vmatmul.mubr.msk.f32.vlgmr.msra.gmra.mrb[0].mxu0 %vm317_vm0, %v1879_v7  ;;  %v282_v12 = vld [vmem:[%s6077_s6 + $0x1e] sm:$0xff]  ;;  %v1881_v13 = vld [vmem:[%s6077_s6 + $0x30] sm:$0xff]  ;;  %v283_v14 = vld [vmem:[%s6077_s6 + $0x26] sm:$0xff] }
  0x14   : > { %5257 = vmatpush3.msra.mxu1 %v278_v2  ;;  %5481 = vmatpush3.msra.mxu0 %v4717_v3  ;;  %v1882_v15 = vld [vmem:[%s6077_s6 + $0x38] sm:$0xff]  ;;  %v284_v16 = vld [vmem:[%s6077_s6 + $0x2e] sm:$0xff]  ;;  %v1883_v17 = vld [vmem:[%s6077_s6 + $0x40] sm:$0xff] }
  0x15   : > { %5205 = vmatprep.mubr.msk.f32.mxu1 %vm317_vm0, %v281_v8  ;;  %5429 = vmatprep.mubr.msk.f32.mxu0 %vm317_vm0, %v1880_v9  ;;  %v285_v18 = vld [vmem:[%s6077_s6 + $0x36] sm:$0xff]  ;;  %v1884_v19 = vld [vmem:[%s6077_s6 + $0x48] sm:$0xff]  ;;  %v286_v20 = vld [vmem:[%s6077_s6 + $0x3e] sm:$0xff] }
  0x16   : > { %5536 = vmatprep.subr.mxu0 %v6092_v10  ;;  %5312 = vmatprep.subr.mxu1 %v6097_v11  ;;  %v1885_v21 = vld [vmem:[%s6077_s6 + $0x50] sm:$0xff]  ;;  %v287_v22 = vld [vmem:[%s6077_s6 + $0x46] sm:$0xff]  ;;  %v1886_v23 = vld [vmem:[%s6077_s6 + $0x58] sm:$0xff] }
  0x17   : > { %5206 = vmatmul.mubr.msk.f32.gmra.mrb[2].mxu1 %vm317_vm0, %v282_v12  ;;  %5430 = vmatmul.mubr.msk.f32.gmra.mrb[2].mxu0 %vm317_vm0, %v1881_v13  ;;  %v288_v24 = vld [vmem:[%s6077_s6 + $0x4e] sm:$0xff]  ;;  %v1887_v25 = vld [vmem:[%s6077_s6 + $0x60] sm:$0xff]  ;;  %v289_v26 = vld [vmem:[%s6077_s6 + $0x56] sm:$0xff] }
  0x18   : > { %5208 = vmatprep.mubr.msk.f32.mxu1 %vm317_vm0, %v283_v14  ;;  %5432 = vmatprep.mubr.msk.f32.mxu0 %vm317_vm0, %v1882_v15  ;;  %v1888_v27 = vld [vmem:[%s6077_s6 + $0x68] sm:$0xff]  ;;  %v290_v28 = vld [vmem:[%s6077_s6 + $0x5e] sm:$0xff]  ;;  %v1889_v29 = vld [vmem:[%s6077_s6 + $0x70] sm:$0xff] }
  0x19   : > { %v291_v30 = vld [vmem:[%s6077_s6 + $0x66] sm:$0xff]  ;;  %v1890_v31 = vld [vmem:[%s6077_s6 + $0x78] sm:$0xff]  ;;  %v292_v32 = vld [vmem:[%s6077_s6 + $0x6e] sm:$0xff] }
  0x1a   : > { %v1891_v33 = vld [vmem:[%s6077_s6 + $0x80] sm:$0xff]  ;;  %v293_v34 = vld [vmem:[%s6077_s6 + $0x76] sm:$0xff]  ;;  %v1892_v35 = vld [vmem:[%s6077_s6 + $0x88] sm:$0xff] }
  0x1b   : > { %5209 = vmatmul.mubr.msk.f32.gmra.mrb[4].mxu1 %vm317_vm0, %v284_v16  ;;  %5433 = vmatmul.mubr.msk.f32.gmra.mrb[4].mxu0 %vm317_vm0, %v1883_v17  ;;  %v294_v36 = vld [vmem:[%s6077_s6 + $0x7e] sm:$0xff]  ;;  %v1893_v37 = vld [vmem:[%s6077_s6 + $0x90] sm:$0xff]  ;;  %v295_v38 = vld [vmem:[%s6077_s6 + $0x86] sm:$0xff] }
  0x1c   : > { %5211 = vmatprep.mubr.msk.f32.mxu1 %vm317_vm0, %v285_v18  ;;  %5435 = vmatprep.mubr.msk.f32.mxu0 %vm317_vm0, %v1884_v19  ;;  %v1894_v39 = vld [vmem:[%s6077_s6 + $0x98] sm:$0xff]  ;;  %v296_v40 = vld [vmem:[%s6077_s6 + $0x8e] sm:$0xff]  ;;  %v1895_v41 = vld [vmem:[%s6077_s6 + $0xa0] sm:$0xff] }
  0x1d   : > { %v297_v42 = vld [vmem:[%s6077_s6 + $0x96] sm:$0xff]  ;;  %v298_v44 = vld [vmem:[%s6077_s6 + $0x9e] sm:$0xff]  ;;  %v299_v46 = vld [vmem:[%s6077_s6 + $0xa6] sm:$0xff] }
  0x1e   : > { %v2305_v43 = vld [vmem:[%s6077_s6 + $0x19] sm:$0xff]  ;;  %v2306_v45 = vld [vmem:[%s6077_s6 + $0x21] sm:$0xff]  ;;  %v6171_v47 = vld [vmem:[%s6077_s6 + $0x29] sm:$0xff] }
  0x1f   : > { %5212 = vmatmul.mubr.msk.f32.gmra.mrb[6].mxu1 %vm317_vm0, %v286_v20  ;;  %5436 = vmatmul.mubr.msk.f32.gmra.mrb[6].mxu0 %vm317_vm0, %v1885_v21  ;;  %v300_v49 = vld [vmem:[%s6077_s6 + $0xae] sm:$0xff]  ;;  %v301_v51 = vld [vmem:[%s6077_s6 + $0xb6] sm:$0xff]  ;;  %v302_v53 = vld [vmem:[%s6077_s6 + $0xbe] sm:$0xff] }
  0x20   : > { %5214 = vmatprep.mubr.msk.f32.mxu1 %vm317_vm0, %v287_v22  ;;  %5438 = vmatprep.mubr.msk.f32.mxu0 %vm317_vm0, %v1886_v23  ;;  %v6184_v50 = vld [vmem:[%s6077_s6 + $0x31] sm:$0xff]  ;;  %v6190_v52 = vld [vmem:[%s6077_s6 + $0x39] sm:$0xff]  ;;  %v6201_v54 = vld [vmem:[%s6077_s6 + $0x41] sm:$0xff] }
  0x21   : > { %v303_v55 = vld [vmem:[%s6077_s6 + $0xc6] sm:$0xff]  ;;  %v304_v57 = vld [vmem:[%s6077_s6 + $0xce] sm:$0xff]  ;;  %v305_v59 = vld [vmem:[%s6077_s6 + $0xd6] sm:$0xff] }
  0x22   : > { %v6205_v56 = vld [vmem:[%s6077_s6 + $0x49] sm:$0xff]  ;;  %v6215_v58 = vld [vmem:[%s6077_s6 + $0x51] sm:$0xff]  ;;  %v6219_v60 = vld [vmem:[%s6077_s6 + $0x59] sm:$0xff] }
  0x23   : > { %5215 = vmatmul.mubr.msk.f32.gmra.mrb[8].mxu1 %vm317_vm0, %v288_v24  ;;  %5439 = vmatmul.mubr.msk.f32.gmra.mrb[8].mxu0 %vm317_vm0, %v1887_v25  ;;  %v306_v61 = vld [vmem:[%s6077_s6 + $0xde] sm:$0xff]  ;;  %v307_v63 = vld [vmem:[%s6077_s6 + $0xe6] sm:$0xff]  ;;  %v308_v2 = vld [vmem:[%s6077_s6 + $0xee] sm:$0xff] }
  0x24   : > { %5217 = vmatprep.mubr.msk.f32.mxu1 %vm317_vm0, %v289_v26  ;;  %5441 = vmatprep.mubr.msk.f32.mxu0 %vm317_vm0, %v1888_v27  ;;  %v6229_v62 = vld [vmem:[%s6077_s6 + $0x61] sm:$0xff]  ;;  %v6233_v0 = vld [vmem:[%s6077_s6 + $0x69] sm:$0xff]  ;;  %v6243_v3 = vld [vmem:[%s6077_s6 + $0x71] sm:$0xff] }
  0x25   : > { %v309_v4 = vld [vmem:[%s6077_s6 + $0xf6] sm:$0xff]  ;;  %v310_v6 = vld [vmem:[%s6077_s6 + $0xfe] sm:$0xff]  ;;  %v311_v8 = vld [vmem:[%s6077_s6 + $0x106] sm:$0xff] }
  0x26   : > { %v6247_v5 = vld [vmem:[%s6077_s6 + $0x79] sm:$0xff]  ;;  %v6257_v7 = vld [vmem:[%s6077_s6 + $0x81] sm:$0xff]  ;;  %v6261_v9 = vld [vmem:[%s6077_s6 + $0x89] sm:$0xff] }
  0x27   : > { %5218 = vmatmul.mubr.msk.f32.gmra.mrb[10].mxu1 %vm317_vm0, %v290_v28  ;;  %5442 = vmatmul.mubr.msk.f32.gmra.mrb[10].mxu0 %vm317_vm0, %v1889_v29  ;;  %v6271_v12 = vld [vmem:[%s6077_s6 + $0x91] sm:$0xff]  ;;  %v6275_v14 = vld [vmem:[%s6077_s6 + $0x99] sm:$0xff]  ;;  %v6285_v16 = vld [vmem:[%s6077_s6 + $0xa1] sm:$0xff] }
  0x28   : > { %5220 = vmatprep.mubr.msk.f32.mxu1 %vm317_vm0, %v291_v30  ;;  %5444 = vmatprep.mubr.msk.f32.mxu0 %vm317_vm0, %v1890_v31  ;;  %v313_v13 = vld [vmem:[%s6077_s6 + $0x116] sm:$0xff]  ;;  %v314_v15 = vld [vmem:[%s6077_s6 + $0x11e] sm:$0xff]  ;;  %v6289_v18 = vld [vmem:[%s6077_s6 + $0xa9] sm:$0xff] }
  0x29   : > { %v242_v17 = vld [vmem:[%s6077_s6 + $0x5] sm:$0xff]  ;;  %v243_v19 = vld [vmem:[%s6077_s6 + $0xd] sm:$0xff]  ;;  %v244_v21 = vld [vmem:[%s6077_s6 + $0x15] sm:$0xff] }
  0x2a   : > { %v6299_v20 = vld [vmem:[%s6077_s6 + $0xb1] sm:$0xff]  ;;  %v6303_v22 = vld [vmem:[%s6077_s6 + $0xb9] sm:$0xff]  ;;  %v6317_v25 = vld [vmem:[%s6077_s6 + $0xc1] sm:$0xff] }
  0x2b   : > { %5221 = vmatmul.mubr.msk.f32.gmra.mrb[12].mxu1 %vm317_vm0, %v292_v32  ;;  %5445 = vmatmul.mubr.msk.f32.gmra.mrb[12].mxu0 %vm317_vm0, %v1891_v33  ;;  %v6308_v23 = vld [vmem:[%s7231_s1 + $0x18] sm:$0xff]  ;;  %v246_v26 = vld [vmem:[%s6077_s6 + $0x25] sm:$0xff] }
  0x2c   : > { %5223 = vmatprep.mubr.msk.f32.mxu1 %vm317_vm0, %v293_v34  ;;  %5447 = vmatprep.mubr.msk.f32.mxu0 %vm317_vm0, %v1892_v35  ;;  %v245_v24 = vld [vmem:[%s6077_s6 + $0x1d] sm:$0xff]  ;;  %v6323_v27 = vld [vmem:[%s6077_s6 + $0xc9] sm:$0xff]  ;;  %v6334_v28 = vld [vmem:[%s6077_s6 + $0xd1] sm:$0xff] }
  0x2d   : > { %v248_v29 = vld [vmem:[%s6077_s6 + $0x35] sm:$0xff]  ;;  %v249_v31 = vld [vmem:[%s6077_s6 + $0x3d] sm:$0xff]  ;;  %v250_v33 = vld [vmem:[%s6077_s6 + $0x45] sm:$0xff] }
  0x2e   : > { %v6338_v30 = vld [vmem:[%s6077_s6 + $0xd9] sm:$0xff]  ;;  %v6348_v32 = vld [vmem:[%s6077_s6 + $0xe1] sm:$0xff]  ;;  %v6352_v34 = vld [vmem:[%s6077_s6 + $0xe9] sm:$0xff] }
  0x2f   : > { %5224 = vmatmul.mubr.msk.f32.gmra.mrb[14].mxu1 %vm317_vm0, %v294_v36  ;;  %5448 = vmatmul.mubr.msk.f32.gmra.mrb[14].mxu0 %vm317_vm0, %v1893_v37  ;;  %v251_v35 = vld [vmem:[%s6077_s6 + $0x4d] sm:$0xff]  ;;  %v252_v37 = vld [vmem:[%s6077_s6 + $0x55] sm:$0xff] }
  0x30   : > { %5226 = vmatprep.mubr.msk.f32.mxu1 %vm317_vm0, %v295_v38  ;;  %5450 = vmatprep.mubr.msk.f32.mxu0 %vm317_vm0, %v1894_v39  ;;  %v6362_v36 = vld [vmem:[%s6077_s6 + $0xf1] sm:$0xff]  ;;  %v6366_v38 = vld [vmem:[%s6077_s6 + $0xf9] sm:$0xff] }
  0x31   : > { %v253_v39 = vld [vmem:[%s6077_s6 + $0x5d] sm:$0xff] }
  0x33   : > { %5227 = vmatmul.mubr.msk.f32.gmra.mrb[16].mxu1 %vm317_vm0, %v296_v40  ;;  %5451 = vmatmul.mubr.msk.f32.gmra.mrb[16].mxu0 %vm317_vm0, %v1895_v41  ;;  %v6376_v40 = vld [vmem:[%s6077_s6 + $0x101] sm:$0xff] }
  0x34   : > { %5229 = vmatprep.mubr.msk.f32.mxu1 %vm317_vm0, %v297_v42  ;;  %5482 = vmatprep.mubr.msk.f32.mxu0 %vm317_vm0, %v2305_v43  ;;  %v254_v41 = vld [vmem:[%s6077_s6 + $0x65] sm:$0xff]  ;;  %v255_v43 = vld [vmem:[%s6077_s6 + $0x6d] sm:$0xff] }
  0x35   : > { %v6380_v42 = vld [vmem:[%s6077_s6 + $0x109] sm:$0xff] }
  0x37   : > { %5230 = vmatmul.mubr.msk.f32.gmra.mrb[18].mxu1 %vm317_vm0, %v298_v44  ;;  %5483 = vmatmul.mubr.msk.f32.vlgmr.msra.gmra.mrb[0].mxu0 %vm317_vm0, %v2306_v45  ;;  %v6390_v44 = vld [vmem:[%s6077_s6 + $0x111] sm:$0xff] }
  0x38   : > { %5537 = vmatpush3.msra.mxu0 %v6092_v10  ;;  %5232 = vmatprep.mubr.msk.f32.mxu1 %vm317_vm0, %v299_v46  ;;  %v312_v10 = vld [vmem:[%s6077_s6 + $0x10e] sm:$0xff]  ;;  %v6394_v46 = vld [vmem:[%s6077_s6 + $0x119] sm:$0xff] }
  0x39   : > { %5485 = vmatprep.mubr.msk.f32.mxu0 %vm317_vm0, %v6171_v47  ;;  %5592 = vmatprep.subr.mxu0 %v6176_v48  ;;  %v256_v45 = vld [vmem:[%s6077_s6 + $0x75] sm:$0xff] }
  0x3b   : > { %5233 = vmatmul.mubr.msk.f32.gmra.mrb[20].mxu1 %vm317_vm0, %v300_v49  ;;  %5486 = vmatmul.mubr.msk.f32.gmra.mrb[2].mxu0 %vm317_vm0, %v6184_v50  ;;  %v257_v49 = vld [vmem:[%s6077_s6 + $0x7d] sm:$0xff] }
  0x3c   : > { %5235 = vmatprep.mubr.msk.f32.mxu1 %vm317_vm0, %v301_v51  ;;  %5488 = vmatprep.mubr.msk.f32.mxu0 %vm317_vm0, %v6190_v52  ;;  %v6404_v51 = vld [vmem:[%s6077_s6 + $0x121] sm:$0xff] }
  0x3f   : > { %5236 = vmatmul.mubr.msk.f32.gmra.mrb[22].mxu1 %vm317_vm0, %v302_v53  ;;  %5489 = vmatmul.mubr.msk.f32.gmra.mrb[4].mxu0 %vm317_vm0, %v6201_v54  ;;  %v258_v53 = vld [vmem:[%s6077_s6 + $0x85] sm:$0xff] }
  0x40   : > { %5238 = vmatprep.mubr.msk.f32.mxu1 %vm317_vm0, %v303_v55  ;;  %5491 = vmatprep.mubr.msk.f32.mxu0 %vm317_vm0, %v6205_v56  ;;  %v6408_v55 = vld [vmem:[%s6077_s6 + $0x129] sm:$0xff] }
  0x43   : > { %5239 = vmatmul.mubr.msk.f32.gmra.mrb[24].mxu1 %vm317_vm0, %v304_v57  ;;  %5492 = vmatmul.mubr.msk.f32.gmra.mrb[6].mxu0 %vm317_vm0, %v6215_v58  ;;  %v259_v57 = vld [vmem:[%s6077_s6 + $0x8d] sm:$0xff] }
  0x44   : > { %5241 = vmatprep.mubr.msk.f32.mxu1 %vm317_vm0, %v305_v59  ;;  %5494 = vmatprep.mubr.msk.f32.mxu0 %vm317_vm0, %v6219_v60  ;;  %v6418_v59 = vld [vmem:[%s6077_s6 + $0x131] sm:$0xff] }
  0x47   : > { %5242 = vmatmul.mubr.msk.f32.gmra.mrb[26].mxu1 %vm317_vm0, %v306_v61  ;;  %5495 = vmatmul.mubr.msk.f32.gmra.mrb[8].mxu0 %vm317_vm0, %v6229_v62  ;;  %v260_v61 = vld [vmem:[%s6077_s6 + $0x95] sm:$0xff] }
  0x48   : > { %5244 = vmatprep.mubr.msk.f32.mxu1 %vm317_vm0, %v307_v63  ;;  %5497 = vmatprep.mubr.msk.f32.mxu0 %vm317_vm0, %v6233_v0  ;;  %v261_v63 = vld [vmem:[%s6077_s6 + $0x9d] sm:$0xff] }
  0x4b   : > { %5245 = vmatmul.mubr.msk.f32.gmra.mrb[28].mxu1 %vm317_vm0, %v308_v2  ;;  %5498 = vmatmul.mubr.msk.f32.gmra.mrb[10].mxu0 %vm317_vm0, %v6243_v3  ;;  %v262_v2 = vld [vmem:[%s6077_s6 + $0xa5] sm:$0xff] }
  0x4c   : > { %5247 = vmatprep.mubr.msk.f32.mxu1 %vm317_vm0, %v309_v4  ;;  %5500 = vmatprep.mubr.msk.f32.mxu0 %vm317_vm0, %v6247_v5  ;;  %v6432_v4 = vld [vmem:[%s7231_s1 + $0x40] sm:$0xff] }
  0x4f   : > { %5248 = vmatmul.mubr.msk.f32.gmra.mrb[30].mxu1 %vm317_vm0, %v310_v6  ;;  %5501 = vmatmul.mubr.msk.f32.gmra.mrb[12].mxu0 %vm317_vm0, %v6257_v7  ;;  %v264_v6 = vld [vmem:[%s6077_s6 + $0xb5] sm:$0xff] }
  0x50   : > { %5250 = vmatprep.mubr.msk.f32.mxu1 %vm317_vm0, %v311_v8  ;;  %5503 = vmatprep.mubr.msk.f32.mxu0 %vm317_vm0, %v6261_v9  ;;  %v277_v8 = vld [vmem:[%s6077_s6 + $0x11d] sm:$0xff] }
  0x53   : > { %5251 = vmatmul.mubr.msk.f32.gmra.mrb[32].mxu1 %vm317_vm0, %v312_v10  ;;  %5504 = vmatmul.mubr.msk.f32.gmra.mrb[14].mxu0 %vm317_vm0, %v6271_v12  ;;  %v6016_v10 = vmov 0  }
  0x54   : > { %5253 = vmatprep.mubr.msk.f32.mxu1 %vm317_vm0, %v313_v13  ;;  %5506 = vmatprep.mubr.msk.f32.mxu0 %vm317_vm0, %v6275_v14  ;;  %v1025_v13 = vld [vmem:[%s6077_s6 + $0xf] sm:$0xff] }
  0x55   : > { %6005 = vset.pattern.permute.xlu0 %v6016_v10  ;;  %6006 = vset.pattern.permute.xlu1 %v6016_v10  ;;  %v4075_v10 = vld [vmem:[%s7232_s2 + $0xd0] sm:$0xff] }
  0x57   : > { %5254 = vmatmul.mubr.msk.f32.gmra.mrb[34].mxu1 %vm317_vm0, %v314_v15  ;;  %5507 = vmatmul.mubr.msk.f32.gmra.mrb[16].mxu0 %vm317_vm0, %v6285_v16  ;;  %v4051_v15 = vld [vmem:[%s7232_s2 + $0x10] sm:$0xff] }
  0x58   : > { %5258 = vmatprep.mubr.msk.f32.mxu1 %vm317_vm0, %v242_v17  ;;  %5509 = vmatprep.mubr.msk.f32.mxu0 %vm317_vm0, %v6289_v18  ;;  %v6526_v17 = vld [vmem:[%s6077_s6 + $0x1f] sm:$0xff] }
  0x59   : > { %4097 = vperm.xlu1 %6006, %v4051_v15   ;;  %v6774_v15 = vld [vmem:[%s6077_s6 + $0xe7] sm:$0xff] }
  0x5b   : > { %5259 = vmatmul.mubr.msk.f32.vlgmr.msra.gmra.mrb[0].mxu1 %vm317_vm0, %v243_v19  ;;  %5510 = vmatmul.mubr.msk.f32.gmra.mrb[18].mxu0 %vm317_vm0, %v6299_v20  ;;  %v4052_v19 = vld [vmem:[%s7232_s2 + $0x18] sm:$0xff] }
  0x5c   : > { %5313 = vmatpush3.msra.mxu1 %v6097_v11  ;;  %5261 = vmatprep.mubr.msk.f32.mxu1 %vm317_vm0, %v244_v21  ;;  %v247_v11 = vld [vmem:[%s6077_s6 + $0x2d] sm:$0xff]  ;;  %v6552_v21 = vld [vmem:[%s6077_s6 + $0x37] sm:$0xff] }
  0x5d   : > { %5512 = vmatprep.mubr.msk.f32.mxu0 %vm317_vm0, %v6303_v22  ;;  %5368 = vmatprep.subr.mxu1 %v6308_v23 }
  0x5e   : > { %4102 = vperm.xlu1 %6006, %v4052_v19   ;;  %v4076_v19 = vld [vmem:[%s7232_s2 + $0xd8] sm:$0xff] }
  0x5f   : > { %5262 = vmatmul.mubr.msk.f32.gmra.mrb[2].mxu1 %vm317_vm0, %v245_v24  ;;  %5513 = vmatmul.mubr.msk.f32.gmra.mrb[20].mxu0 %vm317_vm0, %v6317_v25  ;;  %v6569_v24 = vld [vmem:[%s6077_s6 + $0x3f] sm:$0xff] }
  0x60   : > { %5264 = vmatprep.mubr.msk.f32.mxu1 %vm317_vm0, %v246_v26  ;;  %5515 = vmatprep.mubr.msk.f32.mxu0 %vm317_vm0, %v6323_v27  ;;  %v4056_v26 = vld [vmem:[%s7232_s2 + $0x38] sm:$0xff] }
  0x63   : > { %5265 = vmatmul.mubr.msk.f32.gmra.mrb[4].mxu1 %vm317_vm0, %v247_v11  ;;  %5516 = vmatmul.mubr.msk.f32.gmra.mrb[22].mxu0 %vm317_vm0, %v6334_v28  ;;  %v6589_v11 = vld [vmem:[%s6077_s6 + $0x4f] sm:$0xff] }
  0x64   : > { %5267 = vmatprep.mubr.msk.f32.mxu1 %vm317_vm0, %v248_v29  ;;  %5518 = vmatprep.mubr.msk.f32.mxu0 %vm317_vm0, %v6338_v30  ;;  %v4058_v29 = vld [vmem:[%s7232_s2 + $0x48] sm:$0xff] }
  0x67   : > { %5268 = vmatmul.mubr.msk.f32.gmra.mrb[6].mxu1 %vm317_vm0, %v249_v31  ;;  %5519 = vmatmul.mubr.msk.f32.gmra.mrb[24].mxu0 %vm317_vm0, %v6348_v32  ;;  %v6609_v31 = vld [vmem:[%s6077_s6 + $0x5f] sm:$0xff] }
  0x68   : > { %5270 = vmatprep.mubr.msk.f32.mxu1 %vm317_vm0, %v250_v33  ;;  %5521 = vmatprep.mubr.msk.f32.mxu0 %vm317_vm0, %v6352_v34  ;;  %v4060_v33 = vld [vmem:[%s7232_s2 + $0x58] sm:$0xff] }
  0x6b   : > { %5271 = vmatmul.mubr.msk.f32.gmra.mrb[8].mxu1 %vm317_vm0, %v251_v35  ;;  %5522 = vmatmul.mubr.msk.f32.gmra.mrb[26].mxu0 %vm317_vm0, %v6362_v36  ;;  %v6629_v35 = vld [vmem:[%s6077_s6 + $0x6f] sm:$0xff] }
  0x6c   : > { %5273 = vmatprep.mubr.msk.f32.mxu1 %vm317_vm0, %v252_v37  ;;  %5524 = vmatprep.mubr.msk.f32.mxu0 %vm317_vm0, %v6366_v38  ;;  %v4062_v37 = vld [vmem:[%s7232_s2 + $0x68] sm:$0xff] }
  0x6f   : > { %5274 = vmatmul.mubr.msk.f32.gmra.mrb[10].mxu1 %vm317_vm0, %v253_v39  ;;  %5525 = vmatmul.mubr.msk.f32.gmra.mrb[28].mxu0 %vm317_vm0, %v6376_v40  ;;  %v6649_v39 = vld [vmem:[%s6077_s6 + $0x7f] sm:$0xff] }
  0x70   : > { %5276 = vmatprep.mubr.msk.f32.mxu1 %vm317_vm0, %v254_v41  ;;  %5527 = vmatprep.mubr.msk.f32.mxu0 %vm317_vm0, %v6380_v42  ;;  %v2766_v41 = vld [vmem:[%s6077_s6 + $0x139] sm:$0xff] }
  0x73   : > { %5277 = vmatmul.mubr.msk.f32.gmra.mrb[12].mxu1 %vm317_vm0, %v255_v43  ;;  %5528 = vmatmul.mubr.msk.f32.gmra.mrb[30].mxu0 %vm317_vm0, %v6390_v44  ;;  %v4065_v43 = vld [vmem:[%s7232_s2 + $0x80] sm:$0xff] }
  0x74   : > { %5279 = vmatprep.mubr.msk.f32.mxu1 %vm317_vm0, %v256_v45  ;;  %5530 = vmatprep.mubr.msk.f32.mxu0 %vm317_vm0, %v6394_v46  ;;  %v2767_v45 = vld [vmem:[%s6077_s6 + $0x141] sm:$0xff] }
  0x77   : > { %5280 = vmatmul.mubr.msk.f32.gmra.mrb[14].mxu1 %vm317_vm0, %v257_v49  ;;  %5531 = vmatmul.mubr.msk.f32.gmra.mrb[32].mxu0 %vm317_vm0, %v6404_v51  ;;  %v3159_v49 = vld [vmem:[%s6077_s6 + $0x2a] sm:$0xff] }
  0x78   : > { %5282 = vmatprep.mubr.msk.f32.mxu1 %vm317_vm0, %v258_v53  ;;  %5533 = vmatprep.mubr.msk.f32.mxu0 %vm317_vm0, %v6408_v55  ;;  %v4067_v53 = vld [vmem:[%s7232_s2 + $0x90] sm:$0xff] }
  0x7b   : > { %5283 = vmatmul.mubr.msk.f32.gmra.mrb[16].mxu1 %vm317_vm0, %v259_v57  ;;  %5534 = vmatmul.mubr.msk.f32.gmra.mrb[34].mxu0 %vm317_vm0, %v6418_v59  ;;  %v3160_v57 = vld [vmem:[%s6077_s6 + $0x32] sm:$0xff] }
  0x7c   : > { %5285 = vmatprep.mubr.msk.f32.mxu1 %vm317_vm0, %v260_v61  ;;  %5538 = vmatprep.mubr.msk.f32.mxu0 %vm317_vm0, %v6171_v47  ;;  %v263_v47 = vld [vmem:[%s6077_s6 + $0xad] sm:$0xff]  ;;  %v3161_v61 = vld [vmem:[%s6077_s6 + $0x3a] sm:$0xff] }
  0x7f   : > { %5286 = vmatmul.mubr.msk.f32.gmra.mrb[18].mxu1 %vm317_vm0, %v261_v63  ;;  %5539 = vmatmul.mubr.msk.f32.vlgmr.msra.gmra.mrb[0].mxu0 %vm317_vm0, %v6184_v50  ;;  %v266_v50 = vld [vmem:[%s6077_s6 + $0xc5] sm:$0xff]  ;;  %v4068_v63 = vld [vmem:[%s7232_s2 + $0x98] sm:$0xff] }
  0x80   : > { %5593 = vmatpush3.msra.mxu0 %v6176_v48  ;;  %5288 = vmatprep.mubr.msk.f32.mxu1 %vm317_vm0, %v262_v2  ;;  %v265_v48 = vld [vmem:[%s6077_s6 + $0xbd] sm:$0xff] }
  0x81   : > { %5541 = vmatprep.mubr.msk.f32.mxu0 %vm317_vm0, %v6190_v52  ;;  %5648 = vmatprep.subr.mxu0 %v6432_v4  ;;  %v267_v52 = vld [vmem:[%s6077_s6 + $0xcd] sm:$0xff]  ;;  %v4069_v2 = vld [vmem:[%s7232_s2 + $0xa0] sm:$0xff] }
  0x83   : > { %5289 = vmatmul.mubr.msk.f32.gmra.mrb[20].mxu1 %vm317_vm0, %v263_v47  ;;  %5542 = vmatmul.mubr.msk.f32.gmra.mrb[2].mxu0 %vm317_vm0, %v6201_v54  ;;  %v268_v54 = vld [vmem:[%s6077_s6 + $0xd5] sm:$0xff] }
  0x84   : > { %5291 = vmatprep.mubr.msk.f32.mxu1 %vm317_vm0, %v264_v6  ;;  %5544 = vmatprep.mubr.msk.f32.mxu0 %vm317_vm0, %v6205_v56  ;;  %v269_v56 = vld [vmem:[%s6077_s6 + $0xdd] sm:$0xff]  ;;  %v6709_v47 = vld [vmem:[%s6077_s6 + $0xaf] sm:$0xff] }
  0x85   : > { %v3162_v6 = vld [vmem:[%s6077_s6 + $0x42] sm:$0xff] }
  0x87   : > { %5292 = vmatmul.mubr.msk.f32.gmra.mrb[22].mxu1 %vm317_vm0, %v265_v48  ;;  %5545 = vmatmul.mubr.msk.f32.gmra.mrb[4].mxu0 %vm317_vm0, %v6215_v58  ;;  %v270_v58 = vld [vmem:[%s6077_s6 + $0xe5] sm:$0xff]  ;;  %v6714_v48 = vld [vmem:[%s6077_s6 + $0xb7] sm:$0xff] }
  0x88   : > { %5294 = vmatprep.mubr.msk.f32.mxu1 %vm317_vm0, %v266_v50  ;;  %5547 = vmatprep.mubr.msk.f32.mxu0 %vm317_vm0, %v6219_v60  ;;  %v271_v60 = vld [vmem:[%s6077_s6 + $0xed] sm:$0xff] }
  0x89   : > { %v3163_v50 = vld [vmem:[%s6077_s6 + $0x4a] sm:$0xff] }
  0x8b   : > { %5295 = vmatmul.mubr.msk.f32.gmra.mrb[24].mxu1 %vm317_vm0, %v267_v52  ;;  %5548 = vmatmul.mubr.msk.f32.gmra.mrb[6].mxu0 %vm317_vm0, %v6229_v62  ;;  %v272_v62 = vld [vmem:[%s6077_s6 + $0xf5] sm:$0xff] }
  0x8c   : > { %5297 = vmatprep.mubr.msk.f32.mxu1 %vm317_vm0, %v268_v54  ;;  %5550 = vmatprep.mubr.msk.f32.mxu0 %vm317_vm0, %v6233_v0  ;;  %v273_v0 = vld [vmem:[%s6077_s6 + $0xfd] sm:$0xff]  ;;  %v4071_v52 = vld [vmem:[%s7232_s2 + $0xb0] sm:$0xff] }
  0x8d   : > { %v6730_v54 = vld [vmem:[%s6077_s6 + $0xbf] sm:$0xff] }
  0x8f   : > { %5298 = vmatmul.mubr.msk.f32.gmra.mrb[26].mxu1 %vm317_vm0, %v269_v56  ;;  %5551 = vmatmul.mubr.msk.f32.gmra.mrb[8].mxu0 %vm317_vm0, %v6243_v3  ;;  %v274_v3 = vld [vmem:[%s6077_s6 + $0x105] sm:$0xff]  ;;  %v3164_v56 = vld [vmem:[%s6077_s6 + $0x52] sm:$0xff] }
  0x90   : > { %5300 = vmatprep.mubr.msk.f32.mxu1 %vm317_vm0, %v270_v58  ;;  %5553 = vmatprep.mubr.msk.f32.mxu0 %vm317_vm0, %v6247_v5  ;;  %v275_v5 = vld [vmem:[%s6077_s6 + $0x10d] sm:$0xff] }
  0x91   : > { %v6734_v58 = vld [vmem:[%s6077_s6 + $0xc7] sm:$0xff] }
  0x93   : > { %5301 = vmatmul.mubr.msk.f32.gmra.mrb[28].mxu1 %vm317_vm0, %v271_v60  ;;  %5554 = vmatmul.mubr.msk.f32.gmra.mrb[10].mxu0 %vm317_vm0, %v6257_v7  ;;  %v276_v7 = vld [vmem:[%s6077_s6 + $0x115] sm:$0xff] }
  0x94   : > { %5303 = vmatprep.mubr.msk.f32.mxu1 %vm317_vm0, %v272_v62  ;;  %5556 = vmatprep.mubr.msk.f32.mxu0 %vm317_vm0, %v6261_v9  ;;  %v1024_v9 = vld [vmem:[%s6077_s6 + $0x7] sm:$0xff]  ;;  %v3165_v60 = vld [vmem:[%s6077_s6 + $0x5a] sm:$0xff] }
  0x95   : > { %v4072_v62 = vld [vmem:[%s7232_s2 + $0xb8] sm:$0xff] }
  0x97   : > { %5304 = vmatmul.mubr.msk.f32.gmra.mrb[30].mxu1 %vm317_vm0, %v273_v0  ;;  %5557 = vmatmul.mubr.msk.f32.gmra.mrb[12].mxu0 %vm317_vm0, %v6271_v12  ;;  %v4049_v12 = vld [vmem:[%s7232_s2] sm:$0xff] }
  0x98   : > { %5306 = vmatprep.mubr.msk.f32.mxu1 %vm317_vm0, %v274_v3  ;;  %5559 = vmatprep.mubr.msk.f32.mxu0 %vm317_vm0, %v6275_v14  ;;  %v6511_v14 = vld [vmem:[%s6077_s6 + $0x17] sm:$0xff]  ;;  %v4073_v0 = vld [vmem:[%s7232_s2 + $0xc0] sm:$0xff]  ;;  %v6750_v3 = vld [vmem:[%s6077_s6 + $0xcf] sm:$0xff] }
  0x99   : > { %4087 = vperm.xlu0 %6005, %v4049_v12   ;;  %v6770_v12 = vld [vmem:[%s6077_s6 + $0xdf] sm:$0xff] }
  0x9b   : > { %5307 = vmatmul.mubr.msk.f32.gmra.mrb[32].mxu1 %vm317_vm0, %v275_v5  ;;  %5560 = vmatmul.mubr.msk.f32.gmra.mrb[14].mxu0 %vm317_vm0, %v6285_v16  ;;  %v4050_v16 = vld [vmem:[%s7232_s2 + $0x8] sm:$0xff] }
  0x9c   : > { %5309 = vmatprep.mubr.msk.f32.mxu1 %vm317_vm0, %v276_v7  ;;  %5562 = vmatprep.mubr.msk.f32.mxu0 %vm317_vm0, %v6289_v18  ;;  %v6531_v18 = vld [vmem:[%s6077_s6 + $0x27] sm:$0xff]  ;;  %v6754_v7 = vld [vmem:[%s6077_s6 + $0xd7] sm:$0xff] }
  0x9d   : > { %4092 = vperm.xlu0 %6005, %v4050_v16   ;;  %v3166_v5 = vld [vmem:[%s6077_s6 + $0x62] sm:$0xff]  ;;  %v3169_v16 = vld [vmem:[%s6077_s6 + $0x7a] sm:$0xff] }
  0x9f   : > { %5310 = vmatmul.mubr.msk.f32.gmra.mrb[34].mxu1 %vm317_vm0, %v277_v8  ;;  %5563 = vmatmul.mubr.msk.f32.gmra.mrb[16].mxu0 %vm317_vm0, %v6299_v20  ;;  %v4053_v20 = vld [vmem:[%s7232_s2 + $0x20] sm:$0xff]  ;;  %v3167_v8 = vld [vmem:[%s6077_s6 + $0x6a] sm:$0xff] }
  0xa0   : > { %5314 = vmatprep.mubr.msk.f32.mxu1 %vm317_vm0, %v1024_v9  ;;  %5565 = vmatprep.mubr.msk.f32.mxu0 %vm317_vm0, %v6303_v22  ;;  %v4054_v22 = vld [vmem:[%s7232_s2 + $0x28] sm:$0xff] }
  0xa1   : > { %4107 = vperm.xlu0 %6005, %v4053_v20   ;;  %4112 = vperm.xlu1 %6006, %v4054_v22   ;;  %v4074_v9 = vld [vmem:[%s7232_s2 + $0xc8] sm:$0xff]  ;;  %v4077_v20 = vld [vmem:[%s7232_s2 + $0xe0] sm:$0xff] }
  0xa2   : > { %v6790_v22 = vld [vmem:[%s6077_s6 + $0xef] sm:$0xff] }
  0xa3   : > { %5315 = vmatmul.mubr.msk.f32.vlgmr.msra.gmra.mrb[0].mxu1 %vm317_vm0, %v1025_v13  ;;  %5566 = vmatmul.mubr.msk.f32.gmra.mrb[18].mxu0 %vm317_vm0, %v6317_v25  ;;  %v6572_v25 = vld [vmem:[%s6077_s6 + $0x47] sm:$0xff]  ;;  %v3168_v13 = vld [vmem:[%s6077_s6 + $0x72] sm:$0xff] }
  0xa4   : > { %5369 = vmatpush3.msra.mxu1 %v6308_v23  ;;  %5317 = vmatprep.mubr.msk.f32.mxu1 %vm317_vm0, %v6511_v14  ;;  %v4055_v23 = vld [vmem:[%s7232_s2 + $0x30] sm:$0xff] }
  0xa5   : > { %5568 = vmatprep.mubr.msk.f32.mxu0 %vm317_vm0, %v6323_v27  ;;  %5704 = vmatprep.subr.mxu1 %v6061_v1  ;;  %v6549_v1 = vld [vmem:[%s6077_s6 + $0x2f] sm:$0xff]  ;;  %v4057_v27 = vld [vmem:[%s7232_s2 + $0x40] sm:$0xff] }
  0xa6   : > { %4117 = vperm.xlu0 %6005, %v4055_v23   ;;  %4122 = vperm.xlu1 %6006, %v4056_v26   ;;  %v3170_v23 = vld [vmem:[%s6077_s6 + $0x82] sm:$0xff]  ;;  %v6794_v26 = vld [vmem:[%s6077_s6 + $0xf7] sm:$0xff] }
  0xa7   : > { %5318 = vmatmul.mubr.msk.f32.gmra.mrb[2].mxu1 %vm317_vm0, %v6526_v17  ;;  %5569 = vmatmul.mubr.msk.f32.gmra.mrb[20].mxu0 %vm317_vm0, %v6334_v28  ;;  %v6592_v28 = vld [vmem:[%s6077_s6 + $0x57] sm:$0xff] }
  0xa8   : > { %5320 = vmatprep.mubr.msk.f32.mxu1 %vm317_vm0, %v6531_v18  ;;  %5571 = vmatprep.mubr.msk.f32.mxu0 %vm317_vm0, %v6338_v30  ;;  %v4059_v30 = vld [vmem:[%s7232_s2 + $0x50] sm:$0xff] }
  0xaa   : > { %4127 = vperm.xlu0 %6005, %v4057_v27   ;;  %4132 = vperm.xlu1 %6006, %v4058_v29   ;;  %v3171_v27 = vld [vmem:[%s6077_s6 + $0x8a] sm:$0xff] }
  0xab   : > { %5321 = vmatmul.mubr.msk.f32.gmra.mrb[4].mxu1 %vm317_vm0, %v6549_v1  ;;  %5572 = vmatmul.mubr.msk.f32.gmra.mrb[22].mxu0 %vm317_vm0, %v6348_v32  ;;  %v6612_v32 = vld [vmem:[%s6077_s6 + $0x67] sm:$0xff] }
  0xac   : > { %5323 = vmatprep.mubr.msk.f32.mxu1 %vm317_vm0, %v6552_v21  ;;  %5574 = vmatprep.mubr.msk.f32.mxu0 %vm317_vm0, %v6352_v34  ;;  %v4061_v34 = vld [vmem:[%s7232_s2 + $0x60] sm:$0xff]  ;;  %v4078_v29 = vld [vmem:[%s7232_s2 + $0xe8] sm:$0xff] }
  0xae   : > { %4137 = vperm.xlu0 %6005, %v4059_v30   ;;  %4142 = vperm.xlu1 %6006, %v4060_v33   ;;  %v4079_v30 = vld [vmem:[%s7232_s2 + $0xf0] sm:$0xff]  ;;  %v6810_v33 = vld [vmem:[%s6077_s6 + $0xff] sm:$0xff] }
  0xaf   : > { %5324 = vmatmul.mubr.msk.f32.gmra.mrb[6].mxu1 %vm317_vm0, %v6569_v24  ;;  %5575 = vmatmul.mubr.msk.f32.gmra.mrb[24].mxu0 %vm317_vm0, %v6362_v36  ;;  %v6632_v36 = vld [vmem:[%s6077_s6 + $0x77] sm:$0xff] }
  0xb0   : > { %5326 = vmatprep.mubr.msk.f32.mxu1 %vm317_vm0, %v6572_v25  ;;  %5577 = vmatprep.mubr.msk.f32.mxu0 %vm317_vm0, %v6366_v38  ;;  %v4063_v38 = vld [vmem:[%s7232_s2 + $0x70] sm:$0xff] }
  0xb2   : > { %4147 = vperm.xlu0 %6005, %v4061_v34   ;;  %4152 = vperm.xlu1 %6006, %v4062_v37   ;;  %v3172_v34 = vld [vmem:[%s6077_s6 + $0x92] sm:$0xff]  ;;  %v6814_v37 = vld [vmem:[%s6077_s6 + $0x107] sm:$0xff] }
  0xb3   : > { %5327 = vmatmul.mubr.msk.f32.gmra.mrb[8].mxu1 %vm317_vm0, %v6589_v11  ;;  %5578 = vmatmul.mubr.msk.f32.gmra.mrb[26].mxu0 %vm317_vm0, %v6376_v40  ;;  %v6652_v40 = vld [vmem:[%s6077_s6 + $0x87] sm:$0xff] }
  0xb4   : > { %5329 = vmatprep.mubr.msk.f32.mxu1 %vm317_vm0, %v6592_v28  ;;  %5580 = vmatprep.mubr.msk.f32.mxu0 %vm317_vm0, %v6380_v42  ;;  %v4064_v42 = vld [vmem:[%s7232_s2 + $0x78] sm:$0xff] }
  0xb6   : > { %4157 = vperm.xlu0 %6005, %v4063_v38   ;;  %4162 = vperm.xlu1 %6006, %v4064_v42   ;;  %v3173_v38 = vld [vmem:[%s6077_s6 + $0x9a] sm:$0xff] }
  0xb7   : > { %5330 = vmatmul.mubr.msk.f32.gmra.mrb[10].mxu1 %vm317_vm0, %v6609_v31  ;;  %5581 = vmatmul.mubr.msk.f32.gmra.mrb[28].mxu0 %vm317_vm0, %v6390_v44  ;;  %v6669_v44 = vld [vmem:[%s6077_s6 + $0x8f] sm:$0xff]  ;;  %v4081_v42 = vld [vmem:[%s7232_s2 + $0x100] sm:$0xff] }
  0xb8   : > { %5332 = vmatprep.mubr.msk.f32.mxu1 %vm317_vm0, %v6612_v32  ;;  %5583 = vmatprep.mubr.msk.f32.mxu0 %vm317_vm0, %v6394_v46  ;;  %v6673_v46 = vld [vmem:[%s6077_s6 + $0x97] sm:$0xff] }
  0xba   : > { %4167 = vperm.xlu0 %6005, %v4065_v43   ;;  %v6830_v43 = vld [vmem:[%s6077_s6 + $0x10f] sm:$0xff] }
  0xbb   : > { %5333 = vmatmul.mubr.msk.f32.gmra.mrb[12].mxu1 %vm317_vm0, %v6629_v35  ;;  %5584 = vmatmul.mubr.msk.f32.gmra.mrb[30].mxu0 %vm317_vm0, %v6404_v51  ;;  %v4066_v51 = vld [vmem:[%s7232_s2 + $0x88] sm:$0xff] }
  0xbc   : > { %5335 = vmatprep.mubr.msk.f32.mxu1 %vm317_vm0, %v6632_v36  ;;  %5586 = vmatprep.mubr.msk.f32.mxu0 %vm317_vm0, %v6408_v55  ;;  %v6689_v55 = vld [vmem:[%s6077_s6 + $0x9f] sm:$0xff] }
  0xbd   : > { %4172 = vperm.xlu1 %6006, %v4066_v51   ;;  %v3175_v51 = vld [vmem:[%s6077_s6 + $0xaa] sm:$0xff] }
  0xbe   : > { %4177 = vperm.xlu0 %6005, %v4067_v53   ;;  %v4082_v53 = vld [vmem:[%s7232_s2 + $0x108] sm:$0xff] }
  0xbf   : > { %5336 = vmatmul.mubr.msk.f32.gmra.mrb[14].mxu1 %vm317_vm0, %v6649_v39  ;;  %5587 = vmatmul.mubr.msk.f32.gmra.mrb[32].mxu0 %vm317_vm0, %v6418_v59  ;;  %v6693_v59 = vld [vmem:[%s6077_s6 + $0xa7] sm:$0xff] }
  0xc0   : > { %5338 = vmatprep.mubr.msk.f32.mxu1 %vm317_vm0, %v6652_v40  ;;  %5589 = vmatprep.mubr.msk.f32.mxu0 %vm317_vm0, %v2766_v41  ;;  %v4080_v41 = vld [vmem:[%s7232_s2 + $0xf8] sm:$0xff] }
  0xc1   : > { %4182 = vperm.xlu1 %6006, %v4068_v63   ;;  %v3176_v63 = vld [vmem:[%s6077_s6 + $0xb2] sm:$0xff] }
  0xc2   : > { %4187 = vperm.xlu0 %6005, %v4069_v2   ;;  %v3177_v2 = vld [vmem:[%s6077_s6 + $0xba] sm:$0xff] }
  0xc3   : > { %5339 = vmatmul.mubr.msk.f32.gmra.mrb[16].mxu1 %vm317_vm0, %v6669_v44  ;;  %5590 = vmatmul.mubr.msk.f32.gmra.mrb[34].mxu0 %vm317_vm0, %v2767_v45  ;;  %v3174_v45 = vld [vmem:[%s6077_s6 + $0xa2] sm:$0xff] }
  0xc4   : > { %5341 = vmatprep.mubr.msk.f32.mxu1 %vm317_vm0, %v6673_v46  ;;  %5594 = vmatprep.mubr.msk.f32.mxu0 %vm317_vm0, %v3159_v49  ;;  %v6834_v49 = vld [vmem:[%s6077_s6 + $0x117] sm:$0xff] }
  0xc6   : > { %4197 = vperm.xlu0 %6005, %v4071_v52   ;;  %v6007_v52 = vld [vmem:[%s7231_s1 + $0x20] sm:$0xff] }
  0xc7   : > { %5342 = vmatmul.mubr.msk.f32.gmra.mrb[18].mxu1 %vm317_vm0, %v6689_v55  ;;  %5595 = vmatmul.mubr.msk.f32.vlgmr.msra.gmra.mrb[0].mxu0 %vm317_vm0, %v3160_v57  ;;  %v4083_v57 = vld [vmem:[%s7232_s2 + $0x110] sm:$0xff] }
  0xc8   : > { %5649 = vmatpush3.msra.mxu0 %v6432_v4  ;;  %5344 = vmatprep.mubr.msk.f32.mxu1 %vm317_vm0, %v6693_v59  ;;  %v4070_v4 = vld [vmem:[%s7232_s2 + $0xa8] sm:$0xff] }
  0xc9   : > { %5597 = vmatprep.mubr.msk.f32.mxu0 %vm317_vm0, %v3161_v61  ;;  %4192 = vperm.xlu1 %6006, %v4070_v4   ;;  %v6850_v61 = vld [vmem:[%s6077_s6 + $0x11f] sm:$0xff]  ;;  %v3179_v4 = vld [vmem:[%s6077_s6 + $0xca] sm:$0xff] }
  0xca   : > { %4207 = vperm.xlu0 %6005, %v4073_v0   ;;  %v3597_v0 = vld [vmem:[%s6077_s6 + $0x83] sm:$0xff] }
  0xcb   : > { %5345 = vmatmul.mubr.msk.f32.gmra.mrb[20].mxu1 %vm317_vm0, %v6709_v47  ;;  %5598 = vmatmul.mubr.msk.f32.gmra.mrb[2].mxu0 %vm317_vm0, %v3162_v6  ;;  %v4084_v6 = vld [vmem:[%s7232_s2 + $0x118] sm:$0xff] }
  0xcc   : > { %5347 = vmatprep.mubr.msk.f32.mxu1 %vm317_vm0, %v6714_v48  ;;  %5600 = vmatprep.mubr.msk.f32.mxu0 %vm317_vm0, %v3163_v50  ;;  %v3178_v50 = vld [vmem:[%s6077_s6 + $0xc2] sm:$0xff] }
  0xcd   : > { %4202 = vperm.xlu1 %6006, %v4072_v62   ;;  %v3596_v62 = vld [vmem:[%s6077_s6 + $0x7b] sm:$0xff] }
  0xce   : > { %4217 = vperm.xlu0 %6005, %v4075_v10   ;;  %v3602_v10 = vld [vmem:[%s6077_s6 + $0xab] sm:$0xff] }
  0xcf   : > { %5348 = vmatmul.mubr.msk.f32.gmra.mrb[22].mxu1 %vm317_vm0, %v6730_v54  ;;  %5601 = vmatmul.mubr.msk.f32.gmra.mrb[4].mxu0 %vm317_vm0, %v3164_v56  ;;  %v3181_v56 = vld [vmem:[%s6077_s6 + $0xda] sm:$0xff] }
  0xd0   : > { %5350 = vmatprep.mubr.msk.f32.mxu1 %vm317_vm0, %v6734_v58  ;;  %5603 = vmatprep.mubr.msk.f32.mxu0 %vm317_vm0, %v3165_v60  ;;  %v3183_v60 = vld [vmem:[%s6077_s6 + $0xea] sm:$0xff] }
  0xd1   : > { %4212 = vperm.xlu1 %6006, %v4074_v9   ;;  %v1485_v9 = vld [vmem:[%s6077_s6 + $0x127] sm:$0xff] }
  0xd2   : > { %4227 = vperm.xlu0 %6005, %v4077_v20   ;;  %v3605_v20 = vld [vmem:[%s6077_s6 + $0xc3] sm:$0xff] }
  0xd3   : > { %5351 = vmatmul.mubr.msk.f32.gmra.mrb[24].mxu1 %vm317_vm0, %v6750_v3  ;;  %5604 = vmatmul.mubr.msk.f32.gmra.mrb[6].mxu0 %vm317_vm0, %v3166_v5  ;;  %v3599_v5 = vld [vmem:[%s6077_s6 + $0x93] sm:$0xff] }
  0xd4   : > { %5353 = vmatprep.mubr.msk.f32.mxu1 %vm317_vm0, %v6754_v7  ;;  %5606 = vmatprep.mubr.msk.f32.mxu0 %vm317_vm0, %v3167_v8  ;;  %v3601_v8 = vld [vmem:[%s6077_s6 + $0xa3] sm:$0xff] }
  0xd5   : > { %4222 = vperm.xlu1 %6006, %v4076_v19   ;;  %v1897_v19 = vld [vmem:[%s6077_s6 + $0xb0] sm:$0xff] }
  0xd6   : > { %4237 = vperm.xlu0 %6005, %v4079_v30   ;;  %v3608_v30 = vld [vmem:[%s6077_s6 + $0xdb] sm:$0xff] }
  0xd7   : > { %5354 = vmatmul.mubr.msk.f32.gmra.mrb[26].mxu1 %vm317_vm0, %v6770_v12  ;;  %5607 = vmatmul.mubr.msk.f32.gmra.mrb[8].mxu0 %vm317_vm0, %v3168_v13  ;;  %v3603_v13 = vld [vmem:[%s6077_s6 + $0xb3] sm:$0xff] }
  0xd8   : > { %5356 = vmatprep.mubr.msk.f32.mxu1 %vm317_vm0, %v6774_v15  ;;  %5609 = vmatprep.mubr.msk.f32.mxu0 %vm317_vm0, %v3169_v16  ;;  %v3604_v16 = vld [vmem:[%s6077_s6 + $0xbb] sm:$0xff] }
  0xd9   : > { %4232 = vperm.xlu1 %6006, %v4078_v29   ;;  %v1900_v29 = vld [vmem:[%s6077_s6 + $0xc8] sm:$0xff] }
  0xda   : > { %4247 = vperm.xlu0 %6005, %v4081_v42   ;;  %v3611_v42 = vld [vmem:[%s6077_s6 + $0xf3] sm:$0xff] }
  0xdb   : > { %5357 = vmatmul.mubr.msk.f32.gmra.mrb[28].mxu1 %vm317_vm0, %v6790_v22  ;;  %5610 = vmatmul.mubr.msk.f32.gmra.mrb[10].mxu0 %vm317_vm0, %v3170_v23  ;;  %v3606_v23 = vld [vmem:[%s6077_s6 + $0xcb] sm:$0xff] }
  0xdc   : > { %5359 = vmatprep.mubr.msk.f32.mxu1 %vm317_vm0, %v6794_v26  ;;  %5612 = vmatprep.mubr.msk.f32.mxu0 %vm317_vm0, %v3171_v27  ;;  %v3607_v27 = vld [vmem:[%s6077_s6 + $0xd3] sm:$0xff] }
  0xdd   : > { %4242 = vperm.xlu1 %6006, %v4080_v41   ;;  %v1903_v41 = vld [vmem:[%s6077_s6 + $0xe0] sm:$0xff] }
  0xde   : > { %4257 = vperm.xlu0 %6005, %v4083_v57   ;;  %v3614_v57 = vld [vmem:[%s6077_s6 + $0x10b] sm:$0xff] }
  0xdf   : > { %5360 = vmatmul.mubr.msk.f32.gmra.mrb[30].mxu1 %vm317_vm0, %v6810_v33  ;;  %5613 = vmatmul.mubr.msk.f32.gmra.mrb[12].mxu0 %vm317_vm0, %v3172_v34  ;;  %v3609_v34 = vld [vmem:[%s6077_s6 + $0xe3] sm:$0xff] }
  0xe0   : > { %5362 = vmatprep.mubr.msk.f32.mxu1 %vm317_vm0, %v6814_v37  ;;  %5615 = vmatprep.mubr.msk.f32.mxu0 %vm317_vm0, %v3173_v38  ;;  %v3610_v38 = vld [vmem:[%s6077_s6 + $0xeb] sm:$0xff] }
  0xe1   : > { %4252 = vperm.xlu1 %6006, %v4082_v53   ;;  %v1906_v53 = vld [vmem:[%s6077_s6 + $0xf8] sm:$0xff] }
  0xe3   : > { %5363 = vmatmul.mubr.msk.f32.gmra.mrb[32].mxu1 %vm317_vm0, %v6830_v43  ;;  %5616 = vmatmul.mubr.msk.f32.gmra.mrb[14].mxu0 %vm317_vm0, %v3174_v45  ;;  %v3612_v45 = vld [vmem:[%s6077_s6 + $0xfb] sm:$0xff] }
  0xe4   : > { %5365 = vmatprep.mubr.msk.f32.mxu1 %vm317_vm0, %v6834_v49  ;;  %5618 = vmatprep.mubr.msk.f32.mxu0 %vm317_vm0, %v3175_v51  ;;  %v3613_v51 = vld [vmem:[%s6077_s6 + $0x103] sm:$0xff] }
  0xe5   : > { %4262 = vperm.xlu1 %6006, %v4084_v6   ;;  %v3616_v6 = vld [vmem:[%s6077_s6 + $0x11b] sm:$0xff] }
  0xe7   : > { %5366 = vmatmul.mubr.msk.f32.gmra.mrb[34].mxu1 %vm317_vm0, %v6850_v61  ;;  %5619 = vmatmul.mubr.msk.f32.gmra.mrb[16].mxu0 %vm317_vm0, %v3176_v63  ;;  %v3615_v63 = vld [vmem:[%s6077_s6 + $0x113] sm:$0xff] }
  0xe8   : > { %5370 = vmatprep.mubr.msk.f32.mxu1 %vm317_vm0, %v6511_v14  ;;  %5621 = vmatprep.mubr.msk.f32.mxu0 %vm317_vm0, %v3177_v2  ;;  %v3180_v14 = vld [vmem:[%s6077_s6 + $0xd2] sm:$0xff]  ;;  %v1908_v2 = vld [vmem:[%s6077_s6 + $0x108] sm:$0xff] }
  0xeb   : > { %5371 = vmatmul.mubr.msk.f32.vlgmr.msra.gmra.mrb[0].mxu1 %vm317_vm0, %v6526_v17  ;;  %5622 = vmatmul.mubr.msk.f32.gmra.mrb[18].mxu0 %vm317_vm0, %v3178_v50  ;;  %v3182_v17 = vld [vmem:[%s6077_s6 + $0xe2] sm:$0xff]  ;;  %v1909_v50 = vld [vmem:[%s6077_s6 + $0x110] sm:$0xff] }
  0xec   : > { %5705 = vmatpush3.msra.mxu1 %v6007_v52  ;;  %5373 = vmatprep.mubr.msk.f32.mxu1 %vm317_vm0, %v6531_v18  ;;  %v3184_v18 = vld [vmem:[%s6077_s6 + $0xf2] sm:$0xff] }
  0xed   : > { %5624 = vmatprep.mubr.msk.f32.mxu0 %vm317_vm0, %v3179_v4  ;;  %v3617_v4 = vld [vmem:[%s6077_s6 + $0x123] sm:$0xff]  ;;  %v1910_v52 = vld [vmem:[%s6077_s6 + $0x118] sm:$0xff] }
  0xef   : > { %5374 = vmatmul.mubr.msk.f32.gmra.mrb[2].mxu1 %vm317_vm0, %v6549_v1  ;;  %5625 = vmatmul.mubr.msk.f32.gmra.mrb[20].mxu0 %vm317_vm0, %v3180_v14  ;;  %v3185_v1 = vld [vmem:[%s6077_s6 + $0xfa] sm:$0xff]  ;;  %v3618_v14 = vld [vmem:[%s6077_s6 + $0x12b] sm:$0xff] }
  0xf0   : > { %5376 = vmatprep.mubr.msk.f32.mxu1 %vm317_vm0, %v6552_v21  ;;  %5627 = vmatprep.mubr.msk.f32.mxu0 %vm317_vm0, %v3181_v56  ;;  %v3186_v21 = vld [vmem:[%s6077_s6 + $0x102] sm:$0xff] }
  0xf1   : > { %v1911_v56 = vld [vmem:[%s6077_s6 + $0x120] sm:$0xff] }
  0xf3   : > { %5377 = vmatmul.mubr.msk.f32.gmra.mrb[4].mxu1 %vm317_vm0, %v6569_v24  ;;  %5628 = vmatmul.mubr.msk.f32.gmra.mrb[22].mxu0 %vm317_vm0, %v3182_v17  ;;  %v3187_v24 = vld [vmem:[%s6077_s6 + $0x10a] sm:$0xff]  ;;  %v3619_v17 = vld [vmem:[%s6077_s6 + $0x133] sm:$0xff] }
  0xf4   : > { %5379 = vmatprep.mubr.msk.f32.mxu1 %vm317_vm0, %v6572_v25  ;;  %5630 = vmatprep.mubr.msk.f32.mxu0 %vm317_vm0, %v3183_v60  ;;  %v3188_v25 = vld [vmem:[%s6077_s6 + $0x112] sm:$0xff]  ;;  %v1912_v60 = vld [vmem:[%s6077_s6 + $0x128] sm:$0xff] }
  0xf7   : > { %5380 = vmatmul.mubr.msk.f32.gmra.mrb[6].mxu1 %vm317_vm0, %v6589_v11  ;;  %5631 = vmatmul.mubr.msk.f32.gmra.mrb[24].mxu0 %vm317_vm0, %v3184_v18  ;;  %v3189_v11 = vld [vmem:[%s6077_s6 + $0x11a] sm:$0xff] }
  0xf8   : > { %5382 = vmatprep.mubr.msk.f32.mxu1 %vm317_vm0, %v6592_v28  ;;  %5633 = vmatprep.mubr.msk.f32.mxu0 %vm317_vm0, %v3185_v1  ;;  %v3190_v28 = vld [vmem:[%s6077_s6 + $0x122] sm:$0xff]  ;;  %v1913_v1 = vld [vmem:[%s6077_s6 + $0x130] sm:$0xff] }
  0xf9   : > { %v3620_v18 = vld [vmem:[%s6077_s6 + $0x13b] sm:$0xff] }
  0xfb   : > { %5383 = vmatmul.mubr.msk.f32.gmra.mrb[8].mxu1 %vm317_vm0, %v6609_v31  ;;  %5634 = vmatmul.mubr.msk.f32.gmra.mrb[26].mxu0 %vm317_vm0, %v3186_v21  ;;  %v3191_v31 = vld [vmem:[%s6077_s6 + $0x12a] sm:$0xff] }
  0xfc   : > { %5385 = vmatprep.mubr.msk.f32.mxu1 %vm317_vm0, %v6612_v32  ;;  %5636 = vmatprep.mubr.msk.f32.mxu0 %vm317_vm0, %v3187_v24  ;;  %v3192_v32 = vld [vmem:[%s6077_s6 + $0x132] sm:$0xff]  ;;  %v3621_v21 = vld [vmem:[%s6077_s6 + $0x143] sm:$0xff] }
  0xff   : > { %5386 = vmatmul.mubr.msk.f32.gmra.mrb[10].mxu1 %vm317_vm0, %v6629_v35  ;;  %5637 = vmatmul.mubr.msk.f32.gmra.mrb[28].mxu0 %vm317_vm0, %v3188_v25  ;;  %v3193_v35 = vld [vmem:[%s6077_s6 + $0x13a] sm:$0xff]  ;;  %v4098_v25 = vpop.permute.xlu1 %4097 }
 0x100   : > { %5388 = vmatprep.mubr.msk.f32.mxu1 %vm317_vm0, %v6632_v36  ;;  %5639 = vmatprep.mubr.msk.f32.mxu0 %vm317_vm0, %v3189_v11  ;;  %v3194_v36 = vld [vmem:[%s6077_s6 + $0x142] sm:$0xff] }
 0x103   : > { %5389 = vmatmul.mubr.msk.f32.gmra.mrb[12].mxu1 %vm317_vm0, %v6649_v39  ;;  %5640 = vmatmul.mubr.msk.f32.gmra.mrb[30].mxu0 %vm317_vm0, %v3190_v28  ;;  %v3586_v39 = vld [vmem:[%s6077_s6 + $0x2b] sm:$0xff] }
 0x104   : > { %5391 = vmatprep.mubr.msk.f32.mxu1 %vm317_vm0, %v6652_v40  ;;  %5642 = vmatprep.mubr.msk.f32.mxu0 %vm317_vm0, %v3191_v31  ;;  %v3587_v40 = vld [vmem:[%s6077_s6 + $0x33] sm:$0xff] }
 0x107   : > { %5392 = vmatmul.mubr.msk.f32.gmra.mrb[14].mxu1 %vm317_vm0, %v6669_v44  ;;  %5643 = vmatmul.mubr.msk.f32.gmra.mrb[32].mxu0 %vm317_vm0, %v3192_v32  ;;  %v3588_v44 = vld [vmem:[%s6077_s6 + $0x3b] sm:$0xff]  ;;  %v4103_v32 = vpop.permute.xlu1 %4102 }
 0x108   : > { %5394 = vmatprep.mubr.msk.f32.mxu1 %vm317_vm0, %v6673_v46  ;;  %5645 = vmatprep.mubr.msk.f32.mxu0 %vm317_vm0, %v3193_v35  ;;  %v3589_v46 = vld [vmem:[%s6077_s6 + $0x43] sm:$0xff] }
 0x10b   : > { %5395 = vmatmul.mubr.msk.f32.gmra.mrb[16].mxu1 %vm317_vm0, %v6689_v55  ;;  %5646 = vmatmul.mubr.msk.f32.gmra.mrb[34].mxu0 %vm317_vm0, %v3194_v36  ;;  %v3590_v55 = vld [vmem:[%s6077_s6 + $0x4b] sm:$0xff] }
 0x10c   : > { %5397 = vmatprep.mubr.msk.f32.mxu1 %vm317_vm0, %v6693_v59  ;;  %5650 = vmatprep.mubr.msk.f32.mxu0 %vm317_vm0, %v3586_v39  ;;  %v3591_v59 = vld [vmem:[%s6077_s6 + $0x53] sm:$0xff] }
 0x10f   : > { %5398 = vmatmul.mubr.msk.f32.gmra.mrb[18].mxu1 %vm317_vm0, %v6709_v47  ;;  %5651 = vmatmul.mubr.msk.f32.vlgmr.msra.gmra.mrb[0].mxu0 %vm317_vm0, %v3587_v40  ;;  %v3592_v47 = vld [vmem:[%s6077_s6 + $0x5b] sm:$0xff] }
 0x110   : > { %5400 = vmatprep.mubr.msk.f32.mxu1 %vm317_vm0, %v6714_v48  ;;  %5653 = vmatprep.mubr.msk.f32.mxu0 %vm317_vm0, %v3588_v44  ;;  %v3593_v48 = vld [vmem:[%s6077_s6 + $0x63] sm:$0xff] }
 0x113   : > { %5401 = vmatmul.mubr.msk.f32.gmra.mrb[20].mxu1 %vm317_vm0, %v6730_v54  ;;  %5654 = vmatmul.mubr.msk.f32.gmra.mrb[2].mxu0 %vm317_vm0, %v3589_v46  ;;  %v3594_v54 = vld [vmem:[%s6077_s6 + $0x6b] sm:$0xff] }
 0x114   : > { %5403 = vmatprep.mubr.msk.f32.mxu1 %vm317_vm0, %v6734_v58  ;;  %5656 = vmatprep.mubr.msk.f32.mxu0 %vm317_vm0, %v3590_v55  ;;  %v3595_v58 = vld [vmem:[%s6077_s6 + $0x73] sm:$0xff] }
 0x117   : > { %5404 = vmatmul.mubr.msk.f32.gmra.mrb[22].mxu1 %vm317_vm0, %v6750_v3  ;;  %5657 = vmatmul.mubr.msk.f32.gmra.mrb[4].mxu0 %vm317_vm0, %v3591_v59  ;;  %v3598_v3 = vld [vmem:[%s6077_s6 + $0x8b] sm:$0xff] }
 0x118   : > { %5406 = vmatprep.mubr.msk.f32.mxu1 %vm317_vm0, %v6754_v7  ;;  %5659 = vmatprep.mubr.msk.f32.mxu0 %vm317_vm0, %v3592_v47  ;;  %v3600_v7 = vld [vmem:[%s6077_s6 + $0x9b] sm:$0xff]  ;;  %v4088_v24 = vpop.permute.xlu0 %4087 }
 0x11b   : > { %5407 = vmatmul.mubr.msk.f32.gmra.mrb[24].mxu1 %vm317_vm0, %v6770_v12  ;;  %5660 = vmatmul.mubr.msk.f32.gmra.mrb[6].mxu0 %vm317_vm0, %v3593_v48  ;;  %v1486_v12 = vld [vmem:[%s6077_s6 + $0x12f] sm:$0xff] }
 0x11c   : > { %5409 = vmatprep.mubr.msk.f32.mxu1 %vm317_vm0, %v6774_v15  ;;  %5662 = vmatprep.mubr.msk.f32.mxu0 %vm317_vm0, %v3594_v54  ;;  %v1896_v15 = vld [vmem:[%s6077_s6 + $0xa8] sm:$0xff]  ;;  %v4093_v31 = vpop.permute.xlu0 %4092 }
 0x11f   : > { %5410 = vmatmul.mubr.msk.f32.gmra.mrb[26].mxu1 %vm317_vm0, %v6790_v22  ;;  %5663 = vmatmul.mubr.msk.f32.gmra.mrb[8].mxu0 %vm317_vm0, %v3595_v58  ;;  %v1898_v22 = vld [vmem:[%s6077_s6 + $0xb8] sm:$0xff] }
 0x120   : > { %5412 = vmatprep.mubr.msk.f32.mxu1 %vm317_vm0, %v6794_v26  ;;  %5665 = vmatprep.mubr.msk.f32.mxu0 %vm317_vm0, %v3596_v62  ;;  %v1899_v26 = vld [vmem:[%s6077_s6 + $0xc0] sm:$0xff]  ;;  %v4108_v39 = vpop.permute.xlu0 %4107  ;;  %v4113_v44 = vpop.permute.xlu1 %4112 }
 0x123   : > { %5413 = vmatmul.mubr.msk.f32.gmra.mrb[28].mxu1 %vm317_vm0, %v6810_v33  ;;  %5666 = vmatmul.mubr.msk.f32.gmra.mrb[10].mxu0 %vm317_vm0, %v3597_v0  ;;  %v1901_v33 = vld [vmem:[%s6077_s6 + $0xd0] sm:$0xff] }
 0x124   : > { %5415 = vmatprep.mubr.msk.f32.mxu1 %vm317_vm0, %v6814_v37  ;;  %5668 = vmatprep.mubr.msk.f32.mxu0 %vm317_vm0, %v3598_v3  ;;  %v1902_v37 = vld [vmem:[%s6077_s6 + $0xd8] sm:$0xff] }
 0x125   : > { %v7080_v47 = vpop.permute.xlu0 %4117  ;;  %v7082_v48 = vpop.permute.xlu1 %4122 }
 0x127   : > { %5416 = vmatmul.mubr.msk.f32.gmra.mrb[30].mxu1 %vm317_vm0, %v6830_v43  ;;  %5669 = vmatmul.mubr.msk.f32.gmra.mrb[12].mxu0 %vm317_vm0, %v3599_v5  ;;  %v1904_v43 = vld [vmem:[%s6077_s6 + $0xe8] sm:$0xff] }
 0x128   : > { %5418 = vmatprep.mubr.msk.f32.mxu1 %vm317_vm0, %v6834_v49  ;;  %5671 = vmatprep.mubr.msk.f32.mxu0 %vm317_vm0, %v3600_v7  ;;  %v1905_v49 = vld [vmem:[%s6077_s6 + $0xf0] sm:$0xff] }
 0x129   : > { %v7088_v62 = vpop.permute.xlu0 %4127  ;;  %v7092_v3 = vpop.permute.xlu1 %4132 }
 0x12b   : > { %5419 = vmatmul.mubr.msk.f32.gmra.mrb[32].mxu1 %vm317_vm0, %v6850_v61  ;;  %5672 = vmatmul.mubr.msk.f32.gmra.mrb[14].mxu0 %vm317_vm0, %v3601_v8  ;;  %v1907_v61 = vld [vmem:[%s6077_s6 + $0x100] sm:$0xff]  ;;  %s5995_s6 = smul.u32 288, %s7237_s19 }
 0x12c   : > { %5421 = vmatprep.mubr.msk.f32.mxu1 %vm317_vm0, %v1485_v9  ;;  %5674 = vmatprep.mubr.msk.f32.mxu0 %vm317_vm0, %v3602_v10 }
 0x12d   : > { %v7100_v9 = vpop.permute.xlu0 %4137  ;;  %v7102_v10 = vpop.permute.xlu1 %4142  ;;  %s7120_s29 = scalar_lea.vmem %s7233_s3, %s5995_s6 }
 0x12f   : > { %5422 = vmatmul.mubr.msk.f32.gmra.mrb[34].mxu1 %vm317_vm0, %v1486_v12  ;;  %5675 = vmatmul.mubr.msk.f32.gmra.mrb[16].mxu0 %vm317_vm0, %v3603_v13 }
 0x130   : > { %5453 = vmatprep.mubr.msk.f32.mxu1 %vm317_vm0, %v1896_v15  ;;  %5677 = vmatprep.mubr.msk.f32.mxu0 %vm317_vm0, %v3604_v16 }
 0x131   : > { %v7108_v15 = vpop.permute.xlu0 %4147 }
 0x133   : > { %5454 = vmatmul.mubr.msk.f32.vlgmr.msra.gmra.mrb[18].mxu1 %vm317_vm0, %v1897_v19  ;;  %5678 = vmatmul.mubr.msk.f32.gmra.mrb[18].mxu0 %vm317_vm0, %v3605_v20  ;;  %v7113_v19 = vpop.permute.xlu1 %4152 }
 0x134   : > { %5456 = vmatprep.mubr.msk.f32.mxu1 %vm317_vm0, %v1898_v22  ;;  %5680 = vmatprep.mubr.msk.f32.mxu0 %vm317_vm0, %v3606_v23 }
 0x137   : > { %5457 = vmatmul.mubr.msk.f32.gmra.mrb[20].mxu1 %vm317_vm0, %v1899_v26  ;;  %5681 = vmatmul.mubr.msk.f32.gmra.mrb[20].mxu0 %vm317_vm0, %v3607_v27  ;;  %v7122_v27 = vpop.permute.xlu0 %4157 }
 0x138   : > { %5459 = vmatprep.mubr.msk.f32.mxu1 %vm317_vm0, %v1900_v29  ;;  %5683 = vmatprep.mubr.msk.f32.mxu0 %vm317_vm0, %v3608_v30  ;;  %v7124_v30 = vpop.permute.xlu1 %4162 }
 0x13b   : > { %5460 = vmatmul.mubr.msk.f32.gmra.mrb[22].mxu1 %vm317_vm0, %v1901_v33  ;;  %5684 = vmatmul.mubr.msk.f32.gmra.mrb[22].mxu0 %vm317_vm0, %v3609_v34 }
 0x13c   : > { %5462 = vmatprep.mubr.msk.f32.mxu1 %vm317_vm0, %v1902_v37  ;;  %5686 = vmatprep.mubr.msk.f32.mxu0 %vm317_vm0, %v3610_v38 }
 0x13f   : > { %5463 = vmatmul.mubr.msk.f32.gmra.mrb[24].mxu1 %vm317_vm0, %v1903_v41  ;;  %5687 = vmatmul.mubr.msk.f32.gmra.mrb[24].mxu0 %vm317_vm0, %v3611_v42 }
 0x140   : > { %5465 = vmatprep.mubr.msk.f32.mxu1 %vm317_vm0, %v1904_v43  ;;  %5689 = vmatprep.mubr.msk.f32.mxu0 %vm317_vm0, %v3612_v45 }
 0x143   : > { %5466 = vmatmul.mubr.msk.f32.gmra.mrb[26].mxu1 %vm317_vm0, %v1905_v49  ;;  %5690 = vmatmul.mubr.msk.f32.gmra.mrb[26].mxu0 %vm317_vm0, %v3613_v51  ;;  %v7129_v51 = vpop.permute.xlu0 %4167 }
 0x144   : > { %5468 = vmatprep.mubr.msk.f32.mxu1 %vm317_vm0, %v1906_v53  ;;  %5692 = vmatprep.mubr.msk.f32.mxu0 %vm317_vm0, %v3614_v57 }
 0x147   : > { %5469 = vmatmul.mubr.msk.f32.gmra.mrb[28].mxu1 %vm317_vm0, %v1907_v61  ;;  %5693 = vmatmul.mubr.msk.f32.gmra.mrb[28].mxu0 %vm317_vm0, %v3615_v63 }
 0x148   : > { %5471 = vmatprep.mubr.msk.f32.mxu1 %vm317_vm0, %v1908_v2  ;;  %5695 = vmatprep.mubr.msk.f32.mxu0 %vm317_vm0, %v3616_v6  ;;  %v7132_v2 = vpop.permute.xlu1 %4172 }
 0x14b   : > { %5472 = vmatmul.mubr.msk.f32.gmra.mrb[30].mxu1 %vm317_vm0, %v1909_v50  ;;  %5696 = vmatmul.mubr.msk.f32.gmra.mrb[30].mxu0 %vm317_vm0, %v3617_v4 }
 0x14c   : > { %5474 = vmatprep.mubr.msk.f32.mxu1 %vm317_vm0, %v1910_v52  ;;  %5698 = vmatprep.mubr.msk.f32.mxu0 %vm317_vm0, %v3618_v14 }
 0x14f   : > { %5475 = vmatmul.mubr.msk.f32.gmra.mrb[32].mxu1 %vm317_vm0, %v1911_v56  ;;  %5699 = vmatmul.mubr.msk.f32.gmra.mrb[32].mxu0 %vm317_vm0, %v3619_v17 }
 0x150   : > { %5477 = vmatprep.mubr.msk.f32.mxu1 %vm317_vm0, %v1912_v60  ;;  %5701 = vmatprep.mubr.msk.f32.mxu0 %vm317_vm0, %v3620_v18 }
 0x153   : > { %5478 = vmatmul.mubr.msk.f32.gmra.mrb[34].mxu1 %vm317_vm0, %v1913_v1  ;;  %5702 = vmatmul.mubr.msk.f32.gmra.mrb[34].mxu0 %vm317_vm0, %v3621_v21 }
 0x1be   : > { %v5372_v11 = vpop.f32.mrb[0].mxu1 }
 0x1bf   : > { %v1663_v28 = vpop.f32.mrb[1].mxu1 }
 0x1c2   : > { %v5375_v35 = vpop.f32.mrb[2].mxu1 }
 0x1c3   : > { %v1673_v36 = vpop.f32.mrb[3].mxu1 }
 0x1c6   : > { %v5378_v40 = vpop.f32.mrb[4].mxu1 }
 0x1c7   : > { %v1683_v46 = vpop.f32.mrb[5].mxu1 }
 0x1ca   : > { %v5381_v55 = vpop.f32.mrb[6].mxu1 }
 0x1cb   : > { %v7078_v59 = vpop.f32.mrb[7].mxu1 }
 0x1ce   : > { %v7084_v54 = vpop.f32.mrb[8].mxu1 }
 0x1cf   : > { %v7086_v58 = vpop.f32.mrb[9].mxu1 }
 0x1d2   : > { %v7090_v0 = vpop.f32.mrb[10].mxu1 }
 0x1d3   : > { %v7094_v5 = vpop.f32.mrb[11].mxu1 }
 0x1d6   : > { %v7096_v7 = vpop.f32.mrb[12].mxu1 }
 0x1d7   : > { %v7098_v8 = vpop.f32.mrb[13].mxu1 }
 0x1da   : > { %v7104_v12 = vpop.f32.mrb[14].mxu1 }
 0x1db   : > { %v7106_v13 = vpop.f32.mrb[15].mxu1 }
 0x1de   : > { %v7110_v16 = vpop.f32.mrb[16].mxu1 }
 0x1df   : > { %v7115_v20 = vpop.f32.mrb[17].mxu1 }
 0x1e2   : > { %v5652_v22 = vpop.f32.mrb[0].mxu0 }
 0x1e3   : > { %v5706_v23 = vadd.f32 %v5652_v22, %v5372_v11  ;;  %v3798_v26 = vpop.f32.mrb[1].mxu0  ;;  %v7136_v11 = vpop.permute.xlu0 %4177 }
 0x1e4   : > { %v5707_v29 = vadd.f32 %v3798_v26, %v1663_v28 }
 0x1e5   : > { %4014 = vst [vmem:[%s7120_s29 + $0x8] sm:$0xff] %v5706_v23  ;;  %v4266_v33 = vmul.f32 %v5706_v23, %v4093_v31 }
 0x1e6   : > { %4013 = vst [vmem:[%s7120_s29] sm:$0xff] %v5707_v29  ;;  %v4265_v34 = vmul.f32 %v5707_v29, %v4088_v24  ;;  %v5655_v37 = vpop.f32.mrb[2].mxu0 }
 0x1e7   : > { %v4344_v38 = vmul.f32 %v4266_v33, %v4266_v33  ;;  %v5708_v41 = vadd.f32 %v5655_v37, %v5375_v35  ;;  %v3808_v42 = vpop.f32.mrb[3].mxu0 }
 0x1e8   : > { %v4301_v43 = vadd.f32 %v4266_v33, %v4265_v34  ;;  %v4343_v45 = vmul.f32 %v4265_v34, %v4265_v34  ;;  %v5709_v49 = vadd.f32 %v3808_v42, %v1673_v36  ;;  %v7139_v36 = vpop.permute.xlu1 %4182 }
 0x1e9   : > { %4016 = vst [vmem:[%s7120_s29 + $0x18] sm:$0xff] %v5708_v41  ;;  %v4268_v57 = vmul.f32 %v5708_v41, %v4103_v32 }
 0x1ea   : > { %v4379_v53 = vadd.f32 %v4344_v38, %v4343_v45  ;;  %4015 = vst [vmem:[%s7120_s29 + $0x10] sm:$0xff] %v5709_v49  ;;  %v4267_v61 = vmul.f32 %v5709_v49, %v4098_v25  ;;  %v5658_v63 = vpop.f32.mrb[4].mxu0  ;;  %v7149_v38 = vpop.permute.xlu0 %4187 }
 0x1eb   : > { %v5710_v6 = vadd.f32 %v5658_v63, %v5378_v40  ;;  %v3818_v50 = vpop.f32.mrb[5].mxu0  ;;  %v4346_v17 = vmul.f32 %v4268_v57, %v4268_v57 }
 0x1ec   : > { %v4302_v4 = vadd.f32 %v4301_v43, %v4267_v61  ;;  %v4345_v52 = vmul.f32 %v4267_v61, %v4267_v61  ;;  %v5711_v14 = vadd.f32 %v3818_v50, %v1683_v46  ;;  %v7153_v43 = vpop.permute.xlu1 %4192 }
 0x1ed   : > { %4018 = vst [vmem:[%s7120_s29 + $0x28] sm:$0xff] %v5710_v6  ;;  %v4270_v56 = vmul.f32 %v5710_v6, %v4113_v44 }
 0x1ee   : > { %v4380_v60 = vadd.f32 %v4379_v53, %v4345_v52  ;;  %4017 = vst [vmem:[%s7120_s29 + $0x20] sm:$0xff] %v5711_v14  ;;  %v4269_v18 = vmul.f32 %v5711_v14, %v4108_v39  ;;  %v4303_v1 = vadd.f32 %v4302_v4, %v4268_v57  ;;  %v5661_v21 = vpop.f32.mrb[6].mxu0  ;;  %v7162_v14 = vpop.permute.xlu0 %4197 }
 0x1ef   : > { %v5712_v24 = vadd.f32 %v5661_v21, %v5381_v55  ;;  %v3828_v25 = vpop.f32.mrb[7].mxu0  ;;  %v4348_v40 = vmul.f32 %v4270_v56, %v4270_v56 }
 0x1f0   : > { %v4304_v28 = vadd.f32 %v4303_v1, %v4269_v18  ;;  %v4347_v31 = vmul.f32 %v4269_v18, %v4269_v18  ;;  %v4381_v32 = vadd.f32 %v4380_v60, %v4346_v17  ;;  %v5713_v35 = vadd.f32 %v3828_v25, %v7078_v59  ;;  %v7165_v18 = vpop.permute.xlu1 %4202 }
 0x1f1   : > { %4020 = vst [vmem:[%s7120_s29 + $0x38] sm:$0xff] %v5712_v24  ;;  %v4272_v46 = vmul.f32 %v5712_v24, %v7082_v48 }
 0x1f2   : > { %v4382_v44 = vadd.f32 %v4381_v32, %v4347_v31  ;;  %4019 = vst [vmem:[%s7120_s29 + $0x30] sm:$0xff] %v5713_v35  ;;  %v4271_v39 = vmul.f32 %v5713_v35, %v7080_v47  ;;  %v4305_v55 = vadd.f32 %v4304_v28, %v4270_v56  ;;  %v5664_v22 = vpop.f32.mrb[8].mxu0 }
 0x1f3   : > { %v5714_v23 = vadd.f32 %v5664_v22, %v7084_v54  ;;  %v3838_v26 = vpop.f32.mrb[9].mxu0  ;;  %v4350_v48 = vmul.f32 %v4272_v46, %v4272_v46 }
 0x1f4   : > { %v4306_v29 = vadd.f32 %v4305_v55, %v4271_v39  ;;  %v4349_v33 = vmul.f32 %v4271_v39, %v4271_v39  ;;  %v4383_v59 = vadd.f32 %v4382_v44, %v4348_v40  ;;  %v5715_v34 = vadd.f32 %v3838_v26, %v7086_v58  ;;  %v7179_v55 = vpop.permute.xlu1 %4212 }
 0x1f5   : > { %4022 = vst [vmem:[%s7120_s29 + $0x48] sm:$0xff] %v5714_v23  ;;  %v4274_v37 = vmul.f32 %v5714_v23, %v7092_v3 }
 0x1f6   : > { %v4384_v41 = vadd.f32 %v4383_v59, %v4349_v33  ;;  %4021 = vst [vmem:[%s7120_s29 + $0x40] sm:$0xff] %v5715_v34  ;;  %v4273_v47 = vmul.f32 %v5715_v34, %v7088_v62  ;;  %v4307_v42 = vadd.f32 %v4306_v29, %v4272_v46  ;;  %v5667_v54 = vpop.f32.mrb[10].mxu0 }
 0x1f7   : > { %v5716_v45 = vadd.f32 %v5667_v54, %v7090_v0  ;;  %v3848_v49 = vpop.f32.mrb[11].mxu0  ;;  %v4352_v61 = vmul.f32 %v4274_v37, %v4274_v37 }
 0x1f8   : > { %v4308_v58 = vadd.f32 %v4307_v42, %v4273_v47  ;;  %v4351_v53 = vmul.f32 %v4273_v47, %v4273_v47  ;;  %v4385_v57 = vadd.f32 %v4384_v41, %v4350_v48  ;;  %v5717_v3 = vadd.f32 %v3848_v49, %v7094_v5 }
 0x1f9   : > { %4024 = vst [vmem:[%s7120_s29 + $0x58] sm:$0xff] %v5716_v45  ;;  %v4276_v6 = vmul.f32 %v5716_v45, %v7102_v10 }
 0x1fa   : > { %v4386_v63 = vadd.f32 %v4385_v57, %v4351_v53  ;;  %4023 = vst [vmem:[%s7120_s29 + $0x50] sm:$0xff] %v5717_v3  ;;  %v4275_v62 = vmul.f32 %v5717_v3, %v7100_v9  ;;  %v4309_v50 = vadd.f32 %v4308_v58, %v4274_v37  ;;  %v5670_v4 = vpop.f32.mrb[12].mxu0 }
 0x1fb   : > { %v5718_v0 = vadd.f32 %v5670_v4, %v7096_v7  ;;  %v3858_v52 = vpop.f32.mrb[13].mxu0  ;;  %v4354_v1 = vmul.f32 %v4276_v6, %v4276_v6 }
 0x1fc   : > { %v4310_v56 = vadd.f32 %v4309_v50, %v4275_v62  ;;  %v4353_v17 = vmul.f32 %v4275_v62, %v4275_v62  ;;  %v4387_v5 = vadd.f32 %v4386_v63, %v4352_v61  ;;  %v5719_v60 = vadd.f32 %v3858_v52, %v7098_v8 }
 0x1fd   : > { %4026 = vst [vmem:[%s7120_s29 + $0x68] sm:$0xff] %v5718_v0  ;;  %v4278_v10 = vmul.f32 %v5718_v0, %v7113_v19  ;;  %v7174_v19 = vpop.permute.xlu0 %4207 }
 0x1fe   : > { %v4388_v9 = vadd.f32 %v4387_v5, %v4353_v17  ;;  %4025 = vst [vmem:[%s7120_s29 + $0x60] sm:$0xff] %v5719_v60  ;;  %v4277_v7 = vmul.f32 %v5719_v60, %v7108_v15  ;;  %v4311_v21 = vadd.f32 %v4310_v56, %v4276_v6  ;;  %v5673_v24 = vpop.f32.mrb[14].mxu0 }
 0x1ff   : > { %v5720_v25 = vadd.f32 %v5673_v24, %v7104_v12  ;;  %v3868_v28 = vpop.f32.mrb[15].mxu0  ;;  %v4356_v40 = vmul.f32 %v4278_v10, %v4278_v10 }
 0x200   : > { %v4312_v31 = vadd.f32 %v4311_v21, %v4277_v7  ;;  %v4355_v32 = vmul.f32 %v4277_v7, %v4277_v7  ;;  %v4389_v8 = vadd.f32 %v4388_v9, %v4354_v1  ;;  %v5721_v35 = vadd.f32 %v3868_v28, %v7106_v13 }
 0x201   : > { %4028 = vst [vmem:[%s7120_s29 + $0x78] sm:$0xff] %v5720_v25  ;;  %v4280_v46 = vmul.f32 %v5720_v25, %v7124_v30  ;;  %v7187_v58 = vpop.permute.xlu0 %4217 }
 0x202   : > { %v4390_v44 = vadd.f32 %v4389_v8, %v4355_v32  ;;  %4027 = vst [vmem:[%s7120_s29 + $0x70] sm:$0xff] %v5721_v35  ;;  %v4279_v15 = vmul.f32 %v5721_v35, %v7122_v27  ;;  %v4313_v39 = vadd.f32 %v4312_v31, %v4278_v10  ;;  %v5676_v12 = vpop.f32.mrb[16].mxu0 }
 0x203   : > { %v5722_v22 = vadd.f32 %v5676_v12, %v7110_v16  ;;  %v3878_v23 = vpop.f32.mrb[17].mxu0  ;;  %v4358_v30 = vmul.f32 %v4280_v46, %v4280_v46 }
 0x204   : > { %v4314_v13 = vadd.f32 %v4313_v39, %v4279_v15  ;;  %v4357_v26 = vmul.f32 %v4279_v15, %v4279_v15  ;;  %v4391_v29 = vadd.f32 %v4390_v44, %v4356_v40  ;;  %v5723_v33 = vadd.f32 %v3878_v23, %v7115_v20 }
 0x205   : > { %4030 = vst [vmem:[%s7120_s29 + $0x88] sm:$0xff] %v5722_v22  ;;  %v4282_v59 = vmul.f32 %v5722_v22, %v7132_v2  ;;  %v7189_v2 = vpop.permute.xlu1 %4222  ;;  %v4228_v8 = vpop.permute.xlu0 %4227 }
 0x206   : > { %v4392_v34 = vadd.f32 %v4391_v29, %v4357_v26  ;;  %4029 = vst [vmem:[%s7120_s29 + $0x80] sm:$0xff] %v5723_v33  ;;  %v4281_v27 = vmul.f32 %v5723_v33, %v7129_v51  ;;  %v4315_v37 = vadd.f32 %v4314_v13, %v4280_v46  ;;  %v5455_v48 = vpop.f32.mrb[18].mxu1  ;;  %v5679_v41 = vpop.f32.mrb[18].mxu0 }
 0x207   : > { %v5724_v16 = vadd.f32 %v5679_v41, %v5455_v48  ;;  %v2180_v47 = vpop.f32.mrb[19].mxu1  ;;  %v3888_v42 = vpop.f32.mrb[19].mxu0  ;;  %v4360_v53 = vmul.f32 %v4282_v59, %v4282_v59 }
 0x208   : > { %v4316_v54 = vadd.f32 %v4315_v37, %v4281_v27  ;;  %v4359_v45 = vmul.f32 %v4281_v27, %v4281_v27  ;;  %v4393_v49 = vadd.f32 %v4392_v34, %v4358_v30  ;;  %v5725_v20 = vadd.f32 %v3888_v42, %v2180_v47 }
 0x209   : > { %4032 = vst [vmem:[%s7120_s29 + $0x98] sm:$0xff] %v5724_v16  ;;  %v4284_v51 = vmul.f32 %v5724_v16, %v7139_v36  ;;  %v4233_v35 = vpop.permute.xlu1 %4232 }
 0x20a   : > { %v4394_v57 = vadd.f32 %v4393_v49, %v4359_v45  ;;  %4031 = vst [vmem:[%s7120_s29 + $0x90] sm:$0xff] %v5725_v20  ;;  %v4283_v3 = vmul.f32 %v5725_v20, %v7136_v11  ;;  %v4317_v61 = vadd.f32 %v4316_v54, %v4282_v59  ;;  %v5458_v63 = vpop.f32.mrb[20].mxu1  ;;  %v5682_v6 = vpop.f32.mrb[20].mxu0 }
 0x20b   : > { %v5726_v62 = vadd.f32 %v5682_v6, %v5458_v63  ;;  %v2190_v50 = vpop.f32.mrb[21].mxu1  ;;  %v3898_v4 = vpop.f32.mrb[21].mxu0  ;;  %v4362_v60 = vmul.f32 %v4284_v51, %v4284_v51 }
 0x20c   : > { %v4318_v0 = vadd.f32 %v4317_v61, %v4283_v3  ;;  %v4361_v52 = vmul.f32 %v4283_v3, %v4283_v3  ;;  %v4395_v56 = vadd.f32 %v4394_v57, %v4360_v53  ;;  %v5727_v17 = vadd.f32 %v3898_v4, %v2190_v50  ;;  %v4238_v49 = vpop.permute.xlu0 %4237 }
 0x20d   : > { %4034 = vst [vmem:[%s7120_s29 + $0xa8] sm:$0xff] %v5726_v62  ;;  %v4286_v5 = vmul.f32 %v5726_v62, %v7153_v43  ;;  %v4243_v20 = vpop.permute.xlu1 %4242 }
 0x20e   : > { %v4396_v10 = vadd.f32 %v4395_v56, %v4361_v52  ;;  %4033 = vst [vmem:[%s7120_s29 + $0xa0] sm:$0xff] %v5727_v17  ;;  %v4285_v36 = vmul.f32 %v5727_v17, %v7149_v38  ;;  %v4319_v11 = vadd.f32 %v4318_v0, %v4284_v51  ;;  %v5461_v1 = vpop.f32.mrb[22].mxu1  ;;  %v5685_v9 = vpop.f32.mrb[22].mxu0 }
 0x20f   : > { %v5728_v7 = vadd.f32 %v5685_v9, %v5461_v1  ;;  %v2200_v21 = vpop.f32.mrb[23].mxu1  ;;  %v3908_v24 = vpop.f32.mrb[23].mxu0  ;;  %v4364_v43 = vmul.f32 %v4286_v5, %v4286_v5 }
 0x210   : > { %v4320_v25 = vadd.f32 %v4319_v11, %v4285_v36  ;;  %v4363_v28 = vmul.f32 %v4285_v36, %v4285_v36  ;;  %v4397_v31 = vadd.f32 %v4396_v10, %v4362_v60  ;;  %v5729_v32 = vadd.f32 %v3908_v24, %v2200_v21 }
 0x211   : > { %4036 = vst [vmem:[%s7120_s29 + $0xb8] sm:$0xff] %v5728_v7  ;;  %v4288_v44 = vmul.f32 %v5728_v7, %v7165_v18 }
 0x212   : > { %v4398_v40 = vadd.f32 %v4397_v31, %v4363_v28  ;;  %4035 = vst [vmem:[%s7120_s29 + $0xb0] sm:$0xff] %v5729_v32  ;;  %v4287_v38 = vmul.f32 %v5729_v32, %v7162_v14  ;;  %v4321_v46 = vadd.f32 %v4320_v25, %v4286_v5  ;;  %v5464_v15 = vpop.f32.mrb[24].mxu1  ;;  %v5688_v39 = vpop.f32.mrb[24].mxu0 }
 0x213   : > { %v5730_v12 = vadd.f32 %v5688_v39, %v5464_v15  ;;  %v2210_v22 = vpop.f32.mrb[25].mxu1  ;;  %v3918_v23 = vpop.f32.mrb[25].mxu0  ;;  %v4366_v30 = vmul.f32 %v4288_v44, %v4288_v44 }
 0x214   : > { %v4322_v13 = vadd.f32 %v4321_v46, %v4287_v38  ;;  %v4365_v26 = vmul.f32 %v4287_v38, %v4287_v38  ;;  %v4399_v29 = vadd.f32 %v4398_v40, %v4364_v43  ;;  %v5731_v33 = vadd.f32 %v3918_v23, %v2210_v22  ;;  %v4248_v25 = vpop.permute.xlu0 %4247  ;;  %v4253_v28 = vpop.permute.xlu1 %4252 }
 0x215   : > { %4038 = vst [vmem:[%s7120_s29 + $0xc8] sm:$0xff] %v5730_v12  ;;  %v4290_v59 = vmul.f32 %v5730_v12, %v7179_v55 }
 0x216   : > { %v4400_v34 = vadd.f32 %v4399_v29, %v4365_v26  ;;  %4037 = vst [vmem:[%s7120_s29 + $0xc0] sm:$0xff] %v5731_v33  ;;  %v4289_v18 = vmul.f32 %v5731_v33, %v7174_v19  ;;  %v4323_v14 = vadd.f32 %v4322_v13, %v4288_v44  ;;  %v5467_v27 = vpop.f32.mrb[26].mxu1  ;;  %v5691_v37 = vpop.f32.mrb[26].mxu0 }
 0x217   : > { %v5732_v48 = vadd.f32 %v5691_v37, %v5467_v27  ;;  %v2220_v41 = vpop.f32.mrb[27].mxu1  ;;  %v3928_v16 = vpop.f32.mrb[27].mxu0  ;;  %v4368_v55 = vmul.f32 %v4290_v59, %v4290_v59 }
 0x218   : > { %v4324_v47 = vadd.f32 %v4323_v14, %v4289_v18  ;;  %v4367_v42 = vmul.f32 %v4289_v18, %v4289_v18  ;;  %v4401_v54 = vadd.f32 %v4400_v34, %v4366_v30  ;;  %v5733_v45 = vadd.f32 %v3928_v16, %v2220_v41 }
 0x219   : > { %4040 = vst [vmem:[%s7120_s29 + $0xd8] sm:$0xff] %v5732_v48  ;;  %v4292_v57 = vmul.f32 %v5732_v48, %v7189_v2 }
 0x21a   : > { %v4402_v53 = vadd.f32 %v4401_v54, %v4367_v42  ;;  %4039 = vst [vmem:[%s7120_s29 + $0xd0] sm:$0xff] %v5733_v45  ;;  %v4291_v19 = vmul.f32 %v5733_v45, %v7187_v58  ;;  %v4325_v51 = vadd.f32 %v4324_v47, %v4290_v59  ;;  %v5470_v3 = vpop.f32.mrb[28].mxu1  ;;  %v5694_v61 = vpop.f32.mrb[28].mxu0 }
 0x21b   : > { %v5734_v63 = vadd.f32 %v5694_v61, %v5470_v3  ;;  %v2230_v6 = vpop.f32.mrb[29].mxu1  ;;  %v3938_v62 = vpop.f32.mrb[29].mxu0  ;;  %v4370_v17 = vmul.f32 %v4292_v57, %v4292_v57 }
 0x21c   : > { %v4326_v50 = vadd.f32 %v4325_v51, %v4291_v19  ;;  %v4369_v4 = vmul.f32 %v4291_v19, %v4291_v19  ;;  %v4403_v0 = vadd.f32 %v4402_v53, %v4368_v55  ;;  %v5735_v52 = vadd.f32 %v3938_v62, %v2230_v6  ;;  %v4258_v47 = vpop.permute.xlu0 %4257  ;;  %v4263_v42 = vpop.permute.xlu1 %4262 }
 0x21d   : > { %4042 = vst [vmem:[%s7120_s29 + $0xe8] sm:$0xff] %v5734_v63  ;;  %v4294_v56 = vmul.f32 %v5734_v63, %v4233_v35 }
 0x21e   : > { %v4404_v5 = vadd.f32 %v4403_v0, %v4369_v4  ;;  %4041 = vst [vmem:[%s7120_s29 + $0xe0] sm:$0xff] %v5735_v52  ;;  %v4293_v2 = vmul.f32 %v5735_v52, %v4228_v8  ;;  %v4327_v60 = vadd.f32 %v4326_v50, %v4292_v57  ;;  %v5473_v58 = vpop.f32.mrb[30].mxu1  ;;  %v5697_v10 = vpop.f32.mrb[30].mxu0 }
 0x21f   : > { %v5736_v36 = vadd.f32 %v5697_v10, %v5473_v58  ;;  %v2240_v11 = vpop.f32.mrb[31].mxu1  ;;  %v3948_v1 = vpop.f32.mrb[31].mxu0  ;;  %v4372_v31 = vmul.f32 %v4294_v56, %v4294_v56 }
 0x220   : > { %v4328_v9 = vadd.f32 %v4327_v60, %v4293_v2  ;;  %v4371_v7 = vmul.f32 %v4293_v2, %v4293_v2  ;;  %v4405_v21 = vadd.f32 %v4404_v5, %v4370_v17  ;;  %v5737_v24 = vadd.f32 %v3948_v1, %v2240_v11 }
 0x221   : > { %4044 = vst [vmem:[%s7120_s29 + $0xf8] sm:$0xff] %v5736_v36  ;;  %v4296_v35 = vmul.f32 %v5736_v36, %v4243_v20 }
 0x222   : > { %v4406_v32 = vadd.f32 %v4405_v21, %v4371_v7  ;;  %4043 = vst [vmem:[%s7120_s29 + $0xf0] sm:$0xff] %v5737_v24  ;;  %v4295_v8 = vmul.f32 %v5737_v24, %v4238_v49  ;;  %v4329_v43 = vadd.f32 %v4328_v9, %v4294_v56  ;;  %v5476_v40 = vpop.f32.mrb[32].mxu1  ;;  %v5700_v44 = vpop.f32.mrb[32].mxu0 }
 0x223   : > { %v5738_v38 = vadd.f32 %v5700_v44, %v5476_v40  ;;  %v2250_v46 = vpop.f32.mrb[33].mxu1  ;;  %v3958_v15 = vpop.f32.mrb[33].mxu0  ;;  %v4374_v26 = vmul.f32 %v4296_v35, %v4296_v35 }
 0x224   : > { %v4330_v39 = vadd.f32 %v4329_v43, %v4295_v8  ;;  %v4373_v12 = vmul.f32 %v4295_v8, %v4295_v8  ;;  %v4407_v22 = vadd.f32 %v4406_v32, %v4372_v31  ;;  %v5739_v23 = vadd.f32 %v3958_v15, %v2250_v46 }
 0x225   : > { %4046 = vst [vmem:[%s7120_s29 + $0x108] sm:$0xff] %v5738_v38  ;;  %v4298_v13 = vmul.f32 %v5738_v38, %v4253_v28 }
 0x226   : > { %v4408_v29 = vadd.f32 %v4407_v22, %v4373_v12  ;;  %4045 = vst [vmem:[%s7120_s29 + $0x100] sm:$0xff] %v5739_v23  ;;  %v4297_v33 = vmul.f32 %v5739_v23, %v4248_v25  ;;  %v4331_v59 = vadd.f32 %v4330_v39, %v4296_v35  ;;  %v5479_v30 = vpop.f32.mrb[34].mxu1  ;;  %v5703_v34 = vpop.f32.mrb[34].mxu0 }
 0x227   : > { %v5740_v18 = vadd.f32 %v5703_v34, %v5479_v30  ;;  %v2260_v14 = vpop.f32.mrb[35].mxu1  ;;  %v3968_v27 = vpop.f32.mrb[35].mxu0  ;;  %v4376_v54 = vmul.f32 %v4298_v13, %v4298_v13 }
 0x228   : > { %v4332_v37 = vadd.f32 %v4331_v59, %v4297_v33  ;;  %v4375_v48 = vmul.f32 %v4297_v33, %v4297_v33  ;;  %v4409_v41 = vadd.f32 %v4408_v29, %v4374_v26  ;;  %v5741_v16 = vadd.f32 %v3968_v27, %v2260_v14 }
 0x229   : > { %4048 = vst [vmem:[%s7120_s29 + $0x118] sm:$0xff] %v5740_v18  ;;  %v4300_v49 = vmul.f32 %v5740_v18, %v4263_v42 }
 0x22a   : > { %v4410_v45 = vadd.f32 %v4409_v41, %v4375_v48  ;;  %4047 = vst [vmem:[%s7120_s29 + $0x110] sm:$0xff] %v5741_v16  ;;  %v4299_v20 = vmul.f32 %v5741_v16, %v4258_v47  ;;  %v4333_v55 = vadd.f32 %v4332_v37, %v4298_v13 }
 0x22b   : > { %v4378_v51 = vmul.f32 %v4300_v49, %v4300_v49 }
 0x22c   : > { %v4334_v53 = vadd.f32 %v4333_v55, %v4299_v20  ;;  %v4377_v57 = vmul.f32 %v4299_v20, %v4299_v20  ;;  %v4411_v19 = vadd.f32 %v4410_v45, %v4376_v54 }
 0x22e   : > { %v4335_v3 = vadd.f32 %v4334_v53, %v4300_v49  ;;  %v4412_v61 = vadd.f32 %v4411_v19, %v4377_v57 }
 0x230   : > { %v4336_v63 = vrot.slane %v4335_v3, 4  ;;  %v4413_v6 = vadd.f32 %v4412_v61, %v4378_v51 }
 0x232   : > { %v4337_v62 = vadd.f32 %v4336_v63, %v4335_v3  ;;  %v4414_v50 = vrot.slane %v4413_v6, 4 }
 0x234   : > { %v4338_v4 = vrot.slane %v4337_v62, 2  ;;  %v4415_v0 = vadd.f32 %v4414_v50, %v4413_v6 }
 0x236   : > { %v4339_v52 = vadd.f32 %v4338_v4, %v4337_v62  ;;  %v4416_v56 = vrot.slane %v4415_v0, 2 }
 0x238   : > { %v4340_v17 = vrot.slane %v4339_v52, 1  ;;  %v4417_v5 = vadd.f32 %v4416_v56, %v4415_v0 }
 0x23a   : > { %v4341_v2 = vadd.f32 %v4340_v17, %v4339_v52  ;;  %v4418_v60 = vrot.slane %v4417_v5, 1 }
 0x23c   : > { %4342 = vst [vmem:[%s238_s8] sm:$0x1] %v4341_v2  ;;  %v4419_v58 = vadd.f32 %v4418_v60, %v4417_v5 }
 0x23e   : > { %4420 = vst [vmem:[%s241_s11] sm:$0x1] %v4419_v58 }
 0x23f PF: > { %s16_s18 = sadd.s32 1, %s6014_s18  }
 0x240   : > { %p13_p4 = scmp.ge.s32.totalorder %s16_s18, 4  }
 0x242   :  { %15 = sbr.rel (!%p13_p4) target bundleno = 1 (0x1), region = 94 }

// kernel: double_conv.4
= control target key start
LH: loop header
LB: loop body
LE: loop exit
PB: predicated region body
PF: predicated region fallthrough
CT: control target
= control target key end

     0   :  { %s6230_s24 = smov 0   ;;  %s7556_s0 = inlined_call_operand.vmem [shape: f32[2,288,128], index: 0, kind: input, shape index: {}]   ;;  %s7557_s1 = inlined_call_operand.vmem [shape: f32[1,128], index: 1, kind: input, shape index: {}]   ;;  %s7558_s2 = inlined_call_operand.vmem [shape: f32[1,128], index: 2, kind: input, shape index: {}]   ;;  %s7559_s3 = inlined_call_operand.vmem [shape: f32[9,128,128], index: 3, kind: input, shape index: {}]   ;;  %s7560_s4 = inlined_call_operand.vmem [shape: f32[288,1], index: 4, kind: input, shape index: {}]   ;;  %s7561_s5 = inlined_call_operand.vmem [shape: f32[2,288,128], index: 5, kind: output, shape index: {0}]   ;;  %s7562_s6 = inlined_call_operand.vmem [shape: f32[2,1,128], index: 6, kind: output, shape index: {1}]   ;;  %s7563_s7 = inlined_call_operand.vmem [shape: f32[2,1,128], index: 7, kind: output, shape index: {2}]  }
   0x1 LB: > { %s4194_s25 = sadd.s32 4294967295, %s6186_s24   ;;  %p4198_p0 = scmp.ge.s32.totalorder %s6186_s24, 1  ;;  %s6186_s24 = sphi %s6230_s24, %s18_s24  }
   0x2   : > { %p242_p1 = scmp.lt.s32.totalorder %s6186_s24, 3 }
   0x4   : > { %p243_p2 = pnand %p4198_p0, %p242_p1 }
   0x5   : > { %v6241_v0 = vld [vmem:[%s7560_s4 + $0x10] sm:$0xff] (!%p243_p2)  ;;  %v6246_v1 = vld [vmem:[%s7560_s4] sm:$0xff] (!%p243_p2)  ;;  %v6188_v2 = vmov (!%p243_p2), 0   ;;  %v6189_v3 = vmov (!%p243_p2), 0.0   ;;  %v6253_v4 = vld [vmem:[%s7560_s4 + $0x18] sm:$0xff] (!%p243_p2)  ;;  %p280_p3 = scmp.lt.s32.totalorder (!%p243_p2), %s4194_s25, 1 }
   0x6   : > { %246 = sbr.rel (%p243_p2) target bundleno = 701 (0x2bd), region = 40  ;;  %6179 = vset.pattern.permute.xlu1 (!%p243_p2), %v6188_v2  ;;  %6178 = vset.pattern.permute.xlu0 (!%p243_p2), %v6188_v2  ;;  %706 = vst [vmem:[#allocation2] sm:$0xff] (!%p243_p2), %v6189_v3  ;;  %707 = vst [vmem:[#allocation2 + $0x8] sm:$0xff] (!%p243_p2), %v6189_v3  ;;  %v6258_v5 = vld [vmem:[%s7560_s4 + $0x8] sm:$0xff] (!%p243_p2)  ;;  %v6270_v7 = vld [vmem:[%s7560_s4 + $0x20] sm:$0xff] (!%p243_p2) }
   0x7   : > { %502 = vperm.xlu1 (!%p243_p2), %6179, %v6241_v0   ;;  %492 = vperm.xlu0 (!%p243_p2), %6178, %v6246_v1   ;;  %708 = vst [vmem:[#allocation2 + $0x10] sm:$0xff] (!%p243_p2), %v6189_v3  ;;  %709 = vst [vmem:[#allocation2 + $0x138] sm:$0xff] (!%p243_p2), %v6189_v3  ;;  %v6265_v6 = vld [vmem:[%s7560_s4 + $0x28] sm:$0xff] (!%p243_p2)  ;;  %v6277_v8 = vld [vmem:[%s7560_s4 + $0x38] sm:$0xff] (!%p243_p2) }
   0x8   : > { %710 = vst [vmem:[#allocation2 + $0x140] sm:$0xff] (!%p243_p2), %v6189_v3  ;;  %711 = vst [vmem:[#allocation2 + $0x148] sm:$0xff] (!%p243_p2), %v6189_v3  ;;  %v6282_v9 = vld [vmem:[%s7560_s4 + $0x30] sm:$0xff] (!%p243_p2)  ;;  %v4203_v10 = vld [vmem:[%s7559_s3 + $0x80] sm:$0xff] (!%p243_p2) }
   0x9   : > { %v4204_v11 = vld [vmem:[%s7559_s3 + $0x88] sm:$0xff] (!%p243_p2)  ;;  %v4205_v12 = vld [vmem:[%s7559_s3 + $0x90] sm:$0xff] (!%p243_p2)  ;;  %v4206_v14 = vld [vmem:[%s7559_s3 + $0x98] sm:$0xff] (!%p243_p2) }
   0xa   : > { %v5575_v13 = vpack.c.bf16 (!%p243_p2), %v4204_v11, %v4203_v10  ;;  %v4251_v15 = vld [vmem:[%s7559_s3 + $0x200] sm:$0xff] (!%p243_p2)  ;;  %v4252_v16 = vld [vmem:[%s7559_s3 + $0x208] sm:$0xff] (!%p243_p2)  ;;  %v5579_v17 = vpack.c.bf16 (!%p243_p2), %v4206_v14, %v4205_v12  ;;  %v4253_v21 = vld [vmem:[%s7559_s3 + $0x210] sm:$0xff] (!%p243_p2) }
   0xb   : > { %507 = vperm.xlu1 (!%p243_p2), %6179, %v6253_v4   ;;  %497 = vperm.xlu0 (!%p243_p2), %6178, %v6258_v5   ;;  %v6304_v18 = vpack.c.bf16 (!%p243_p2), %v4252_v16, %v4251_v15  ;;  %v4207_v19 = vld [vmem:[%s7559_s3 + $0xa0] sm:$0xff] (!%p243_p2)  ;;  %v4208_v20 = vld [vmem:[%s7559_s3 + $0xa8] sm:$0xff] (!%p243_p2)  ;;  %v4254_v24 = vld [vmem:[%s7559_s3 + $0x218] sm:$0xff] (!%p243_p2) }
   0xc   : > { %v6318_v22 = vld [vmem:[%s7560_s4 + $0x48] sm:$0xff] (!%p243_p2)  ;;  %v6323_v23 = vld [vmem:[%s7560_s4 + $0x40] sm:$0xff] (!%p243_p2)  ;;  %5576 = vmatprep.subr.bf16.mxu1 (!%p243_p2), %v5575_v13  ;;  %v6329_v25 = vpack.c.bf16 (!%p243_p2), %v4254_v24, %v4253_v21  ;;  %v5583_v28 = vpack.c.bf16 (!%p243_p2), %v4208_v20, %v4207_v19  ;;  %v4209_v29 = vld [vmem:[%s7559_s3 + $0xb0] sm:$0xff] (!%p243_p2) }
   0xd   : > { %5578 = vmatpush3.bf16.msra.mxu1 %v5575_v13  ;;  %5704 = vmatprep.subr.bf16.mxu0 %v6304_v18  ;;  %v4255_v26 = vld [vmem:[%s7559_s3 + $0x220] sm:$0xff]  ;;  %v4256_v27 = vld [vmem:[%s7559_s3 + $0x228] sm:$0xff]  ;;  %v4210_v30 = vld [vmem:[%s7559_s3 + $0xb8] sm:$0xff]  ;;  %s7565_s25 = smov (!%p280_p3, %s4194_s25), 1 }
   0xe   : > { %5580 = vmatprep.subr.bf16.mxu1 %v5579_v17  ;;  %5706 = vmatpush3.bf16.msra.mxu0 %v6304_v18  ;;  %v6349_v31 = vld [vmem:[%s7560_s4 + $0x58] sm:$0xff]  ;;  %v6354_v32 = vld [vmem:[%s7560_s4 + $0x50] sm:$0xff]  ;;  %v6357_v33 = vpack.c.bf16 %v4256_v27, %v4255_v26  ;;  %v5587_v36 = vpack.c.bf16 %v4210_v30, %v4209_v29  ;;  %v4211_v37 = vld [vmem:[%s7559_s3 + $0xc0] sm:$0xff]  ;;  %s6167_s27 = smul.u32 288, %s7565_s25  ;;  %s292_s10 = scalar_lea.vmem %s7562_s6, %s7565_s25 }
   0xf   : > { %517 = vperm.xlu1 %6179, %v6265_v6   ;;  %512 = vperm.xlu0 %6178, %v6270_v7   ;;  %v4257_v34 = vld [vmem:[%s7559_s3 + $0x230] sm:$0xff]  ;;  %v4258_v35 = vld [vmem:[%s7559_s3 + $0x238] sm:$0xff]  ;;  %v4212_v38 = vld [vmem:[%s7559_s3 + $0xc8] sm:$0xff]  ;;  %s295_s14 = scalar_lea.vmem %s7563_s7, %s7565_s25 }
  0x10   : > { %5708 = vmatprep.subr.bf16.mxu0 %v6329_v25  ;;  %v6377_v39 = vld [vmem:[%s7560_s4 + $0x68] sm:$0xff]  ;;  %v6382_v40 = vld [vmem:[%s7560_s4 + $0x60] sm:$0xff]  ;;  %v6385_v41 = vpack.c.bf16 %v4258_v35, %v4257_v34  ;;  %v5591_v45 = vpack.c.bf16 %v4212_v38, %v4211_v37  ;;  %v4213_v46 = vld [vmem:[%s7559_s3 + $0xd0] sm:$0xff]  ;;  %s6607_s11 = scalar_lea.vmem %s7556_s0, %s6167_s27  ;;  %s7445_s8 = scalar_lea.vmem %s7561_s5, %s6167_s27 }
  0x11   : > { %5582 = vmatpush3.bf16.msra.mxu1 %v5579_v17  ;;  %v4259_v42 = vld [vmem:[%s7559_s3 + $0x240] sm:$0xff]  ;;  %v4260_v43 = vld [vmem:[%s7559_s3 + $0x248] sm:$0xff]  ;;  %v4214_v47 = vld [vmem:[%s7559_s3 + $0xd8] sm:$0xff] }
  0x12   : > { %5584 = vmatprep.subr.bf16.mxu1 %v5583_v28  ;;  %5710 = vmatpush3.bf16.msra.mxu0 %v6329_v25  ;;  %v800_v44 = vld [vmem:[#allocation2 + $0x6] sm:$0xff]  ;;  %v6405_v48 = vld [vmem:[%s7560_s4 + $0x78] sm:$0xff]  ;;  %v6410_v49 = vld [vmem:[%s7560_s4 + $0x70] sm:$0xff]  ;;  %v6413_v50 = vpack.c.bf16 %v4260_v43, %v4259_v42  ;;  %v5595_v53 = vpack.c.bf16 %v4214_v47, %v4213_v46 }
  0x13   : > { %527 = vperm.xlu1 %6179, %v6277_v8   ;;  %522 = vperm.xlu0 %6178, %v6282_v9   ;;  %v4261_v51 = vld [vmem:[%s7559_s3 + $0x250] sm:$0xff]  ;;  %v4262_v52 = vld [vmem:[%s7559_s3 + $0x258] sm:$0xff]  ;;  %v4215_v54 = vld [vmem:[%s7559_s3 + $0xe0] sm:$0xff] }
  0x14   : > { %5712 = vmatprep.subr.bf16.mxu0 %v6357_v33  ;;  %4833 = vmatprep.mubr.f32.mxu1 %v800_v44  ;;  %v4216_v55 = vld [vmem:[%s7559_s3 + $0xe8] sm:$0xff]  ;;  %v6438_v57 = vld [vmem:[%s7560_s4 + $0x80] sm:$0xff]  ;;  %v6441_v58 = vpack.c.bf16 %v4262_v52, %v4261_v51  ;;  %v4217_v62 = vld [vmem:[%s7559_s3 + $0xf0] sm:$0xff] }
  0x15   : > { %5586 = vmatpush3.bf16.msra.mxu1 %v5583_v28  ;;  %v6433_v56 = vld [vmem:[%s7560_s4 + $0x88] sm:$0xff]  ;;  %v4263_v59 = vld [vmem:[%s7559_s3 + $0x260] sm:$0xff]  ;;  %v5599_v61 = vpack.c.bf16 %v4216_v55, %v4215_v54  ;;  %v4218_v63 = vld [vmem:[%s7559_s3 + $0xf8] sm:$0xff] }
  0x16   : > { %5588 = vmatprep.subr.bf16.mxu1 %v5587_v36  ;;  %5714 = vmatpush3.bf16.msra.mxu0 %v6357_v33  ;;  %v4264_v60 = vld [vmem:[%s7559_s3 + $0x268] sm:$0xff]  ;;  %v6461_v2 = vld [vmem:[%s7560_s4 + $0x98] sm:$0xff]  ;;  %v6466_v3 = vld [vmem:[%s7560_s4 + $0x90] sm:$0xff]  ;;  %v5603_v13 = vpack.c.bf16 %v4218_v63, %v4217_v62 }
  0x17   : > { %537 = vperm.xlu1 %6179, %v6318_v22   ;;  %532 = vperm.xlu0 %6178, %v6323_v23   ;;  %v6469_v10 = vpack.c.bf16 %v4264_v60, %v4263_v59  ;;  %v4265_v11 = vld [vmem:[%s7559_s3 + $0x270] sm:$0xff]  ;;  %v4266_v12 = vld [vmem:[%s7559_s3 + $0x278] sm:$0xff]  ;;  %v784_v14 = vld [vmem:[%s7559_s3] sm:$0xff] }
  0x18   : > { %5716 = vmatprep.subr.bf16.mxu0 %v6385_v41  ;;  %v785_v15 = vld [vmem:[%s7559_s3 + $0x8] sm:$0xff]  ;;  %v6494_v17 = vld [vmem:[%s7560_s4 + $0xa0] sm:$0xff]  ;;  %v6497_v19 = vpack.c.bf16 %v4266_v12, %v4265_v11  ;;  %v786_v26 = vld [vmem:[%s7559_s3 + $0x10] sm:$0xff] }
  0x19   : > { %5590 = vmatpush3.bf16.msra.mxu1 %v5587_v36  ;;  %v6489_v16 = vld [vmem:[%s7560_s4 + $0xa8] sm:$0xff]  ;;  %v4267_v20 = vld [vmem:[%s7559_s3 + $0x280] sm:$0xff]  ;;  %v5607_v24 = vpack.c.bf16 %v785_v15, %v784_v14  ;;  %v787_v27 = vld [vmem:[%s7559_s3 + $0x18] sm:$0xff] }
  0x1a   : > { %5592 = vmatprep.subr.bf16.mxu1 %v5591_v45  ;;  %5718 = vmatpush3.bf16.msra.mxu0 %v6385_v41  ;;  %v4268_v21 = vld [vmem:[%s7559_s3 + $0x288] sm:$0xff]  ;;  %v6517_v28 = vld [vmem:[%s7560_s4 + $0xb8] sm:$0xff]  ;;  %v6522_v29 = vld [vmem:[%s7560_s4 + $0xb0] sm:$0xff]  ;;  %v5611_v35 = vpack.c.bf16 %v787_v27, %v786_v26 }
  0x1b   : > { %547 = vperm.xlu1 %6179, %v6349_v31   ;;  %542 = vperm.xlu0 %6178, %v6354_v32   ;;  %v6525_v30 = vpack.c.bf16 %v4268_v21, %v4267_v20  ;;  %v801_v34 = vld [vmem:[#allocation2 + $0xe] sm:$0xff]  ;;  %v788_v36 = vld [vmem:[%s7559_s3 + $0x20] sm:$0xff]  ;;  %v6560_v46 = vld [vmem:[%s7560_s4 + $0xd8] sm:$0xff] }
  0x1c   : > { %5720 = vmatprep.subr.bf16.mxu0 %v6413_v50  ;;  %v789_v37 = vld [vmem:[%s7559_s3 + $0x28] sm:$0xff]  ;;  %v6544_v42 = vld [vmem:[%s7560_s4 + $0xc0] sm:$0xff]  ;;  %v790_v44 = vld [vmem:[%s7559_s3 + $0x30] sm:$0xff] }
  0x1d   : > { %5594 = vmatpush3.bf16.msra.mxu1 %v5591_v45  ;;  %v6539_v38 = vld [vmem:[%s7560_s4 + $0xc8] sm:$0xff]  ;;  %v5615_v43 = vpack.c.bf16 %v789_v37, %v788_v36  ;;  %v791_v45 = vld [vmem:[%s7559_s3 + $0x38] sm:$0xff]  ;;  %v6565_v47 = vld [vmem:[%s7560_s4 + $0xd0] sm:$0xff] }
  0x1e   : > { %5596 = vmatprep.subr.bf16.mxu1 %v5595_v53  ;;  %5722 = vmatpush3.bf16.msra.mxu0 %v6413_v50  ;;  %v5619_v51 = vpack.c.bf16 %v791_v45, %v790_v44  ;;  %v792_v52 = vld [vmem:[%s7559_s3 + $0x40] sm:$0xff]  ;;  %v6582_v54 = vld [vmem:[%s7560_s4 + $0xe8] sm:$0xff]  ;;  %v6595_v60 = vld [vmem:[%s7560_s4 + $0xf8] sm:$0xff] }
  0x1f   : > { %557 = vperm.xlu1 %6179, %v6377_v39   ;;  %552 = vperm.xlu0 %6178, %v6382_v40   ;;  %v6587_v55 = vld [vmem:[%s7560_s4 + $0xe0] sm:$0xff]  ;;  %v794_v62 = vld [vmem:[%s7559_s3 + $0x50] sm:$0xff]  ;;  %v795_v63 = vld [vmem:[%s7559_s3 + $0x58] sm:$0xff] }
  0x20   : > { %5724 = vmatprep.subr.bf16.mxu0 %v6441_v58  ;;  %v6618_v11 = vld [vmem:[%s7557_s1] ss:$0 sm:$0xff]  ;;  %v5627_v12 = vpack.c.bf16 %v795_v63, %v794_v62  ;;  %v6629_v21 = vld [vmem:[%s7560_s4 + $0x108] sm:$0xff]  ;;  %v330_v36 = vld [vmem:[%s6607_s11 + $0x110] sm:$0xff] }
  0x21   : > { %5598 = vmatpush3.bf16.msra.mxu1 %v5595_v53  ;;  %v793_v53 = vld [vmem:[%s7559_s3 + $0x48] sm:$0xff]  ;;  %v328_v14 = vld [vmem:[%s6607_s11 + $0x100] sm:$0xff]  ;;  %v6656_v44 = vld [vmem:[%s7560_s4 + $0x118] sm:$0xff] }
  0x22   : > { %5600 = vmatprep.subr.bf16.mxu1 %v5599_v61  ;;  %5726 = vmatpush3.bf16.msra.mxu0 %v6441_v58  ;;  %v5623_v59 = vpack.c.bf16 %v793_v53, %v792_v52  ;;  %v371_v20 = vmul.f32 %v6618_v11, %v328_v14  ;;  %v6639_v26 = vld [vmem:[%s7558_s2] ss:$0 sm:$0xff]  ;;  %v6661_v45 = vld [vmem:[%s7560_s4 + $0x110] sm:$0xff] }
  0x23   : > { %567 = vperm.xlu1 %6179, %v6405_v48   ;;  %562 = vperm.xlu0 %6178, %v6410_v49   ;;  %v796_v53 = vld [vmem:[%s7559_s3 + $0x60] sm:$0xff]  ;;  %v798_v63 = vld [vmem:[%s7559_s3 + $0x70] sm:$0xff] }
  0x24   : > { %5728 = vmatprep.subr.bf16.mxu0 %v6469_v10 }
  0x25   : > { %5602 = vmatpush3.bf16.msra.mxu1 %v5599_v61  ;;  %v6600_v61 = vld [vmem:[%s7560_s4 + $0xf0] sm:$0xff] }
  0x26   : > { %5604 = vmatprep.subr.bf16.mxu1 %v5603_v13  ;;  %5730 = vmatpush3.bf16.msra.mxu0 %v6469_v10 }
  0x27   : > { %577 = vperm.xlu1 %6179, %v6433_v56   ;;  %572 = vperm.xlu0 %6178, %v6438_v57  }
  0x28   : > { %5732 = vmatprep.subr.bf16.mxu0 %v6497_v19 }
  0x29   : > { %5606 = vmatpush3.bf16.msra.mxu1 %v5603_v13  ;;  %v329_v13 = vld [vmem:[%s6607_s11 + $0x108] sm:$0xff] }
  0x2a   : > { %5734 = vmatpush3.bf16.msra.mxu0 %v6497_v19  ;;  %5608 = vmatprep.subr.bf16.mxu1 %v5607_v24  ;;  %v372_v15 = vmul.f32 %v6618_v11, %v329_v13 }
  0x2b   : > { %587 = vperm.xlu1 %6179, %v6461_v2   ;;  %582 = vperm.xlu0 %6178, %v6466_v3  }
  0x2c   : > { %4834 = vmatmul.mubr.f32.vlgmr.msra.gmra.mrb[0].mxu1 %v801_v34  ;;  %5736 = vmatprep.subr.bf16.mxu0 %v6525_v30  ;;  %v6642_v27 = vadd.f32 %v6639_v26, %v372_v15  ;;  %v6645_v34 = vadd.f32 %v6639_v26, %v371_v20 }
  0x2d   : > { %5610 = vmatpush3.bf16.msra.mxu1 %v5607_v24  ;;  %v6634_v24 = vld [vmem:[%s7560_s4 + $0x100] sm:$0xff] }
  0x2e   : > { %5612 = vmatprep.subr.bf16.mxu1 %v5611_v35 }
  0x2f   : > { %597 = vperm.xlu1 %6179, %v6489_v16   ;;  %592 = vperm.xlu0 %6178, %v6494_v17  }
  0x31   : > { %5614 = vmatpush3.bf16.msra.mxu1 %v5611_v35  ;;  %v331_v35 = vld [vmem:[%s6607_s11 + $0x118] sm:$0xff] }
  0x32   : > { %5616 = vmatprep.subr.bf16.mxu1 %v5615_v43  ;;  %v374_v37 = vmul.f32 %v6618_v11, %v331_v35 }
  0x33   : > { %607 = vperm.xlu1 %6179, %v6517_v28   ;;  %602 = vperm.xlu0 %6178, %v6522_v29  }
  0x35   : > { %5618 = vmatpush3.bf16.msra.mxu1 %v5615_v43  ;;  %v373_v43 = vmul.f32 %v6618_v11, %v330_v36 }
  0x36   : > { %5620 = vmatprep.subr.bf16.mxu1 %v5619_v51 }
  0x37   : > { %617 = vperm.xlu1 %6179, %v6539_v38   ;;  %612 = vperm.xlu0 %6178, %v6544_v42   ;;  %v6667_v52 = vadd.f32 %v6639_v26, %v373_v43  ;;  %v304_v43 = vld [vmem:[%s6607_s11 + $0x40] sm:$0xff] }
  0x39   : > { %5622 = vmatpush3.bf16.msra.mxu1 %v5619_v51  ;;  %v6664_v51 = vadd.f32 %v6639_v26, %v374_v37  ;;  %v305_v37 = vld [vmem:[%s6607_s11 + $0x48] sm:$0xff] }
  0x3a   : > { %5624 = vmatprep.subr.bf16.mxu1 %v5623_v59 }
  0x3b   : > { %627 = vperm.xlu1 %6179, %v6560_v46   ;;  %622 = vperm.xlu0 %6178, %v6565_v47  }
  0x3d   : > { %5626 = vmatpush3.bf16.msra.mxu1 %v5623_v59  ;;  %v797_v59 = vld [vmem:[%s7559_s3 + $0x68] sm:$0xff] }
  0x3e   : > { %5628 = vmatprep.subr.bf16.mxu1 %v5627_v12  ;;  %v5631_v62 = vpack.c.bf16 %v797_v59, %v796_v53  ;;  %v4269_v53 = vld [vmem:[%s7559_s3 + $0x290] sm:$0xff] }
  0x3f   : > { %637 = vperm.xlu1 %6179, %v6582_v54   ;;  %632 = vperm.xlu0 %6178, %v6587_v55  }
  0x41   : > { %5630 = vmatpush3.bf16.msra.mxu1 %v5627_v12  ;;  %v799_v12 = vld [vmem:[%s7559_s3 + $0x78] sm:$0xff] }
  0x42   : > { %5632 = vmatprep.subr.bf16.mxu1 %v5631_v62  ;;  %v5635_v13 = vpack.c.bf16 %v799_v12, %v798_v63  ;;  %v348_v12 = vmul.f32 %v6618_v11, %v305_v37 }
  0x43   : > { %647 = vperm.xlu1 %6179, %v6595_v60   ;;  %642 = vperm.xlu0 %6178, %v6600_v61  }
  0x45   : > { %5634 = vmatpush3.bf16.msra.mxu1 %v5631_v62 }
  0x46   : > { %5636 = vmatprep.subr.bf16.mxu1 %v5635_v13 }
  0x47   : > { %657 = vperm.xlu1 %6179, %v6629_v21   ;;  %652 = vperm.xlu0 %6178, %v6634_v24  }
  0x49   : > { %5638 = vmatpush3.bf16.msra.mxu1 %v5635_v13  ;;  %v347_v13 = vmul.f32 %v6618_v11, %v304_v43 }
  0x4b   : > { %667 = vperm.xlu1 %6179, %v6656_v44   ;;  %662 = vperm.xlu0 %6178, %v6661_v45  }
  0x4f   : > { %3760 = vperm.xlu1 %6179, %v6258_v5   ;;  %3755 = vperm.xlu0 %6178, %v6246_v1   ;;  %v4219_v1 = vld [vmem:[%s7559_s3 + $0x100] sm:$0xff]  ;;  %v4220_v5 = vld [vmem:[%s7559_s3 + $0x108] sm:$0xff] }
  0x53   : > { %3770 = vperm.xlu1 %6179, %v6253_v4   ;;  %3765 = vperm.xlu0 %6178, %v6241_v0   ;;  %v6697_v0 = vpack.c.bf16 %v4220_v5, %v4219_v1  ;;  %v298_v4 = vld [vmem:[%s6607_s11 + $0x10] sm:$0xff] }
  0x55   : > { %5640 = vmatprep.subr.bf16.mxu1 %v6697_v0 }
  0x57   : > { %3780 = vperm.xlu1 %6179, %v6265_v6   ;;  %3775 = vperm.xlu0 %6178, %v6270_v7   ;;  %v296_v6 = vld [vmem:[%s6607_s11] sm:$0xff]  ;;  %v341_v7 = vmul.f32 %v6618_v11, %v298_v4 }
  0x5b   : > { %3790 = vperm.xlu1 %6179, %v6277_v8   ;;  %3785 = vperm.xlu0 %6178, %v6282_v9   ;;  %v339_v8 = vmul.f32 %v6618_v11, %v296_v6  ;;  %v299_v9 = vld [vmem:[%s6607_s11 + $0x18] sm:$0xff] }
  0x5f   : > { %3800 = vperm.xlu1 %6179, %v6318_v22   ;;  %3795 = vperm.xlu0 %6178, %v6323_v23   ;;  %v297_v22 = vld [vmem:[%s6607_s11 + $0x8] sm:$0xff]  ;;  %v342_v23 = vmul.f32 %v6618_v11, %v299_v9 }
  0x63   : > { %3810 = vperm.xlu1 %6179, %v6349_v31   ;;  %3805 = vperm.xlu0 %6178, %v6354_v32   ;;  %v384_v31 = vadd.f32 %v6639_v26, %v341_v7  ;;  %v382_v32 = vadd.f32 %v6639_v26, %v339_v8  ;;  %v307_v7 = vld [vmem:[%s6607_s11 + $0x58] sm:$0xff]  ;;  %v306_v8 = vld [vmem:[%s6607_s11 + $0x50] sm:$0xff] }
  0x67   : > { %3820 = vperm.xlu1 %6179, %v6377_v39   ;;  %3815 = vperm.xlu0 %6178, %v6382_v40   ;;  %v340_v39 = vmul.f32 %v6618_v11, %v297_v22  ;;  %v301_v40 = vld [vmem:[%s6607_s11 + $0x28] sm:$0xff]  ;;  %v4271_v22 = vld [vmem:[%s7559_s3 + $0x2a0] sm:$0xff] }
  0x6b   : > { %3830 = vperm.xlu1 %6179, %v6405_v48   ;;  %3825 = vperm.xlu0 %6178, %v6410_v49   ;;  %v300_v48 = vld [vmem:[%s6607_s11 + $0x20] sm:$0xff]  ;;  %v385_v49 = vadd.f32 %v6639_v26, %v342_v23 }
  0x6f   : > { %3840 = vperm.xlu1 %6179, %v6433_v56   ;;  %3835 = vperm.xlu0 %6178, %v6438_v57   ;;  %v344_v56 = vmul.f32 %v6618_v11, %v301_v40  ;;  %v343_v57 = vmul.f32 %v6618_v11, %v300_v48  ;;  %v349_v40 = vmul.f32 %v6618_v11, %v306_v8 }
  0x71   : > { %v387_v14 = vadd.f32 %v6639_v26, %v344_v56  ;;  %v386_v15 = vadd.f32 %v6639_v26, %v343_v57  ;;  %v390_v57 = vadd.f32 %v6639_v26, %v347_v13 }
  0x73   : > { %3850 = vperm.xlu1 %6179, %v6461_v2   ;;  %3845 = vperm.xlu0 %6178, %v6466_v3   ;;  %v420_v2 = vmax.f32 %v384_v31, 0.0  ;;  %v418_v3 = vmax.f32 %v382_v32, 0.0  ;;  %v423_v62 = vmax.f32 %v387_v14, 0.0  ;;  %v422_v4 = vmax.f32 %v386_v15, 0.0 }
  0x74   : > { %v391_v32 = vadd.f32 %v6639_v26, %v348_v12 }
  0x77   : > { %3860 = vperm.xlu1 %6179, %v6489_v16   ;;  %3855 = vperm.xlu0 %6178, %v6494_v17   ;;  %v383_v16 = vadd.f32 %v6639_v26, %v340_v39  ;;  %v303_v17 = vld [vmem:[%s6607_s11 + $0x38] sm:$0xff]  ;;  %v350_v39 = vmul.f32 %v6618_v11, %v307_v7 }
  0x78   : > { %v346_v20 = vmul.f32 %v6618_v11, %v303_v17  ;;  %v4273_v17 = vld [vmem:[%s7559_s3 + $0x2b0] sm:$0xff] }
  0x7a   : > { %v389_v63 = vadd.f32 %v6639_v26, %v346_v20 }
  0x7b   : > { %3870 = vperm.xlu1 %6179, %v6517_v28   ;;  %3865 = vperm.xlu0 %6178, %v6522_v29   ;;  %v302_v28 = vld [vmem:[%s6607_s11 + $0x30] sm:$0xff] }
  0x7c   : > { %v345_v36 = vmul.f32 %v6618_v11, %v302_v28  ;;  %v425_v31 = vmax.f32 %v389_v63, 0.0 }
  0x7e   : > { %v388_v6 = vadd.f32 %v6639_v26, %v345_v36  ;;  %v310_v36 = vld [vmem:[%s6607_s11 + $0x70] sm:$0xff] }
  0x7f   : > { %3880 = vperm.xlu1 %6179, %v6539_v38   ;;  %3875 = vperm.xlu0 %6178, %v6544_v42   ;;  %v421_v42 = vmax.f32 %v385_v49, 0.0  ;;  %v353_v12 = vmul.f32 %v6618_v11, %v310_v36 }
  0x80   : > { %v424_v56 = vmax.f32 %v388_v6, 0.0  ;;  %v313_v6 = vld [vmem:[%s6607_s11 + $0x88] sm:$0xff] }
  0x83   : > { %3890 = vperm.xlu1 %6179, %v6560_v46   ;;  %3885 = vperm.xlu0 %6178, %v6565_v47   ;;  %v419_v47 = vmax.f32 %v383_v16, 0.0  ;;  %v308_v16 = vld [vmem:[%s6607_s11 + $0x60] sm:$0xff] }
  0x86   : > { %v503_v29 = vpop.permute.xlu1 %502  ;;  %v493_v38 = vpop.permute.xlu0 %492 }
  0x87   : > { %v672_v46 = vmul.f32 %v503_v29, %v420_v2  ;;  %v670_v35 = vmul.f32 %v493_v38, %v418_v3  ;;  %3900 = vperm.xlu1 %6179, %v6582_v54   ;;  %3895 = vperm.xlu0 %6178, %v6587_v55   ;;  %v4270_v54 = vld [vmem:[%s7559_s3 + $0x298] sm:$0xff]  ;;  %v309_v2 = vld [vmem:[%s6607_s11 + $0x68] sm:$0xff]  ;;  %v427_v29 = vmax.f32 %v391_v32, 0.0  ;;  %v393_v38 = vadd.f32 %v6639_v26, %v350_v39 }
  0x88   : > { %v5739_v9 = vpack.c.bf16 %v4270_v54, %v4269_v53  ;;  %v352_v14 = vmul.f32 %v6618_v11, %v309_v2 }
  0x89   : > { %714 = vst [vmem:[#allocation2 + $0x28] sm:$0xff] %v672_v46  ;;  %712 = vst [vmem:[#allocation2 + $0x18] sm:$0xff] %v670_v35  ;;  %5177 = vmatprep.mubr.f32.mxu0 %v670_v35  ;;  %v351_v35 = vmul.f32 %v6618_v11, %v308_v16 }
  0x8a   : > { %v508_v59 = vpop.permute.xlu1 %507  ;;  %v498_v55 = vpop.permute.xlu0 %497 }
  0x8b   : > { %v673_v1 = vmul.f32 %v508_v59, %v421_v42  ;;  %v671_v5 = vmul.f32 %v498_v55, %v419_v47  ;;  %3910 = vperm.xlu1 %6179, %v6595_v60   ;;  %3905 = vperm.xlu0 %6178, %v6600_v61   ;;  %v4272_v60 = vld [vmem:[%s7559_s3 + $0x2a8] sm:$0xff]  ;;  %v392_v42 = vadd.f32 %v6639_v26, %v349_v40  ;;  %v311_v47 = vld [vmem:[%s6607_s11 + $0x78] sm:$0xff]  ;;  %v429_v55 = vmax.f32 %v393_v38, 0.0 }
  0x8c   : > { %v354_v63 = vmul.f32 %v6618_v11, %v311_v47  ;;  %v396_v40 = vadd.f32 %v6639_v26, %v353_v12 }
  0x8d   : > { %715 = vst [vmem:[#allocation2 + $0x30] sm:$0xff] %v673_v1  ;;  %713 = vst [vmem:[#allocation2 + $0x20] sm:$0xff] %v671_v5  ;;  %5178 = vmatmul.mubr.f32.vlgmr.msra.gmra.mrb[0].mxu0 %v671_v5  ;;  %v428_v5 = vmax.f32 %v392_v42, 0.0 }
  0x8e   : > { %v518_v23 = vpop.permute.xlu1 %517  ;;  %v513_v61 = vpop.permute.xlu0 %512  ;;  %5738 = vmatpush3.bf16.msra.mxu0 %v6525_v30  ;;  %5180 = vmatprep.mubr.f32.mxu0 %v672_v46  ;;  %v5743_v30 = vpack.c.bf16 %v4272_v60, %v4271_v22  ;;  %v426_v46 = vmax.f32 %v390_v57, 0.0  ;;  %v4277_v60 = vld [vmem:[%s7559_s3 + $0x2d0] sm:$0xff]  ;;  %v397_v39 = vadd.f32 %v6639_v26, %v354_v63 }
  0x8f   : > { %v675_v48 = vmul.f32 %v518_v23, %v423_v62  ;;  %v674_v49 = vmul.f32 %v513_v61, %v422_v4  ;;  %3920 = vperm.xlu1 %6179, %v6629_v21   ;;  %3915 = vperm.xlu0 %6178, %v6634_v24   ;;  %v4274_v21 = vld [vmem:[%s7559_s3 + $0x2b8] sm:$0xff]  ;;  %v395_v62 = vadd.f32 %v6639_v26, %v352_v14  ;;  %v432_v14 = vmax.f32 %v396_v40, 0.0 }
  0x90   : > { %v802_v3 = vld [vmem:[#allocation2 + $0x16] sm:$0xff]  ;;  %5740 = vmatprep.subr.bf16.mxu0 %v5739_v9  ;;  %v5747_v53 = vpack.c.bf16 %v4274_v21, %v4273_v17  ;;  %v394_v4 = vadd.f32 %v6639_v26, %v351_v35  ;;  %v433_v42 = vmax.f32 %v397_v39, 0.0 }
  0x91   : > { %717 = vst [vmem:[#allocation2 + $0x40] sm:$0xff] %v675_v48  ;;  %716 = vst [vmem:[#allocation2 + $0x38] sm:$0xff] %v674_v49  ;;  %4836 = vmatprep.mubr.f32.mxu1 %v802_v3  ;;  %5181 = vmatmul.mubr.f32.gmra.mrb[2].mxu0 %v673_v1  ;;  %v4278_v23 = vld [vmem:[%s7559_s3 + $0x2d8] sm:$0xff]  ;;  %v431_v32 = vmax.f32 %v395_v62, 0.0  ;;  %v314_v17 = vld [vmem:[%s6607_s11 + $0x90] sm:$0xff] }
  0x92   : > { %v528_v24 = vpop.permute.xlu1 %527  ;;  %v523_v28 = vpop.permute.xlu0 %522  ;;  %5183 = vmatprep.mubr.f32.mxu0 %v674_v49  ;;  %5742 = vmatpush3.bf16.msra.mxu0 %v5739_v9  ;;  %v312_v9 = vld [vmem:[%s6607_s11 + $0x80] sm:$0xff]  ;;  %v430_v57 = vmax.f32 %v394_v4, 0.0  ;;  %v315_v3 = vld [vmem:[%s6607_s11 + $0x98] sm:$0xff]  ;;  %v5755_v21 = vpack.c.bf16 %v4278_v23, %v4277_v60  ;;  %v357_v36 = vmul.f32 %v6618_v11, %v314_v17 }
  0x93   : > { %v677_v15 = vmul.f32 %v528_v24, %v425_v31  ;;  %v676_v20 = vmul.f32 %v523_v28, %v424_v56  ;;  %3930 = vperm.xlu1 %6179, %v6656_v44   ;;  %3925 = vperm.xlu0 %6178, %v6661_v45   ;;  %v4275_v44 = vld [vmem:[%s7559_s3 + $0x2c0] sm:$0xff]  ;;  %v4276_v45 = vld [vmem:[%s7559_s3 + $0x2c8] sm:$0xff]  ;;  %v355_v2 = vmul.f32 %v6618_v11, %v312_v9  ;;  %v318_v9 = vld [vmem:[%s6607_s11 + $0xb0] sm:$0xff] }
  0x94   : > { %v803_v37 = vld [vmem:[#allocation2 + $0x1e] sm:$0xff]  ;;  %v804_v43 = vld [vmem:[#allocation2 + $0x26] sm:$0xff]  ;;  %5744 = vmatprep.subr.bf16.mxu0 %v5743_v30  ;;  %v805_v7 = vld [vmem:[#allocation2 + $0x2e] sm:$0xff]  ;;  %v5751_v22 = vpack.c.bf16 %v4276_v45, %v4275_v44 }
  0x95   : > { %719 = vst [vmem:[#allocation2 + $0x50] sm:$0xff] %v677_v15  ;;  %718 = vst [vmem:[#allocation2 + $0x48] sm:$0xff] %v676_v20  ;;  %4837 = vmatmul.mubr.f32.gmra.mrb[2].mxu1 %v803_v37  ;;  %5184 = vmatmul.mubr.f32.gmra.mrb[4].mxu0 %v675_v48  ;;  %v356_v48 = vmul.f32 %v6618_v11, %v313_v6  ;;  %v4279_v24 = vld [vmem:[%s7559_s3 + $0x2e0] sm:$0xff]  ;;  %v4280_v28 = vld [vmem:[%s7559_s3 + $0x2e8] sm:$0xff]  ;;  %v398_v47 = vadd.f32 %v6639_v26, %v355_v2 }
  0x96   : > { %v538_v54 = vpop.permute.xlu1 %537  ;;  %v533_v59 = vpop.permute.xlu0 %532  ;;  %4839 = vmatprep.mubr.f32.mxu1 %v804_v43  ;;  %5186 = vmatprep.mubr.f32.mxu0 %v676_v20  ;;  %v358_v20 = vmul.f32 %v6618_v11, %v315_v3  ;;  %v317_v37 = vld [vmem:[%s6607_s11 + $0xa8] sm:$0xff]  ;;  %v316_v43 = vld [vmem:[%s6607_s11 + $0xa0] sm:$0xff]  ;;  %v5759_v45 = vpack.c.bf16 %v4280_v28, %v4279_v24 }
  0x97   : > { %v679_v13 = vmul.f32 %v538_v54, %v427_v29  ;;  %v678_v1 = vmul.f32 %v533_v59, %v426_v46  ;;  %5746 = vmatpush3.bf16.msra.mxu0 %v5743_v30  ;;  %v4281_v54 = vld [vmem:[%s7559_s3 + $0x2f0] sm:$0xff]  ;;  %v4282_v59 = vld [vmem:[%s7559_s3 + $0x2f8] sm:$0xff]  ;;  %v434_v6 = vmax.f32 %v398_v47, 0.0  ;;  %v320_v24 = vld [vmem:[%s6607_s11 + $0xc0] sm:$0xff] }
  0x98   : > { %v806_v8 = vld [vmem:[#allocation2 + $0x36] sm:$0xff]  ;;  %5748 = vmatprep.subr.bf16.mxu0 %v5747_v53  ;;  %v807_v30 = vld [vmem:[#allocation2 + $0x3e] sm:$0xff]  ;;  %v401_v12 = vadd.f32 %v6639_v26, %v358_v20  ;;  %v5763_v23 = vpack.c.bf16 %v4282_v59, %v4281_v54 }
  0x99   : > { %721 = vst [vmem:[#allocation2 + $0x60] sm:$0xff] %v679_v13  ;;  %720 = vst [vmem:[#allocation2 + $0x58] sm:$0xff] %v678_v1  ;;  %4840 = vmatmul.mubr.f32.gmra.mrb[4].mxu1 %v805_v7  ;;  %5187 = vmatmul.mubr.f32.gmra.mrb[6].mxu0 %v677_v15  ;;  %v399_v15 = vadd.f32 %v6639_v26, %v356_v48  ;;  %v400_v7 = vadd.f32 %v6639_v26, %v357_v36  ;;  %v4286_v54 = vld [vmem:[%s7559_s3 + $0x318] sm:$0xff] }
  0x9a   : > { %v548_v61 = vpop.permute.xlu1 %547  ;;  %v543_v31 = vpop.permute.xlu0 %542  ;;  %4842 = vmatprep.mubr.f32.mxu1 %v806_v8  ;;  %5189 = vmatprep.mubr.f32.mxu0 %v678_v1  ;;  %v359_v1 = vmul.f32 %v6618_v11, %v316_v43  ;;  %v319_v8 = vld [vmem:[%s6607_s11 + $0xb8] sm:$0xff]  ;;  %v437_v40 = vmax.f32 %v401_v12, 0.0  ;;  %v322_v43 = vld [vmem:[%s6607_s11 + $0xd0] sm:$0xff] }
  0x9b   : > { %v681_v49 = vmul.f32 %v548_v61, %v429_v55  ;;  %v680_v56 = vmul.f32 %v543_v31, %v428_v5  ;;  %5750 = vmatpush3.bf16.msra.mxu0 %v5747_v53  ;;  %v435_v63 = vmax.f32 %v399_v15, 0.0  ;;  %v4283_v61 = vld [vmem:[%s7559_s3 + $0x300] sm:$0xff]  ;;  %v4284_v31 = vld [vmem:[%s7559_s3 + $0x308] sm:$0xff]  ;;  %v436_v3 = vmax.f32 %v400_v7, 0.0 }
  0x9c   : > { %v808_v16 = vld [vmem:[#allocation2 + $0x46] sm:$0xff]  ;;  %5752 = vmatprep.subr.bf16.mxu0 %v5751_v22  ;;  %v809_v53 = vld [vmem:[#allocation2 + $0x4e] sm:$0xff]  ;;  %v5767_v28 = vpack.c.bf16 %v4284_v31, %v4283_v61  ;;  %v2345_v59 = vld [vmem:[#allocation2 + $0x19] sm:$0xff] }
  0x9d   : > { %723 = vst [vmem:[#allocation2 + $0x70] sm:$0xff] %v681_v49  ;;  %722 = vst [vmem:[#allocation2 + $0x68] sm:$0xff] %v680_v56  ;;  %4843 = vmatmul.mubr.f32.gmra.mrb[6].mxu1 %v807_v30  ;;  %5190 = vmatmul.mubr.f32.gmra.mrb[8].mxu0 %v679_v13  ;;  %v360_v13 = vmul.f32 %v6618_v11, %v317_v37  ;;  %v402_v30 = vadd.f32 %v6639_v26, %v359_v1  ;;  %v2346_v61 = vld [vmem:[#allocation2 + $0x21] sm:$0xff] }
  0x9e   : > { %v558_v29 = vpop.permute.xlu1 %557  ;;  %v553_v38 = vpop.permute.xlu0 %552  ;;  %4845 = vmatprep.mubr.f32.mxu1 %v808_v16  ;;  %5192 = vmatprep.mubr.f32.mxu0 %v680_v56  ;;  %v361_v56 = vmul.f32 %v6618_v11, %v318_v9  ;;  %v321_v16 = vld [vmem:[%s6607_s11 + $0xc8] sm:$0xff]  ;;  %v363_v37 = vmul.f32 %v6618_v11, %v320_v24  ;;  %v324_v9 = vld [vmem:[%s6607_s11 + $0xe0] sm:$0xff]  ;;  %v326_v24 = vld [vmem:[%s6607_s11 + $0xf0] sm:$0xff] }
  0x9f   : > { %v683_v46 = vmul.f32 %v558_v29, %v431_v32  ;;  %v682_v35 = vmul.f32 %v553_v38, %v430_v57  ;;  %5754 = vmatpush3.bf16.msra.mxu0 %v5751_v22  ;;  %v403_v48 = vadd.f32 %v6639_v26, %v360_v13  ;;  %v364_v20 = vmul.f32 %v6618_v11, %v321_v16 }
  0xa0   : > { %v810_v44 = vld [vmem:[#allocation2 + $0x56] sm:$0xff]  ;;  %5756 = vmatprep.subr.bf16.mxu0 %v5755_v21  ;;  %v811_v22 = vld [vmem:[#allocation2 + $0x5e] sm:$0xff]  ;;  %v404_v15 = vadd.f32 %v6639_v26, %v361_v56  ;;  %v438_v36 = vmax.f32 %v402_v30, 0.0  ;;  %v406_v7 = vadd.f32 %v6639_v26, %v363_v37  ;;  %v6875_v56 = vld [vmem:[#allocation2 + $0x29] sm:$0xff] }
  0xa1   : > { %725 = vst [vmem:[#allocation2 + $0x80] sm:$0xff] %v683_v46  ;;  %724 = vst [vmem:[#allocation2 + $0x78] sm:$0xff] %v682_v35  ;;  %4846 = vmatmul.mubr.f32.gmra.mrb[8].mxu1 %v809_v53  ;;  %5193 = vmatmul.mubr.f32.gmra.mrb[10].mxu0 %v681_v49  ;;  %v362_v49 = vmul.f32 %v6618_v11, %v319_v8  ;;  %v4285_v53 = vld [vmem:[%s7559_s3 + $0x310] sm:$0xff]  ;;  %v407_v1 = vadd.f32 %v6639_v26, %v364_v20  ;;  %v325_v8 = vld [vmem:[%s6607_s11 + $0xe8] sm:$0xff] }
  0xa2   : > { %v568_v55 = vpop.permute.xlu1 %567  ;;  %v563_v62 = vpop.permute.xlu0 %562  ;;  %4848 = vmatprep.mubr.f32.mxu1 %v810_v44  ;;  %5195 = vmatprep.mubr.f32.mxu0 %v682_v35  ;;  %v440_v13 = vmax.f32 %v404_v15, 0.0  ;;  %v4289_v15 = vld [vmem:[%s7559_s3 + $0x330] sm:$0xff]  ;;  %v4290_v20 = vld [vmem:[%s7559_s3 + $0x338] sm:$0xff] }
  0xa3   : > { %v685_v5 = vmul.f32 %v568_v55, %v433_v42  ;;  %v684_v4 = vmul.f32 %v563_v62, %v432_v14  ;;  %5758 = vmatpush3.bf16.msra.mxu0 %v5755_v21  ;;  %v439_v42 = vmax.f32 %v403_v48, 0.0  ;;  %v405_v14 = vadd.f32 %v6639_v26, %v362_v49 }
  0xa4   : > { %v812_v60 = vld [vmem:[#allocation2 + $0x66] sm:$0xff]  ;;  %5760 = vmatprep.subr.bf16.mxu0 %v5759_v45  ;;  %v813_v17 = vld [vmem:[#allocation2 + $0x6e] sm:$0xff]  ;;  %v443_v16 = vmax.f32 %v407_v1, 0.0 }
  0xa5   : > { %727 = vst [vmem:[#allocation2 + $0x90] sm:$0xff] %v685_v5  ;;  %726 = vst [vmem:[#allocation2 + $0x88] sm:$0xff] %v684_v4  ;;  %4849 = vmatmul.mubr.f32.gmra.mrb[10].mxu1 %v811_v22  ;;  %5196 = vmatmul.mubr.f32.gmra.mrb[12].mxu0 %v683_v46  ;;  %v323_v46 = vld [vmem:[%s6607_s11 + $0xd8] sm:$0xff]  ;;  %v441_v12 = vmax.f32 %v405_v14, 0.0  ;;  %v5771_v22 = vpack.c.bf16 %v4286_v54, %v4285_v53  ;;  %v369_v54 = vmul.f32 %v6618_v11, %v326_v24  ;;  %v6927_v24 = vld [vmem:[#allocation2 + $0x69] sm:$0xff] }
  0xa6   : > { %v578_v32 = vpop.permute.xlu1 %577  ;;  %v573_v39 = vpop.permute.xlu0 %572  ;;  %4851 = vmatprep.mubr.f32.mxu1 %v812_v60  ;;  %5198 = vmatprep.mubr.f32.mxu0 %v684_v4  ;;  %v366_v55 = vmul.f32 %v6618_v11, %v323_v46  ;;  %v6885_v14 = vld [vmem:[#allocation2 + $0x39] sm:$0xff] }
  0xa7   : > { %v687_v57 = vmul.f32 %v578_v32, %v435_v63  ;;  %v686_v2 = vmul.f32 %v573_v39, %v434_v6  ;;  %5762 = vmatpush3.bf16.msra.mxu0 %v5759_v45  ;;  %v4287_v32 = vld [vmem:[%s7559_s3 + $0x320] sm:$0xff]  ;;  %v4288_v39 = vld [vmem:[%s7559_s3 + $0x328] sm:$0xff] }
  0xa8   : > { %v814_v21 = vld [vmem:[#allocation2 + $0x76] sm:$0xff]  ;;  %5764 = vmatprep.subr.bf16.mxu0 %v5763_v23  ;;  %v815_v44 = vld [vmem:[#allocation2 + $0x7e] sm:$0xff]  ;;  %v409_v31 = vadd.f32 %v6639_v26, %v366_v55 }
  0xa9   : > { %729 = vst [vmem:[#allocation2 + $0xa0] sm:$0xff] %v687_v57  ;;  %728 = vst [vmem:[#allocation2 + $0x98] sm:$0xff] %v686_v2  ;;  %4852 = vmatmul.mubr.f32.gmra.mrb[12].mxu1 %v813_v17  ;;  %5199 = vmatmul.mubr.f32.gmra.mrb[14].mxu0 %v685_v5  ;;  %v365_v5 = vmul.f32 %v6618_v11, %v322_v43  ;;  %v442_v17 = vmax.f32 %v406_v7, 0.0 }
  0xaa   : > { %v588_v29 = vpop.permute.xlu1 %587  ;;  %v583_v38 = vpop.permute.xlu0 %582  ;;  %4854 = vmatprep.mubr.f32.mxu1 %v814_v21  ;;  %5201 = vmatprep.mubr.f32.mxu0 %v686_v2  ;;  %v367_v2 = vmul.f32 %v6618_v11, %v324_v9  ;;  %v327_v21 = vld [vmem:[%s6607_s11 + $0xf8] sm:$0xff] }
  0xab   : > { %v689_v35 = vmul.f32 %v588_v29, %v437_v40  ;;  %v688_v47 = vmul.f32 %v583_v38, %v436_v3  ;;  %5766 = vmatpush3.bf16.msra.mxu0 %v5763_v23  ;;  %v408_v49 = vadd.f32 %v6639_v26, %v365_v5 }
  0xac   : > { %v816_v45 = vld [vmem:[#allocation2 + $0x86] sm:$0xff]  ;;  %5768 = vmatprep.subr.bf16.mxu0 %v5767_v28  ;;  %v817_v60 = vld [vmem:[#allocation2 + $0x8e] sm:$0xff]  ;;  %v410_v43 = vadd.f32 %v6639_v26, %v367_v2 }
  0xad   : > { %731 = vst [vmem:[#allocation2 + $0xb0] sm:$0xff] %v689_v35  ;;  %730 = vst [vmem:[#allocation2 + $0xa8] sm:$0xff] %v688_v47  ;;  %4855 = vmatmul.mubr.f32.gmra.mrb[14].mxu1 %v815_v44  ;;  %5202 = vmatmul.mubr.f32.gmra.mrb[16].mxu0 %v687_v57  ;;  %v368_v57 = vmul.f32 %v6618_v11, %v325_v8  ;;  %v445_v47 = vmax.f32 %v409_v31, 0.0 }
  0xae   : > { %v598_v62 = vpop.permute.xlu1 %597  ;;  %v593_v63 = vpop.permute.xlu0 %592  ;;  %4857 = vmatprep.mubr.f32.mxu1 %v816_v45  ;;  %5263 = vmatprep.mubr.f32.mxu0 %v2345_v59  ;;  %v370_v45 = vmul.f32 %v6618_v11, %v327_v21  ;;  %v4292_v11 = vld [vmem:[%s7559_s3 + $0x348] sm:$0xff] }
  0xaf   : > { %v691_v4 = vmul.f32 %v598_v62, %v439_v42  ;;  %v690_v6 = vmul.f32 %v593_v63, %v438_v36  ;;  %v5775_v42 = vpack.c.bf16 %v4288_v39, %v4287_v32  ;;  %v444_v36 = vmax.f32 %v408_v49, 0.0  ;;  %v6898_v62 = vld [vmem:[#allocation2 + $0x41] sm:$0xff]  ;;  %v6915_v32 = vld [vmem:[#allocation2 + $0x59] sm:$0xff]  ;;  %v4293_v39 = vld [vmem:[%s7559_s3 + $0x350] sm:$0xff] }
  0xb0   : > { %v818_v23 = vld [vmem:[#allocation2 + $0x96] sm:$0xff]  ;;  %v819_v29 = vld [vmem:[#allocation2 + $0x9e] sm:$0xff]  ;;  %v411_v37 = vadd.f32 %v6639_v26, %v368_v57  ;;  %v5779_v63 = vpack.c.bf16 %v4290_v20, %v4289_v15  ;;  %v413_v9 = vadd.f32 %v6639_v26, %v370_v45 }
  0xb1   : > { %733 = vst [vmem:[#allocation2 + $0xc0] sm:$0xff] %v691_v4  ;;  %732 = vst [vmem:[#allocation2 + $0xb8] sm:$0xff] %v690_v6  ;;  %4858 = vmatmul.mubr.f32.gmra.mrb[16].mxu1 %v817_v60  ;;  %5264 = vmatmul.mubr.f32.vlgmr.msra.gmra.mrb[0].mxu0 %v2346_v61  ;;  %v446_v6 = vmax.f32 %v410_v43, 0.0  ;;  %v6912_v61 = vld [vmem:[#allocation2 + $0x51] sm:$0xff] }
  0xb2   : > { %v608_v40 = vpop.permute.xlu1 %607  ;;  %v603_v48 = vpop.permute.xlu0 %602  ;;  %4860 = vmatprep.mubr.f32.mxu1 %v818_v23  ;;  %5770 = vmatpush3.bf16.msra.mxu0 %v5767_v28  ;;  %v6882_v28 = vld [vmem:[#allocation2 + $0x31] sm:$0xff]  ;;  %v447_v4 = vmax.f32 %v411_v37, 0.0  ;;  %v449_v2 = vmax.f32 %v413_v9, 0.0 }
  0xb3   : > { %v693_v3 = vmul.f32 %v608_v40, %v441_v12  ;;  %v692_v30 = vmul.f32 %v603_v48, %v440_v13  ;;  %5266 = vmatprep.mubr.f32.mxu0 %v6875_v56  ;;  %5772 = vmatprep.subr.bf16.mxu0 %v5771_v22  ;;  %v6901_v12 = vld [vmem:[#allocation2 + $0x49] sm:$0xff]  ;;  %v4291_v13 = vld [vmem:[%s7559_s3 + $0x340] sm:$0xff]  ;;  %v6938_v43 = vld [vmem:[#allocation2 + $0x71] sm:$0xff] }
  0xb4   : > { %v820_v38 = vld [vmem:[#allocation2 + $0xa6] sm:$0xff]  ;;  %v821_v59 = vld [vmem:[#allocation2 + $0xae] sm:$0xff]  ;;  %v5783_v31 = vpack.c.bf16 %v4292_v11, %v4291_v13  ;;  %v452_v13 = vmax.f32 %v6667_v52, 0.0 }
  0xb5   : > { %735 = vst [vmem:[#allocation2 + $0xd0] sm:$0xff] %v693_v3  ;;  %734 = vst [vmem:[#allocation2 + $0xc8] sm:$0xff] %v692_v30  ;;  %4861 = vmatmul.mubr.f32.gmra.mrb[18].mxu1 %v819_v29  ;;  %5267 = vmatmul.mubr.f32.gmra.mrb[2].mxu0 %v6882_v28  ;;  %v4295_v29 = vld [vmem:[%s7559_s3 + $0x360] sm:$0xff]  ;;  %v4300_v52 = vld [vmem:[%s7559_s3 + $0x388] sm:$0xff] }
  0xb6   : > { %v618_v46 = vpop.permute.xlu1 %617  ;;  %v613_v35 = vpop.permute.xlu0 %612  ;;  %4863 = vmatprep.mubr.f32.mxu1 %v820_v38  ;;  %5269 = vmatprep.mubr.f32.mxu0 %v6885_v14  ;;  %v4296_v38 = vld [vmem:[%s7559_s3 + $0x368] sm:$0xff] }
  0xb7   : > { %v695_v53 = vmul.f32 %v618_v46, %v443_v16  ;;  %v694_v44 = vmul.f32 %v613_v35, %v442_v17  ;;  %5774 = vmatpush3.bf16.msra.mxu0 %v5771_v22  ;;  %v412_v22 = vadd.f32 %v6639_v26, %v369_v54  ;;  %v4294_v26 = vld [vmem:[%s7559_s3 + $0x358] sm:$0xff]  ;;  %v6924_v17 = vld [vmem:[#allocation2 + $0x61] sm:$0xff]  ;;  %v451_v35 = vmax.f32 %v6642_v27, 0.0  ;;  %v4297_v27 = vld [vmem:[%s7559_s3 + $0x370] sm:$0xff] }
  0xb8   : > { %v822_v55 = vld [vmem:[#allocation2 + $0xb6] sm:$0xff]  ;;  %5776 = vmatprep.subr.bf16.mxu0 %v5775_v42  ;;  %v823_v60 = vld [vmem:[#allocation2 + $0xbe] sm:$0xff]  ;;  %v5787_v21 = vpack.c.bf16 %v4294_v26, %v4293_v39 }
  0xb9   : > { %737 = vst [vmem:[#allocation2 + $0xe0] sm:$0xff] %v695_v53  ;;  %736 = vst [vmem:[#allocation2 + $0xd8] sm:$0xff] %v694_v44  ;;  %4864 = vmatmul.mubr.f32.gmra.mrb[20].mxu1 %v821_v59  ;;  %5270 = vmatmul.mubr.f32.gmra.mrb[4].mxu0 %v6898_v62  ;;  %v448_v3 = vmax.f32 %v412_v22, 0.0  ;;  %v5791_v53 = vpack.c.bf16 %v4296_v38, %v4295_v29  ;;  %v6941_v44 = vld [vmem:[#allocation2 + $0x79] sm:$0xff]  ;;  %v749_v38 = vld [vmem:[#allocation2 + $0xd] sm:$0xff] }
  0xba   : > { %v628_v1 = vpop.permute.xlu1 %627  ;;  %v623_v5 = vpop.permute.xlu0 %622  ;;  %4866 = vmatprep.mubr.f32.mxu1 %v822_v55  ;;  %5272 = vmatprep.mubr.f32.mxu0 %v6901_v12  ;;  %v6969_v26 = vld [vmem:[#allocation2 + $0x99] sm:$0xff] }
  0xbb   : > { %v697_v7 = vmul.f32 %v628_v1, %v445_v47  ;;  %v696_v8 = vmul.f32 %v623_v5, %v444_v36  ;;  %5778 = vmatpush3.bf16.msra.mxu0 %v5775_v42  ;;  %v450_v47 = vmax.f32 %v6645_v34, 0.0  ;;  %v4298_v34 = vld [vmem:[%s7559_s3 + $0x378] sm:$0xff]  ;;  %v6952_v5 = vld [vmem:[#allocation2 + $0x81] sm:$0xff] }
  0xbc   : > { %v824_v23 = vld [vmem:[#allocation2 + $0xc6] sm:$0xff]  ;;  %5780 = vmatprep.subr.bf16.mxu0 %v5779_v63  ;;  %v825_v30 = vld [vmem:[#allocation2 + $0xce] sm:$0xff]  ;;  %v6988_v29 = vld [vmem:[#allocation2 + $0xb9] sm:$0xff] }
  0xbd   : > { %739 = vst [vmem:[#allocation2 + $0xf0] sm:$0xff] %v697_v7  ;;  %738 = vst [vmem:[#allocation2 + $0xe8] sm:$0xff] %v696_v8  ;;  %4867 = vmatmul.mubr.f32.gmra.mrb[22].mxu1 %v823_v60  ;;  %5273 = vmatmul.mubr.f32.gmra.mrb[6].mxu0 %v6912_v61 }
  0xbe   : > { %v638_v40 = vpop.permute.xlu1 %637  ;;  %v633_v48 = vpop.permute.xlu0 %632  ;;  %4869 = vmatprep.mubr.f32.mxu1 %v824_v23  ;;  %5275 = vmatprep.mubr.f32.mxu0 %v6915_v32 }
  0xbf   : > { %v699_v49 = vmul.f32 %v638_v40, %v447_v4  ;;  %v698_v57 = vmul.f32 %v633_v48, %v446_v6  ;;  %5782 = vmatpush3.bf16.msra.mxu0 %v5779_v63  ;;  %v453_v63 = vmax.f32 %v6664_v51, 0.0  ;;  %v5795_v4 = vpack.c.bf16 %v4298_v34, %v4297_v27  ;;  %v6955_v6 = vld [vmem:[#allocation2 + $0x89] sm:$0xff]  ;;  %v4299_v51 = vld [vmem:[%s7559_s3 + $0x380] sm:$0xff] }
  0xc0   : > { %v826_v16 = vld [vmem:[#allocation2 + $0xd6] sm:$0xff]  ;;  %5784 = vmatprep.subr.bf16.mxu0 %v5783_v31  ;;  %v827_v36 = vld [vmem:[#allocation2 + $0xde] sm:$0xff]  ;;  %v6966_v39 = vpack.c.bf16 %v4300_v52, %v4299_v51 }
  0xc1   : > { %741 = vst [vmem:[#allocation2 + $0x100] sm:$0xff] %v699_v49  ;;  %740 = vst [vmem:[#allocation2 + $0xf8] sm:$0xff] %v698_v57  ;;  %4870 = vmatmul.mubr.f32.gmra.mrb[24].mxu1 %v825_v30  ;;  %5276 = vmatmul.mubr.f32.gmra.mrb[8].mxu0 %v6924_v17  ;;  %v6972_v49 = vld [vmem:[#allocation2 + $0xa1] sm:$0xff]  ;;  %v6976_v57 = vld [vmem:[#allocation2 + $0xa9] sm:$0xff] }
  0xc2   : > { %v648_v42 = vpop.permute.xlu1 %647  ;;  %v643_v15 = vpop.permute.xlu0 %642  ;;  %4872 = vmatprep.mubr.f32.mxu1 %v826_v16  ;;  %5278 = vmatprep.mubr.f32.mxu0 %v6927_v24  ;;  %v6982_v16 = vld [vmem:[#allocation2 + $0xb1] sm:$0xff]  ;;  %v752_v27 = vld [vmem:[#allocation2 + $0x25] sm:$0xff] }
  0xc3   : > { %v701_v20 = vmul.f32 %v648_v42, %v449_v2  ;;  %v700_v46 = vmul.f32 %v643_v15, %v448_v3  ;;  %5786 = vmatpush3.bf16.msra.mxu0 %v5783_v31  ;;  %v6964_v31 = vld [vmem:[#allocation2 + $0x91] sm:$0xff]  ;;  %v748_v2 = vld [vmem:[#allocation2 + $0x5] sm:$0xff] }
  0xc4   : > { %v828_v37 = vld [vmem:[#allocation2 + $0xe6] sm:$0xff]  ;;  %5788 = vmatprep.subr.bf16.mxu0 %v5787_v21  ;;  %v829_v11 = vld [vmem:[#allocation2 + $0xee] sm:$0xff] }
  0xc5   : > { %743 = vst [vmem:[#allocation2 + $0x110] sm:$0xff] %v701_v20  ;;  %742 = vst [vmem:[#allocation2 + $0x108] sm:$0xff] %v700_v46  ;;  %4873 = vmatmul.mubr.f32.gmra.mrb[26].mxu1 %v827_v36  ;;  %5279 = vmatmul.mubr.f32.gmra.mrb[10].mxu0 %v6938_v43  ;;  %v4221_v3 = vld [vmem:[%s7559_s3 + $0x110] sm:$0xff]  ;;  %v6991_v15 = vld [vmem:[#allocation2 + $0xc1] sm:$0xff] }
  0xc6   : > { %v658_v45 = vpop.permute.xlu1 %657  ;;  %v653_v54 = vpop.permute.xlu0 %652  ;;  %4875 = vmatprep.mubr.f32.mxu1 %v828_v37  ;;  %5281 = vmatprep.mubr.f32.mxu0 %v6941_v44  ;;  %v4223_v20 = vld [vmem:[%s7559_s3 + $0x120] sm:$0xff]  ;;  %v4224_v46 = vld [vmem:[%s7559_s3 + $0x128] sm:$0xff]  ;;  %v4225_v34 = vld [vmem:[%s7559_s3 + $0x130] sm:$0xff] }
  0xc7   : > { %v703_v59 = vmul.f32 %v658_v45, %v451_v35  ;;  %v702_v55 = vmul.f32 %v653_v54, %v450_v47  ;;  %5790 = vmatpush3.bf16.msra.mxu0 %v5787_v21  ;;  %v4222_v21 = vld [vmem:[%s7559_s3 + $0x118] sm:$0xff]  ;;  %v7001_v47 = vld [vmem:[#allocation2 + $0xc9] sm:$0xff]  ;;  %v5647_v36 = vpack.c.bf16 %v4224_v46, %v4223_v20 }
  0xc8   : > { %v830_v1 = vld [vmem:[#allocation2 + $0xf6] sm:$0xff]  ;;  %5792 = vmatprep.subr.bf16.mxu0 %v5791_v53  ;;  %v831_v60 = vld [vmem:[#allocation2 + $0xfe] sm:$0xff]  ;;  %v5643_v42 = vpack.c.bf16 %v4222_v21, %v4221_v3  ;;  %v753_v54 = vld [vmem:[#allocation2 + $0x2d] sm:$0xff] }
  0xc9   : > { %745 = vst [vmem:[#allocation2 + $0x120] sm:$0xff] %v703_v59  ;;  %744 = vst [vmem:[#allocation2 + $0x118] sm:$0xff] %v702_v55  ;;  %4876 = vmatmul.mubr.f32.gmra.mrb[28].mxu1 %v829_v11  ;;  %5282 = vmatmul.mubr.f32.gmra.mrb[12].mxu0 %v6952_v5  ;;  %v750_v35 = vld [vmem:[#allocation2 + $0x15] sm:$0xff]  ;;  %v751_v37 = vld [vmem:[#allocation2 + $0x1d] sm:$0xff] }
  0xca   : > { %v668_v7 = vpop.permute.xlu1 %667  ;;  %v663_v8 = vpop.permute.xlu0 %662  ;;  %4878 = vmatprep.mubr.f32.mxu1 %v830_v1  ;;  %5284 = vmatprep.mubr.f32.mxu0 %v6955_v6  ;;  %v7013_v45 = vld [vmem:[#allocation2 + $0xd9] sm:$0xff]  ;;  %v7016_v59 = vld [vmem:[#allocation2 + $0xe1] sm:$0xff]  ;;  %v7022_v11 = vld [vmem:[#allocation2 + $0xe9] sm:$0xff] }
  0xcb   : > { %v705_v9 = vmul.f32 %v668_v7, %v453_v63  ;;  %v704_v22 = vmul.f32 %v663_v8, %v452_v13  ;;  %5794 = vmatpush3.bf16.msra.mxu0 %v5791_v53  ;;  %v7004_v53 = vld [vmem:[#allocation2 + $0xd1] sm:$0xff]  ;;  %v4227_v63 = vld [vmem:[%s7559_s3 + $0x140] sm:$0xff]  ;;  %v4228_v1 = vld [vmem:[%s7559_s3 + $0x148] sm:$0xff] }
  0xcc   : > { %v832_v23 = vld [vmem:[#allocation2 + $0x106] sm:$0xff]  ;;  %5796 = vmatprep.subr.bf16.mxu0 %v5795_v4  ;;  %v833_v40 = vld [vmem:[#allocation2 + $0x10e] sm:$0xff]  ;;  %v5655_v52 = vpack.c.bf16 %v4228_v1, %v4227_v63  ;;  %v759_v21 = vld [vmem:[#allocation2 + $0x5d] sm:$0xff] }
  0xcd   : > { %747 = vst [vmem:[#allocation2 + $0x130] sm:$0xff] %v705_v9  ;;  %746 = vst [vmem:[#allocation2 + $0x128] sm:$0xff] %v704_v22  ;;  %4879 = vmatmul.mubr.f32.gmra.mrb[30].mxu1 %v831_v60  ;;  %5285 = vmatmul.mubr.f32.gmra.mrb[14].mxu0 %v6964_v31  ;;  %v754_v13 = vld [vmem:[#allocation2 + $0x35] sm:$0xff]  ;;  %v756_v8 = vld [vmem:[#allocation2 + $0x45] sm:$0xff] }
  0xce   : > { %4881 = vmatprep.mubr.f32.mxu1 %v832_v23  ;;  %5287 = vmatprep.mubr.f32.mxu0 %v6969_v26  ;;  %v7028_v51 = vld [vmem:[#allocation2 + $0xf1] sm:$0xff]  ;;  %v7034_v9 = vld [vmem:[#allocation2 + $0xf9] sm:$0xff]  ;;  %v7040_v23 = vld [vmem:[#allocation2 + $0x101] sm:$0xff] }
  0xcf   : > { %5798 = vmatpush3.bf16.msra.mxu0 %v5795_v4  ;;  %v755_v4 = vld [vmem:[#allocation2 + $0x3d] sm:$0xff]  ;;  %v4229_v7 = vld [vmem:[%s7559_s3 + $0x150] sm:$0xff]  ;;  %v760_v46 = vld [vmem:[#allocation2 + $0x65] sm:$0xff] }
  0xd0   : > { %v834_v48 = vld [vmem:[#allocation2 + $0x116] sm:$0xff]  ;;  %5800 = vmatprep.subr.bf16.mxu0 %v6966_v39  ;;  %v835_v30 = vld [vmem:[#allocation2 + $0x11e] sm:$0xff]  ;;  %v757_v60 = vld [vmem:[#allocation2 + $0x4d] sm:$0xff] }
  0xd1   : > { %4882 = vmatmul.mubr.f32.gmra.mrb[32].mxu1 %v833_v40  ;;  %5288 = vmatmul.mubr.f32.gmra.mrb[16].mxu0 %v6972_v49  ;;  %v4230_v22 = vld [vmem:[%s7559_s3 + $0x158] sm:$0xff]  ;;  %v7046_v3 = vld [vmem:[#allocation2 + $0x109] sm:$0xff] }
  0xd2   : > { %4884 = vmatprep.mubr.f32.mxu1 %v834_v48  ;;  %5290 = vmatprep.mubr.f32.mxu0 %v6976_v57  ;;  %v5659_v40 = vpack.c.bf16 %v4230_v22, %v4229_v7  ;;  %v4231_v48 = vld [vmem:[%s7559_s3 + $0x160] sm:$0xff]  ;;  %v4233_v20 = vld [vmem:[%s7559_s3 + $0x170] sm:$0xff]  ;;  %v4236_v63 = vld [vmem:[%s7559_s3 + $0x188] sm:$0xff] }
  0xd3   : > { %v763_v1 = vld [vmem:[#allocation2 + $0x7d] sm:$0xff] }
  0xd5   : > { %4885 = vmatmul.mubr.f32.gmra.mrb[34].mxu1 %v835_v30  ;;  %5291 = vmatmul.mubr.f32.gmra.mrb[18].mxu0 %v6982_v16  ;;  %v4232_v30 = vld [vmem:[%s7559_s3 + $0x168] sm:$0xff] }
  0xd6   : > { %4919 = vmatprep.mubr.f32.mxu1 %v748_v2  ;;  %5293 = vmatprep.mubr.f32.mxu0 %v6988_v29  ;;  %v758_v2 = vld [vmem:[#allocation2 + $0x55] sm:$0xff] }
  0xd9   : > { %4920 = vmatmul.mubr.f32.vlgmr.msra.gmra.mrb[0].mxu1 %v749_v38  ;;  %5294 = vmatmul.mubr.f32.gmra.mrb[20].mxu0 %v6991_v15  ;;  %v7052_v38 = vld [vmem:[#allocation2 + $0x111] sm:$0xff] }
  0xda   : > { %4922 = vmatprep.mubr.f32.mxu1 %v750_v35  ;;  %5642 = vmatpush3.bf16.msra.mxu1 %v6697_v0  ;;  %v4226_v0 = vld [vmem:[%s7559_s3 + $0x138] sm:$0xff] }
  0xdb   : > { %5296 = vmatprep.mubr.f32.mxu0 %v7001_v47  ;;  %5644 = vmatprep.subr.bf16.mxu1 %v5643_v42  ;;  %v5651_v55 = vpack.c.bf16 %v4226_v0, %v4225_v34  ;;  %v7058_v35 = vld [vmem:[#allocation2 + $0x119] sm:$0xff] }
  0xdc   : > { %v4235_v0 = vld [vmem:[%s7559_s3 + $0x180] sm:$0xff] }
  0xdd   : > { %4923 = vmatmul.mubr.f32.gmra.mrb[2].mxu1 %v751_v37  ;;  %5297 = vmatmul.mubr.f32.gmra.mrb[22].mxu0 %v7004_v53  ;;  %v761_v37 = vld [vmem:[#allocation2 + $0x6d] sm:$0xff]  ;;  %v7084_v7 = vpack.c.bf16 %v4236_v63, %v4235_v0 }
  0xde   : > { %4925 = vmatprep.mubr.f32.mxu1 %v752_v27  ;;  %5646 = vmatpush3.bf16.msra.mxu1 %v5643_v42  ;;  %v5663_v42 = vpack.c.bf16 %v4232_v30, %v4231_v48  ;;  %v7064_v27 = vld [vmem:[#allocation2 + $0x121] sm:$0xff] }
  0xdf   : > { %5299 = vmatprep.mubr.f32.mxu0 %v7013_v45  ;;  %5648 = vmatprep.subr.bf16.mxu1 %v5647_v36  ;;  %v4303_v48 = vld [vmem:[%s7559_s3 + $0x3a0] sm:$0xff]  ;;  %v4312_v63 = vld [vmem:[%s7559_s3 + $0x3e8] sm:$0xff] }
  0xe1   : > { %4926 = vmatmul.mubr.f32.gmra.mrb[4].mxu1 %v753_v54  ;;  %5300 = vmatmul.mubr.f32.gmra.mrb[24].mxu0 %v7016_v59  ;;  %v762_v54 = vld [vmem:[#allocation2 + $0x75] sm:$0xff] }
  0xe2   : > { %4928 = vmatprep.mubr.f32.mxu1 %v754_v13  ;;  %5302 = vmatprep.mubr.f32.mxu0 %v7022_v11  ;;  %v4301_v13 = vld [vmem:[%s7559_s3 + $0x390] sm:$0xff] }
  0xe3   : > { %5650 = vmatpush3.bf16.msra.mxu1 %v5647_v36  ;;  %v4234_v36 = vld [vmem:[%s7559_s3 + $0x178] sm:$0xff] }
  0xe4   : > { %5652 = vmatprep.subr.bf16.mxu1 %v5651_v55  ;;  %v5667_v34 = vpack.c.bf16 %v4234_v36, %v4233_v20  ;;  %v770_v20 = vld [vmem:[#allocation2 + $0xb5] sm:$0xff] }
  0xe5   : > { %4929 = vmatmul.mubr.f32.gmra.mrb[6].mxu1 %v755_v4  ;;  %5303 = vmatmul.mubr.f32.gmra.mrb[26].mxu0 %v7028_v51  ;;  %v7079_v4 = vld [vmem:[#allocation2 + $0x131] sm:$0xff] }
  0xe6   : > { %4931 = vmatprep.mubr.f32.mxu1 %v756_v8  ;;  %5305 = vmatprep.mubr.f32.mxu0 %v7034_v9  ;;  %v764_v8 = vld [vmem:[#allocation2 + $0x85] sm:$0xff] }
  0xe7   : > { %5654 = vmatpush3.bf16.msra.mxu1 %v5651_v55  ;;  %v7070_v55 = vld [vmem:[#allocation2 + $0x129] sm:$0xff] }
  0xe8   : > { %5656 = vmatprep.subr.bf16.mxu1 %v5655_v52 }
  0xe9   : > { %4932 = vmatmul.mubr.f32.gmra.mrb[8].mxu1 %v757_v60  ;;  %5306 = vmatmul.mubr.f32.gmra.mrb[28].mxu0 %v7040_v23  ;;  %v765_v60 = vld [vmem:[#allocation2 + $0x8d] sm:$0xff] }
  0xea   : > { %4934 = vmatprep.mubr.f32.mxu1 %v758_v2  ;;  %5308 = vmatprep.mubr.f32.mxu0 %v7046_v3  ;;  %v4304_v2 = vld [vmem:[%s7559_s3 + $0x3a8] sm:$0xff] }
  0xeb   : > { %5658 = vmatpush3.bf16.msra.mxu1 %v5655_v52  ;;  %v4302_v52 = vld [vmem:[%s7559_s3 + $0x398] sm:$0xff]  ;;  %v5807_v30 = vpack.c.bf16 %v4304_v2, %v4303_v48  ;;  %v780_v48 = vld [vmem:[#allocation2 + $0x105] sm:$0xff] }
  0xec   : > { %5660 = vmatprep.subr.bf16.mxu1 %v5659_v40  ;;  %v5803_v22 = vpack.c.bf16 %v4302_v52, %v4301_v13  ;;  %v4314_v52 = vld [vmem:[%s7559_s3 + $0x3f8] sm:$0xff] }
  0xed   : > { %4935 = vmatmul.mubr.f32.gmra.mrb[10].mxu1 %v759_v21  ;;  %5309 = vmatmul.mubr.f32.gmra.mrb[30].mxu0 %v7052_v38  ;;  %v768_v21 = vld [vmem:[#allocation2 + $0xa5] sm:$0xff]  ;;  %v782_v2 = vld [vmem:[#allocation2 + $0x115] sm:$0xff] }
  0xee   : > { %4937 = vmatprep.mubr.f32.mxu1 %v760_v46  ;;  %5311 = vmatprep.mubr.f32.mxu0 %v7058_v35  ;;  %v4308_v46 = vld [vmem:[%s7559_s3 + $0x3c8] sm:$0xff] }
  0xef   : > { %5662 = vmatpush3.bf16.msra.mxu1 %v5659_v40  ;;  %v766_v40 = vld [vmem:[#allocation2 + $0x95] sm:$0xff] }
  0xf0   : > { %5664 = vmatprep.subr.bf16.mxu1 %v5663_v42 }
  0xf1   : > { %4938 = vmatmul.mubr.f32.gmra.mrb[12].mxu1 %v761_v37  ;;  %5312 = vmatmul.mubr.f32.gmra.mrb[32].mxu0 %v7064_v27  ;;  %v772_v37 = vld [vmem:[#allocation2 + $0xc5] sm:$0xff] }
  0xf2   : > { %4940 = vmatprep.mubr.f32.mxu1 %v762_v54  ;;  %5314 = vmatprep.mubr.f32.mxu0 %v7070_v55  ;;  %v774_v54 = vld [vmem:[#allocation2 + $0xd5] sm:$0xff] }
  0xf3   : > { %5666 = vmatpush3.bf16.msra.mxu1 %v5663_v42  ;;  %v4306_v42 = vld [vmem:[%s7559_s3 + $0x3b8] sm:$0xff] }
  0xf4   : > { %5668 = vmatprep.subr.bf16.mxu1 %v5667_v34 }
  0xf5   : > { %4941 = vmatmul.mubr.f32.gmra.mrb[14].mxu1 %v763_v1  ;;  %5315 = vmatmul.mubr.f32.gmra.mrb[34].mxu0 %v7079_v4  ;;  %v776_v1 = vld [vmem:[#allocation2 + $0xe5] sm:$0xff] }
  0xf6   : > { %4943 = vmatprep.mubr.f32.mxu1 %v764_v8  ;;  %5349 = vmatprep.mubr.f32.mxu0 %v6875_v56  ;;  %v767_v56 = vld [vmem:[#allocation2 + $0x9d] sm:$0xff] }
  0xf7   : > { %5670 = vmatpush3.bf16.msra.mxu1 %v5667_v34  ;;  %v4310_v34 = vld [vmem:[%s7559_s3 + $0x3d8] sm:$0xff] }
  0xf8   : > { %5672 = vmatprep.subr.bf16.mxu1 %v7084_v7 }
  0xf9   : > { %4944 = vmatmul.mubr.f32.gmra.mrb[16].mxu1 %v765_v60  ;;  %5350 = vmatmul.mubr.f32.vlgmr.msra.gmra.mrb[0].mxu0 %v6882_v28  ;;  %v4305_v28 = vld [vmem:[%s7559_s3 + $0x3b0] sm:$0xff]  ;;  %v4316_v60 = vld [vmem:[%s7559_s3 + $0x408] sm:$0xff] }
  0xfa   : > { %4946 = vmatprep.mubr.f32.mxu1 %v766_v40  ;;  %5802 = vmatpush3.bf16.msra.mxu0 %v6966_v39  ;;  %v5811_v39 = vpack.c.bf16 %v4306_v42, %v4305_v28  ;;  %v7167_v28 = vld [vmem:[#allocation2 + $0x17] sm:$0xff]  ;;  %v7176_v42 = vld [vmem:[#allocation2 + $0x27] sm:$0xff] }
  0xfb   : > { %5352 = vmatprep.mubr.f32.mxu0 %v6885_v14  ;;  %5804 = vmatprep.subr.bf16.mxu0 %v5803_v22  ;;  %v769_v14 = vld [vmem:[#allocation2 + $0xad] sm:$0xff] }
  0xfd   : > { %4947 = vmatmul.mubr.f32.gmra.mrb[18].mxu1 %v767_v56  ;;  %5353 = vmatmul.mubr.f32.gmra.mrb[2].mxu0 %v6898_v62  ;;  %v4307_v62 = vld [vmem:[%s7559_s3 + $0x3c0] sm:$0xff] }
  0xfe   : > { %4949 = vmatprep.mubr.f32.mxu1 %v768_v21  ;;  %5355 = vmatprep.mubr.f32.mxu0 %v6901_v12  ;;  %v771_v12 = vld [vmem:[#allocation2 + $0xbd] sm:$0xff]  ;;  %v5815_v36 = vpack.c.bf16 %v4308_v46, %v4307_v62  ;;  %v4240_v21 = vld [vmem:[%s7559_s3 + $0x1a8] sm:$0xff]  ;;  %v4245_v46 = vld [vmem:[%s7559_s3 + $0x1d0] sm:$0xff] }
  0xff   : > { %5806 = vmatpush3.bf16.msra.mxu0 %v5803_v22  ;;  %v778_v22 = vld [vmem:[#allocation2 + $0xf5] sm:$0xff]  ;;  %v783_v56 = vld [vmem:[#allocation2 + $0x11d] sm:$0xff] }
 0x100   : > { %5808 = vmatprep.subr.bf16.mxu0 %v5807_v30 }
 0x101   : > { %4950 = vmatmul.mubr.f32.gmra.mrb[20].mxu1 %v769_v14  ;;  %5356 = vmatmul.mubr.f32.gmra.mrb[4].mxu0 %v6912_v61  ;;  %v4309_v61 = vld [vmem:[%s7559_s3 + $0x3d0] sm:$0xff] }
 0x102   : > { %4952 = vmatprep.mubr.f32.mxu1 %v770_v20  ;;  %5358 = vmatprep.mubr.f32.mxu0 %v6915_v32  ;;  %v773_v32 = vld [vmem:[#allocation2 + $0xcd] sm:$0xff]  ;;  %v5819_v0 = vpack.c.bf16 %v4310_v34, %v4309_v61 }
 0x103   : > { %5810 = vmatpush3.bf16.msra.mxu0 %v5807_v30  ;;  %v1344_v30 = vld [vmem:[#allocation2 + $0xf] sm:$0xff] }
 0x104   : > { %5812 = vmatprep.subr.bf16.mxu0 %v5811_v39  ;;  %v4244_v20 = vld [vmem:[%s7559_s3 + $0x1c8] sm:$0xff] }
 0x105   : > { %4953 = vmatmul.mubr.f32.gmra.mrb[22].mxu1 %v771_v12  ;;  %5359 = vmatmul.mubr.f32.gmra.mrb[6].mxu0 %v6924_v17  ;;  %v4311_v17 = vld [vmem:[%s7559_s3 + $0x3e0] sm:$0xff]  ;;  %v4246_v12 = vld [vmem:[%s7559_s3 + $0x1d8] sm:$0xff]  ;;  %v4248_v61 = vld [vmem:[%s7559_s3 + $0x1e8] sm:$0xff] }
 0x106   : > { %4955 = vmatprep.mubr.f32.mxu1 %v772_v37  ;;  %5361 = vmatprep.mubr.f32.mxu0 %v6927_v24  ;;  %v775_v24 = vld [vmem:[#allocation2 + $0xdd] sm:$0xff]  ;;  %v5823_v13 = vpack.c.bf16 %v4312_v63, %v4311_v17 }
 0x107   : > { %5814 = vmatpush3.bf16.msra.mxu0 %v5811_v39  ;;  %v4243_v39 = vld [vmem:[%s7559_s3 + $0x1c0] sm:$0xff] }
 0x108   : > { %5816 = vmatprep.subr.bf16.mxu0 %v5815_v36  ;;  %v5687_v62 = vpack.c.bf16 %v4244_v20, %v4243_v39  ;;  %v4247_v37 = vld [vmem:[%s7559_s3 + $0x1e0] sm:$0xff] }
 0x109   : > { %4956 = vmatmul.mubr.f32.gmra.mrb[24].mxu1 %v773_v32  ;;  %5362 = vmatmul.mubr.f32.gmra.mrb[8].mxu0 %v6938_v43  ;;  %v4313_v43 = vld [vmem:[%s7559_s3 + $0x3f0] sm:$0xff]  ;;  %v5695_v34 = vpack.c.bf16 %v4248_v61, %v4247_v37  ;;  %v2714_v63 = vld [vmem:[#allocation2 + $0x141] sm:$0xff] }
 0x10a   : > { %4958 = vmatprep.mubr.f32.mxu1 %v774_v54  ;;  %5364 = vmatprep.mubr.f32.mxu0 %v6941_v44  ;;  %v777_v44 = vld [vmem:[#allocation2 + $0xed] sm:$0xff]  ;;  %v5827_v8 = vpack.c.bf16 %v4314_v52, %v4313_v43  ;;  %v3023_v37 = vld [vmem:[#allocation2 + $0x7a] sm:$0xff] }
 0x10b   : > { %5818 = vmatpush3.bf16.msra.mxu0 %v5815_v36  ;;  %v5691_v36 = vpack.c.bf16 %v4246_v12, %v4245_v46  ;;  %v4249_v32 = vld [vmem:[%s7559_s3 + $0x1f0] sm:$0xff]  ;;  %v7303_v20 = vld [vmem:[#allocation2 + $0xc7] sm:$0xff]  ;;  %v4326_v46 = vld [vmem:[%s7559_s3 + $0x458] sm:$0xff] }
 0x10c   : > { %5820 = vmatprep.subr.bf16.mxu0 %v5819_v0  ;;  %v7243_v54 = vld [vmem:[#allocation2 + $0x6f] sm:$0xff] }
 0x10d   : > { %4959 = vmatmul.mubr.f32.gmra.mrb[26].mxu1 %v775_v24  ;;  %5365 = vmatmul.mubr.f32.gmra.mrb[10].mxu0 %v6952_v5  ;;  %v4315_v5 = vld [vmem:[%s7559_s3 + $0x400] sm:$0xff]  ;;  %v7262_v52 = vld [vmem:[#allocation2 + $0x8f] sm:$0xff] }
 0x10e   : > { %4961 = vmatprep.mubr.f32.mxu1 %v776_v1  ;;  %5367 = vmatprep.mubr.f32.mxu0 %v6955_v6  ;;  %v779_v6 = vld [vmem:[#allocation2 + $0xfd] sm:$0xff]  ;;  %v7146_v40 = vpack.c.bf16 %v4316_v60, %v4315_v5  ;;  %v7259_v1 = vld [vmem:[#allocation2 + $0x87] sm:$0xff]  ;;  %v7312_v12 = vld [vmem:[#allocation2 + $0xcf] sm:$0xff] }
 0x10f   : > { %5822 = vmatpush3.bf16.msra.mxu0 %v5819_v0  ;;  %v4250_v0 = vld [vmem:[%s7559_s3 + $0x1f8] sm:$0xff]  ;;  %v4320_v5 = vld [vmem:[%s7559_s3 + $0x428] sm:$0xff] }
 0x110   : > { %5824 = vmatprep.subr.bf16.mxu0 %v5823_v13  ;;  %v5699_v17 = vpack.c.bf16 %v4250_v0, %v4249_v32  ;;  %v7250_v24 = vld [vmem:[#allocation2 + $0x7f] sm:$0xff]  ;;  %v4328_v0 = vld [vmem:[%s7559_s3 + $0x468] sm:$0xff] }
 0x111   : > { %4962 = vmatmul.mubr.f32.gmra.mrb[28].mxu1 %v777_v44  ;;  %5368 = vmatmul.mubr.f32.gmra.mrb[12].mxu0 %v6964_v31  ;;  %v781_v31 = vld [vmem:[#allocation2 + $0x10d] sm:$0xff]  ;;  %v3015_v60 = vld [vmem:[#allocation2 + $0x3a] sm:$0xff] }
 0x112   : > { %4964 = vmatprep.mubr.f32.mxu1 %v778_v22  ;;  %5370 = vmatprep.mubr.f32.mxu0 %v6969_v26  ;;  %v1343_v26 = vld [vmem:[#allocation2 + $0x7] sm:$0xff]  ;;  %v3014_v44 = vld [vmem:[#allocation2 + $0x32] sm:$0xff] }
 0x113   : > { %5826 = vmatpush3.bf16.msra.mxu0 %v5823_v13  ;;  %v4318_v13 = vld [vmem:[%s7559_s3 + $0x418] sm:$0xff]  ;;  %v4319_v22 = vld [vmem:[%s7559_s3 + $0x420] sm:$0xff] }
 0x114   : > { %5828 = vmatprep.subr.bf16.mxu0 %v5827_v8  ;;  %v4327_v32 = vld [vmem:[%s7559_s3 + $0x460] sm:$0xff] }
 0x115   : > { %4965 = vmatmul.mubr.f32.gmra.mrb[30].mxu1 %v779_v6  ;;  %5371 = vmatmul.mubr.f32.gmra.mrb[14].mxu0 %v6972_v49  ;;  %v4237_v49 = vld [vmem:[%s7559_s3 + $0x190] sm:$0xff]  ;;  %v7276_v6 = vld [vmem:[#allocation2 + $0x9f] sm:$0xff] }
 0x116   : > { %4967 = vmatprep.mubr.f32.mxu1 %v780_v48  ;;  %5373 = vmatprep.mubr.f32.mxu0 %v6976_v57  ;;  %v4238_v57 = vld [vmem:[%s7559_s3 + $0x198] sm:$0xff]  ;;  %v3016_v48 = vld [vmem:[#allocation2 + $0x42] sm:$0xff] }
 0x117   : > { %5830 = vmatpush3.bf16.msra.mxu0 %v5827_v8  ;;  %v7266_v8 = vld [vmem:[#allocation2 + $0x97] sm:$0xff] }
 0x118   : > { %5832 = vmatprep.subr.bf16.mxu0 %v7146_v40 }
 0x119   : > { %4968 = vmatmul.mubr.f32.gmra.mrb[32].mxu1 %v781_v31  ;;  %5374 = vmatmul.mubr.f32.gmra.mrb[16].mxu0 %v6982_v16  ;;  %v5675_v16 = vpack.c.bf16 %v4238_v57, %v4237_v49  ;;  %v3017_v31 = vld [vmem:[#allocation2 + $0x4a] sm:$0xff]  ;;  %v3018_v57 = vld [vmem:[#allocation2 + $0x52] sm:$0xff] }
 0x11a   : > { %4970 = vmatprep.mubr.f32.mxu1 %v782_v2  ;;  %5376 = vmatprep.mubr.f32.mxu0 %v6988_v29  ;;  %v4239_v29 = vld [vmem:[%s7559_s3 + $0x1a0] sm:$0xff]  ;;  %v5839_v2 = vpack.c.bf16 %v4320_v5, %v4319_v22  ;;  %v7288_v49 = vld [vmem:[#allocation2 + $0xaf] sm:$0xff] }
 0x11b   : > { %v3026_v22 = vld [vmem:[#allocation2 + $0x92] sm:$0xff] }
 0x11d   : > { %4971 = vmatmul.mubr.f32.gmra.mrb[34].mxu1 %v783_v56  ;;  %5377 = vmatmul.mubr.f32.gmra.mrb[18].mxu0 %v6991_v15  ;;  %v5679_v15 = vpack.c.bf16 %v4240_v21, %v4239_v29  ;;  %v4321_v56 = vld [vmem:[%s7559_s3 + $0x430] sm:$0xff]  ;;  %v4323_v21 = vld [vmem:[%s7559_s3 + $0x440] sm:$0xff] }
 0x11e   : > { %5005 = vmatprep.mubr.f32.mxu1 %v1343_v26  ;;  %5379 = vmatprep.mubr.f32.mxu0 %v7001_v47  ;;  %v7173_v47 = vld [vmem:[#allocation2 + $0x1f] sm:$0xff]  ;;  %v7279_v26 = vld [vmem:[#allocation2 + $0xa7] sm:$0xff]  ;;  %v7291_v29 = vld [vmem:[#allocation2 + $0xb7] sm:$0xff] }
 0x121   : > { %5006 = vmatmul.mubr.f32.vlgmr.msra.gmra.mrb[0].mxu1 %v1344_v30  ;;  %5380 = vmatmul.mubr.f32.gmra.mrb[20].mxu0 %v7004_v53  ;;  %v4241_v53 = vld [vmem:[%s7559_s3 + $0x1b0] sm:$0xff]  ;;  %v3019_v30 = vld [vmem:[#allocation2 + $0x5a] sm:$0xff] }
 0x122   : > { %5008 = vmatprep.mubr.f32.mxu1 %v7167_v28  ;;  %5674 = vmatpush3.bf16.msra.mxu1 %v7084_v7  ;;  %v4242_v7 = vld [vmem:[%s7559_s3 + $0x1b8] sm:$0xff] }
 0x123   : > { %5382 = vmatprep.mubr.f32.mxu0 %v7013_v45  ;;  %5676 = vmatprep.subr.bf16.mxu1 %v5675_v16  ;;  %v7187_v45 = vld [vmem:[#allocation2 + $0x2f] sm:$0xff]  ;;  %v5683_v14 = vpack.c.bf16 %v4242_v7, %v4241_v53  ;;  %v7300_v53 = vld [vmem:[#allocation2 + $0xbf] sm:$0xff] }
 0x124   : > { %v3020_v7 = vld [vmem:[#allocation2 + $0x62] sm:$0xff] }
 0x125   : > { %5009 = vmatmul.mubr.f32.gmra.mrb[2].mxu1 %v7173_v47  ;;  %5383 = vmatmul.mubr.f32.gmra.mrb[22].mxu0 %v7016_v59  ;;  %v7190_v59 = vld [vmem:[#allocation2 + $0x37] sm:$0xff] }
 0x126   : > { %5011 = vmatprep.mubr.f32.mxu1 %v7176_v42  ;;  %5678 = vmatpush3.bf16.msra.mxu1 %v5675_v16 }
 0x127   : > { %5385 = vmatprep.mubr.f32.mxu0 %v7022_v11  ;;  %5680 = vmatprep.subr.bf16.mxu1 %v5679_v15  ;;  %v7201_v11 = vld [vmem:[#allocation2 + $0x3f] sm:$0xff] }
 0x129   : > { %5012 = vmatmul.mubr.f32.gmra.mrb[4].mxu1 %v7187_v45  ;;  %5386 = vmatmul.mubr.f32.gmra.mrb[24].mxu0 %v7028_v51  ;;  %v7204_v51 = vld [vmem:[#allocation2 + $0x47] sm:$0xff] }
 0x12a   : > { %5014 = vmatprep.mubr.f32.mxu1 %v7190_v59  ;;  %5388 = vmatprep.mubr.f32.mxu0 %v7034_v9  ;;  %v7215_v9 = vld [vmem:[#allocation2 + $0x4f] sm:$0xff] }
 0x12b   : > { %5682 = vmatpush3.bf16.msra.mxu1 %v5679_v15  ;;  %v4324_v15 = vld [vmem:[%s7559_s3 + $0x448] sm:$0xff] }
 0x12c   : > { %5684 = vmatprep.subr.bf16.mxu1 %v5683_v14  ;;  %v5847_v39 = vpack.c.bf16 %v4324_v15, %v4323_v21  ;;  %v3031_v21 = vld [vmem:[#allocation2 + $0xba] sm:$0xff] }
 0x12d   : > { %5015 = vmatmul.mubr.f32.gmra.mrb[6].mxu1 %v7201_v11  ;;  %5389 = vmatmul.mubr.f32.gmra.mrb[26].mxu0 %v7040_v23  ;;  %v7218_v23 = vld [vmem:[#allocation2 + $0x57] sm:$0xff]  ;;  %v7354_v15 = vld [vmem:[#allocation2 + $0x11f] sm:$0xff] }
 0x12e   : > { %5017 = vmatprep.mubr.f32.mxu1 %v7204_v51  ;;  %5391 = vmatprep.mubr.f32.mxu0 %v7046_v3  ;;  %v7229_v3 = vld [vmem:[#allocation2 + $0x5f] sm:$0xff] }
 0x12f   : > { %5686 = vmatpush3.bf16.msra.mxu1 %v5683_v14  ;;  %v3021_v14 = vld [vmem:[#allocation2 + $0x6a] sm:$0xff] }
 0x130   : > { %5688 = vmatprep.subr.bf16.mxu1 %v5687_v62 }
 0x131   : > { %5018 = vmatmul.mubr.f32.gmra.mrb[8].mxu1 %v7215_v9  ;;  %5392 = vmatmul.mubr.f32.gmra.mrb[28].mxu0 %v7052_v38  ;;  %v7232_v38 = vld [vmem:[#allocation2 + $0x67] sm:$0xff] }
 0x132   : > { %5020 = vmatprep.mubr.f32.mxu1 %v7218_v23  ;;  %5394 = vmatprep.mubr.f32.mxu0 %v7058_v35  ;;  %v2713_v35 = vld [vmem:[#allocation2 + $0x139] sm:$0xff] }
 0x133   : > { %5690 = vmatpush3.bf16.msra.mxu1 %v5687_v62  ;;  %v4325_v62 = vld [vmem:[%s7559_s3 + $0x450] sm:$0xff] }
 0x134   : > { %5692 = vmatprep.subr.bf16.mxu1 %v5691_v36  ;;  %v5851_v61 = vpack.c.bf16 %v4326_v46, %v4325_v62  ;;  %v3035_v62 = vld [vmem:[#allocation2 + $0xda] sm:$0xff]  ;;  %v3036_v46 = vld [vmem:[#allocation2 + $0xe2] sm:$0xff] }
 0x135   : > { %5021 = vmatmul.mubr.f32.gmra.mrb[10].mxu1 %v7229_v3  ;;  %5395 = vmatmul.mubr.f32.gmra.mrb[30].mxu0 %v7064_v27  ;;  %v7246_v27 = vld [vmem:[#allocation2 + $0x77] sm:$0xff] }
 0x136   : > { %5023 = vmatprep.mubr.f32.mxu1 %v7232_v38  ;;  %5397 = vmatprep.mubr.f32.mxu0 %v7070_v55  ;;  %v4317_v55 = vld [vmem:[%s7559_s3 + $0x410] sm:$0xff] }
 0x137   : > { %5694 = vmatpush3.bf16.msra.mxu1 %v5691_v36  ;;  %v5835_v43 = vpack.c.bf16 %v4318_v13, %v4317_v55  ;;  %v3022_v36 = vld [vmem:[#allocation2 + $0x72] sm:$0xff]  ;;  %v5855_v55 = vpack.c.bf16 %v4328_v0, %v4327_v32  ;;  %v7327_v13 = vld [vmem:[#allocation2 + $0xe7] sm:$0xff] }
 0x138   : > { %5696 = vmatprep.subr.bf16.mxu1 %v5695_v34  ;;  %v2030_v32 = vld [vmem:[#allocation2 + $0xb0] sm:$0xff] }
 0x139   : > { %5024 = vmatmul.mubr.f32.gmra.mrb[12].mxu1 %v7243_v54  ;;  %5398 = vmatmul.mubr.f32.gmra.mrb[32].mxu0 %v7079_v4  ;;  %v3013_v4 = vld [vmem:[#allocation2 + $0x2a] sm:$0xff]  ;;  %v3368_v0 = vld [vmem:[#allocation2 + $0xd3] sm:$0xff] }
 0x13a   : > { %5026 = vmatprep.mubr.f32.mxu1 %v7246_v27  ;;  %5400 = vmatprep.mubr.f32.mxu0 %v2713_v35  ;;  %v7324_v35 = vld [vmem:[#allocation2 + $0xdf] sm:$0xff] }
 0x13b   : > { %5698 = vmatpush3.bf16.msra.mxu1 %v5695_v34  ;;  %v7315_v34 = vld [vmem:[#allocation2 + $0xd7] sm:$0xff] }
 0x13c   : > { %5700 = vmatprep.subr.bf16.mxu1 %v5699_v17 }
 0x13d   : > { %5027 = vmatmul.mubr.f32.gmra.mrb[14].mxu1 %v7250_v24  ;;  %5401 = vmatmul.mubr.f32.gmra.mrb[34].mxu0 %v2714_v63  ;;  %v3025_v63 = vld [vmem:[#allocation2 + $0x8a] sm:$0xff] }
 0x13e   : > { %5029 = vmatprep.mubr.f32.mxu1 %v7259_v1  ;;  %5435 = vmatprep.mubr.f32.mxu0 %v3013_v4  ;;  %v4329_v4 = vld [vmem:[%s7559_s3 + $0x470] sm:$0xff] }
 0x13f   : > { %5702 = vmatpush3.bf16.msra.mxu1 %v5699_v17  ;;  %v3024_v17 = vld [vmem:[#allocation2 + $0x82] sm:$0xff] }
 0x140   : > { %5863 = vmatprep.subr.bf16.mxu1 %v6304_v18 }
 0x141   : > { %5030 = vmatmul.mubr.f32.gmra.mrb[16].mxu1 %v7262_v52  ;;  %5436 = vmatmul.mubr.f32.vlgmr.msra.gmra.mrb[0].mxu0 %v3014_v44  ;;  %v7336_v44 = vld [vmem:[#allocation2 + $0xef] sm:$0xff] }
 0x142   : > { %5032 = vmatprep.mubr.f32.mxu1 %v7266_v8  ;;  %5834 = vmatpush3.bf16.msra.mxu0 %v7146_v40  ;;  %v4322_v40 = vld [vmem:[%s7559_s3 + $0x438] sm:$0xff] }
 0x143   : > { %5438 = vmatprep.mubr.f32.mxu0 %v3015_v60  ;;  %5836 = vmatprep.subr.bf16.mxu0 %v5835_v43  ;;  %v5843_v16 = vpack.c.bf16 %v4322_v40, %v4321_v56  ;;  %v7339_v60 = vld [vmem:[#allocation2 + $0xf7] sm:$0xff]  ;;  %v7345_v56 = vld [vmem:[#allocation2 + $0x107] sm:$0xff] }
 0x144   : > { %v3029_v40 = vld [vmem:[#allocation2 + $0xaa] sm:$0xff] }
 0x145   : > { %5033 = vmatmul.mubr.f32.gmra.mrb[18].mxu1 %v7276_v6  ;;  %5439 = vmatmul.mubr.f32.gmra.mrb[2].mxu0 %v3016_v48  ;;  %v3027_v48 = vld [vmem:[#allocation2 + $0x9a] sm:$0xff] }
 0x146   : > { %5035 = vmatprep.mubr.f32.mxu1 %v7279_v26  ;;  %5441 = vmatprep.mubr.f32.mxu0 %v3017_v31  ;;  %v7342_v31 = vld [vmem:[#allocation2 + $0xff] sm:$0xff] }
 0x147   : > { %5838 = vmatpush3.bf16.msra.mxu0 %v5835_v43  ;;  %v4330_v43 = vld [vmem:[%s7559_s3 + $0x478] sm:$0xff] }
 0x148   : > { %5840 = vmatprep.subr.bf16.mxu0 %v5839_v2  ;;  %v5859_v5 = vpack.c.bf16 %v4330_v43, %v4329_v4  ;;  %v3371_v4 = vld [vmem:[#allocation2 + $0xeb] sm:$0xff] }
 0x149   : > { %5036 = vmatmul.mubr.f32.gmra.mrb[20].mxu1 %v7288_v49  ;;  %5442 = vmatmul.mubr.f32.gmra.mrb[4].mxu0 %v3018_v57  ;;  %v7348_v57 = vld [vmem:[#allocation2 + $0x10f] sm:$0xff] }
 0x14a   : > { %5038 = vmatprep.mubr.f32.mxu1 %v7291_v29  ;;  %5444 = vmatprep.mubr.f32.mxu0 %v3019_v30  ;;  %v3030_v30 = vld [vmem:[#allocation2 + $0xb2] sm:$0xff] }
 0x14b   : > { %5842 = vmatpush3.bf16.msra.mxu0 %v5839_v2  ;;  %v3028_v2 = vld [vmem:[#allocation2 + $0xa2] sm:$0xff]  ;;  %v2034_v43 = vld [vmem:[#allocation2 + $0xd0] sm:$0xff] }
 0x14c   : > { %5844 = vmatprep.subr.bf16.mxu0 %v5843_v16 }
 0x14d   : > { %5039 = vmatmul.mubr.f32.gmra.mrb[22].mxu1 %v7300_v53  ;;  %5445 = vmatmul.mubr.f32.gmra.mrb[6].mxu0 %v3020_v7  ;;  %v3032_v7 = vld [vmem:[#allocation2 + $0xc2] sm:$0xff] }
 0x14e   : > { %5041 = vmatprep.mubr.f32.mxu1 %v7303_v20  ;;  %5447 = vmatprep.mubr.f32.mxu0 %v3021_v14  ;;  %v3033_v14 = vld [vmem:[#allocation2 + $0xca] sm:$0xff] }
 0x14f   : > { %5846 = vmatpush3.bf16.msra.mxu0 %v5843_v16  ;;  %v7351_v16 = vld [vmem:[#allocation2 + $0x117] sm:$0xff] }
 0x150   : > { %5848 = vmatprep.subr.bf16.mxu0 %v5847_v39 }
 0x151   : > { %5042 = vmatmul.mubr.f32.gmra.mrb[24].mxu1 %v7312_v12  ;;  %5448 = vmatmul.mubr.f32.gmra.mrb[8].mxu0 %v3022_v36  ;;  %v1712_v36 = vld [vmem:[#allocation2 + $0x12f] sm:$0xff] }
 0x152   : > { %5044 = vmatprep.mubr.f32.mxu1 %v7315_v34  ;;  %5450 = vmatprep.mubr.f32.mxu0 %v3023_v37  ;;  %v3366_v37 = vld [vmem:[#allocation2 + $0xc3] sm:$0xff] }
 0x153   : > { %5850 = vmatpush3.bf16.msra.mxu0 %v5847_v39  ;;  %v3034_v39 = vld [vmem:[#allocation2 + $0xd2] sm:$0xff] }
 0x154   : > { %5852 = vmatprep.subr.bf16.mxu0 %v5851_v61 }
 0x155   : > { %5045 = vmatmul.mubr.f32.gmra.mrb[26].mxu1 %v7324_v35  ;;  %5451 = vmatmul.mubr.f32.gmra.mrb[10].mxu0 %v3024_v17  ;;  %v3369_v17 = vld [vmem:[#allocation2 + $0xdb] sm:$0xff] }
 0x156   : > { %5047 = vmatprep.mubr.f32.mxu1 %v7327_v13  ;;  %5453 = vmatprep.mubr.f32.mxu0 %v3025_v63  ;;  %v2032_v63 = vld [vmem:[#allocation2 + $0xc0] sm:$0xff] }
 0x157   : > { %5854 = vmatpush3.bf16.msra.mxu0 %v5851_v61  ;;  %v2029_v61 = vld [vmem:[#allocation2 + $0xa8] sm:$0xff] }
 0x158   : > { %5856 = vmatprep.subr.bf16.mxu0 %v5855_v55 }
 0x159   : > { %5048 = vmatmul.mubr.f32.gmra.mrb[28].mxu1 %v7336_v44  ;;  %5454 = vmatmul.mubr.f32.gmra.mrb[12].mxu0 %v3026_v22  ;;  %v2035_v22 = vld [vmem:[#allocation2 + $0xd8] sm:$0xff] }
 0x15a   : > { %5050 = vmatprep.mubr.f32.mxu1 %v7339_v60  ;;  %5456 = vmatprep.mubr.f32.mxu0 %v3027_v48  ;;  %v3374_v48 = vld [vmem:[#allocation2 + $0x103] sm:$0xff] }
 0x15b   : > { %5858 = vmatpush3.bf16.msra.mxu0 %v5855_v55  ;;  %v3370_v55 = vld [vmem:[#allocation2 + $0xe3] sm:$0xff] }
 0x15c   : > { %5860 = vmatprep.subr.bf16.mxu0 %v5859_v5 }
 0x15d   : > { %5051 = vmatmul.mubr.f32.gmra.mrb[30].mxu1 %v7342_v31  ;;  %5457 = vmatmul.mubr.f32.gmra.mrb[14].mxu0 %v3028_v2  ;;  %v3375_v2 = vld [vmem:[#allocation2 + $0x10b] sm:$0xff] }
 0x15e   : > { %5053 = vmatprep.mubr.f32.mxu1 %v7345_v56  ;;  %5459 = vmatprep.mubr.f32.mxu0 %v3029_v40  ;;  %v3376_v40 = vld [vmem:[#allocation2 + $0x113] sm:$0xff] }
 0x15f   : > { %5862 = vmatpush3.bf16.msra.mxu0 %v5859_v5  ;;  %v3373_v5 = vld [vmem:[#allocation2 + $0xfb] sm:$0xff] }
 0x161   : > { %5054 = vmatmul.mubr.f32.gmra.mrb[32].mxu1 %v7348_v57  ;;  %5460 = vmatmul.mubr.f32.gmra.mrb[16].mxu0 %v3030_v30  ;;  %v3377_v30 = vld [vmem:[#allocation2 + $0x11b] sm:$0xff] }
 0x162   : > { %5056 = vmatprep.mubr.f32.mxu1 %v7351_v16  ;;  %5462 = vmatprep.mubr.f32.mxu0 %v3031_v21  ;;  %v3378_v21 = vld [vmem:[#allocation2 + $0x123] sm:$0xff] }
 0x165   : > { %5057 = vmatmul.mubr.f32.gmra.mrb[34].mxu1 %v7354_v15  ;;  %5463 = vmatmul.mubr.f32.gmra.mrb[18].mxu0 %v3032_v7  ;;  %v3379_v7 = vld [vmem:[#allocation2 + $0x12b] sm:$0xff] }
 0x166   : > { %5091 = vmatprep.mubr.f32.mxu1 %v7167_v28  ;;  %5465 = vmatprep.mubr.f32.mxu0 %v3033_v14  ;;  %v3037_v28 = vld [vmem:[#allocation2 + $0xea] sm:$0xff]  ;;  %v3381_v14 = vld [vmem:[#allocation2 + $0x13b] sm:$0xff] }
 0x169   : > { %5092 = vmatmul.mubr.f32.vlgmr.msra.gmra.mrb[0].mxu1 %v7173_v47  ;;  %5466 = vmatmul.mubr.f32.gmra.mrb[20].mxu0 %v3034_v39  ;;  %v3038_v47 = vld [vmem:[#allocation2 + $0xf2] sm:$0xff] }
 0x16a   : > { %5094 = vmatprep.mubr.f32.mxu1 %v7176_v42  ;;  %5871 = vmatpush3.bf16.msra.mxu1 %v6304_v18  ;;  %v3039_v18 = vld [vmem:[#allocation2 + $0xfa] sm:$0xff]  ;;  %v3040_v42 = vld [vmem:[#allocation2 + $0x102] sm:$0xff]  ;;  %v2042_v39 = vld [vmem:[#allocation2 + $0x110] sm:$0xff] }
 0x16b   : > { %5468 = vmatprep.mubr.f32.mxu0 %v3035_v62  ;;  %5864 = vmatprep.subr.bf16.mxu1 %v6329_v25  ;;  %v3380_v62 = vld [vmem:[#allocation2 + $0x133] sm:$0xff] }
 0x16d   : > { %5095 = vmatmul.mubr.f32.gmra.mrb[2].mxu1 %v7187_v45  ;;  %5469 = vmatmul.mubr.f32.gmra.mrb[22].mxu0 %v3036_v46  ;;  %v3042_v45 = vld [vmem:[#allocation2 + $0x112] sm:$0xff] }
 0x16e   : > { %5097 = vmatprep.mubr.f32.mxu1 %v7190_v59  ;;  %5872 = vmatpush3.bf16.msra.mxu1 %v6329_v25  ;;  %v3041_v25 = vld [vmem:[#allocation2 + $0x10a] sm:$0xff]  ;;  %v3043_v59 = vld [vmem:[#allocation2 + $0x11a] sm:$0xff] }
 0x16f   : > { %5471 = vmatprep.mubr.f32.mxu0 %v3037_v28  ;;  %5865 = vmatprep.subr.bf16.mxu1 %v6357_v33  ;;  %v2043_v46 = vld [vmem:[#allocation2 + $0x118] sm:$0xff]  ;;  %v3382_v28 = vld [vmem:[#allocation2 + $0x143] sm:$0xff] }
 0x171   : > { %5098 = vmatmul.mubr.f32.gmra.mrb[4].mxu1 %v7201_v11  ;;  %5472 = vmatmul.mubr.f32.gmra.mrb[24].mxu0 %v3038_v47  ;;  %v3045_v11 = vld [vmem:[#allocation2 + $0x12a] sm:$0xff]  ;;  %v2044_v47 = vld [vmem:[#allocation2 + $0x120] sm:$0xff] }
 0x172   : > { %5100 = vmatprep.mubr.f32.mxu1 %v7204_v51  ;;  %5474 = vmatprep.mubr.f32.mxu0 %v3039_v18  ;;  %v3046_v51 = vld [vmem:[#allocation2 + $0x132] sm:$0xff]  ;;  %v2045_v18 = vld [vmem:[#allocation2 + $0x128] sm:$0xff] }
 0x173   : > { %5873 = vmatpush3.bf16.msra.mxu1 %v6357_v33  ;;  %v3044_v33 = vld [vmem:[#allocation2 + $0x122] sm:$0xff] }
 0x174   : > { %5866 = vmatprep.subr.bf16.mxu1 %v6385_v41 }
 0x175   : > { %5101 = vmatmul.mubr.f32.gmra.mrb[6].mxu1 %v7215_v9  ;;  %5475 = vmatmul.mubr.f32.gmra.mrb[26].mxu0 %v3040_v42  ;;  %v3347_v9 = vld [vmem:[#allocation2 + $0x2b] sm:$0xff] }
 0x176   : > { %5103 = vmatprep.mubr.f32.mxu1 %v7218_v23  ;;  %5477 = vmatprep.mubr.f32.mxu0 %v3041_v25  ;;  %v3349_v23 = vld [vmem:[#allocation2 + $0x3b] sm:$0xff]  ;;  %v2046_v42 = vld [vmem:[#allocation2 + $0x130] sm:$0xff]  ;;  %v3761_v25 = vpop.permute.xlu1 %3760 }
 0x177   : > { %5874 = vmatpush3.bf16.msra.mxu1 %v6385_v41  ;;  %v3047_v41 = vld [vmem:[#allocation2 + $0x13a] sm:$0xff] }
 0x178   : > { %5867 = vmatprep.subr.bf16.mxu1 %v6413_v50 }
 0x179   : > { %5104 = vmatmul.mubr.f32.gmra.mrb[8].mxu1 %v7229_v3  ;;  %5478 = vmatmul.mubr.f32.gmra.mrb[28].mxu0 %v3042_v45  ;;  %v3351_v3 = vld [vmem:[#allocation2 + $0x4b] sm:$0xff]  ;;  %v3756_v45 = vpop.permute.xlu0 %3755 }
 0x17a   : > { %5106 = vmatprep.mubr.f32.mxu1 %v7232_v38  ;;  %5480 = vmatprep.mubr.f32.mxu0 %v3043_v59  ;;  %v3352_v38 = vld [vmem:[#allocation2 + $0x53] sm:$0xff]  ;;  %v3771_v59 = vpop.permute.xlu1 %3770 }
 0x17b   : > { %5875 = vmatpush3.bf16.msra.mxu1 %v6413_v50  ;;  %v3048_v50 = vld [vmem:[#allocation2 + $0x142] sm:$0xff] }
 0x17c   : > { %5868 = vmatprep.subr.bf16.mxu1 %v6441_v58 }
 0x17d   : > { %5107 = vmatmul.mubr.f32.gmra.mrb[10].mxu1 %v7243_v54  ;;  %5481 = vmatmul.mubr.f32.gmra.mrb[30].mxu0 %v3044_v33  ;;  %v3354_v54 = vld [vmem:[#allocation2 + $0x63] sm:$0xff] }
 0x17e   : > { %5109 = vmatprep.mubr.f32.mxu1 %v7246_v27  ;;  %5483 = vmatprep.mubr.f32.mxu0 %v3045_v11  ;;  %v3355_v27 = vld [vmem:[#allocation2 + $0x6b] sm:$0xff]  ;;  %v3766_v11 = vpop.permute.xlu0 %3765 }
 0x17f   : > { %5876 = vmatpush3.bf16.msra.mxu1 %v6441_v58  ;;  %v3348_v58 = vld [vmem:[#allocation2 + $0x33] sm:$0xff] }
 0x180   : > { %5869 = vmatprep.subr.bf16.mxu1 %v6469_v10 }
 0x181   : > { %5110 = vmatmul.mubr.f32.gmra.mrb[12].mxu1 %v7250_v24  ;;  %5484 = vmatmul.mubr.f32.gmra.mrb[32].mxu0 %v3046_v51  ;;  %v3356_v24 = vld [vmem:[#allocation2 + $0x73] sm:$0xff] }
 0x182   : > { %5112 = vmatprep.mubr.f32.mxu1 %v7259_v1  ;;  %5486 = vmatprep.mubr.f32.mxu0 %v3047_v41  ;;  %v3357_v1 = vld [vmem:[#allocation2 + $0x7b] sm:$0xff] }
 0x183   : > { %5877 = vmatpush3.bf16.msra.mxu1 %v6469_v10  ;;  %v3350_v10 = vld [vmem:[#allocation2 + $0x43] sm:$0xff] }
 0x184   : > { %5870 = vmatprep.subr.bf16.mxu1 %v6497_v19 }
 0x185   : > { %5113 = vmatmul.mubr.f32.gmra.mrb[14].mxu1 %v7262_v52  ;;  %5487 = vmatmul.mubr.f32.gmra.mrb[34].mxu0 %v3048_v50  ;;  %v3358_v52 = vld [vmem:[#allocation2 + $0x83] sm:$0xff] }
 0x186   : > { %5115 = vmatprep.mubr.f32.mxu1 %v7266_v8  ;;  %5521 = vmatprep.mubr.f32.mxu0 %v3347_v9  ;;  %v3359_v8 = vld [vmem:[#allocation2 + $0x8b] sm:$0xff]  ;;  %v3781_v9 = vpop.permute.xlu1 %3780 }
 0x187   : > { %5878 = vmatpush3.bf16.msra.mxu1 %v6497_v19  ;;  %v3353_v19 = vld [vmem:[#allocation2 + $0x5b] sm:$0xff] }
 0x189   : > { %5116 = vmatmul.mubr.f32.gmra.mrb[16].mxu1 %v7276_v6  ;;  %5522 = vmatmul.mubr.f32.vlgmr.msra.gmra.mrb[0].mxu0 %v3348_v58  ;;  %v3360_v6 = vld [vmem:[#allocation2 + $0x93] sm:$0xff]  ;;  %v3776_v58 = vpop.permute.xlu0 %3775 }
 0x18a   : > { %5118 = vmatprep.mubr.f32.mxu1 %v7279_v26  ;;  %5524 = vmatprep.mubr.f32.mxu0 %v3349_v23  ;;  %v3361_v26 = vld [vmem:[#allocation2 + $0x9b] sm:$0xff] }
 0x18d   : > { %5119 = vmatmul.mubr.f32.gmra.mrb[18].mxu1 %v7288_v49  ;;  %5525 = vmatmul.mubr.f32.gmra.mrb[2].mxu0 %v3350_v10  ;;  %v3362_v49 = vld [vmem:[#allocation2 + $0xa3] sm:$0xff] }
 0x18e   : > { %5121 = vmatprep.mubr.f32.mxu1 %v7291_v29  ;;  %5527 = vmatprep.mubr.f32.mxu0 %v3351_v3  ;;  %v3363_v29 = vld [vmem:[#allocation2 + $0xab] sm:$0xff]  ;;  %v7406_v3 = vpop.permute.xlu1 %3790 }
 0x191   : > { %5122 = vmatmul.mubr.f32.gmra.mrb[20].mxu1 %v7300_v53  ;;  %5528 = vmatmul.mubr.f32.gmra.mrb[4].mxu0 %v3352_v38  ;;  %v3364_v53 = vld [vmem:[#allocation2 + $0xb3] sm:$0xff] }
 0x192   : > { %5124 = vmatprep.mubr.f32.mxu1 %v7303_v20  ;;  %5530 = vmatprep.mubr.f32.mxu0 %v3353_v19  ;;  %v1711_v20 = vld [vmem:[#allocation2 + $0x127] sm:$0xff]  ;;  %v7408_v19 = vpop.permute.xlu0 %3785 }
 0x195   : > { %5125 = vmatmul.mubr.f32.gmra.mrb[22].mxu1 %v7312_v12  ;;  %5531 = vmatmul.mubr.f32.gmra.mrb[6].mxu0 %v3354_v54  ;;  %v3365_v12 = vld [vmem:[#allocation2 + $0xbb] sm:$0xff] }
 0x196   : > { %5127 = vmatprep.mubr.f32.mxu1 %v7315_v34  ;;  %5533 = vmatprep.mubr.f32.mxu0 %v3355_v27  ;;  %v3367_v34 = vld [vmem:[#allocation2 + $0xcb] sm:$0xff] }
 0x199   : > { %5128 = vmatmul.mubr.f32.gmra.mrb[24].mxu1 %v7324_v35  ;;  %5534 = vmatmul.mubr.f32.gmra.mrb[8].mxu0 %v3356_v24  ;;  %v2031_v35 = vld [vmem:[#allocation2 + $0xb8] sm:$0xff] }
 0x19a   : > { %5130 = vmatprep.mubr.f32.mxu1 %v7327_v13  ;;  %5536 = vmatprep.mubr.f32.mxu0 %v3357_v1  ;;  %v2033_v13 = vld [vmem:[#allocation2 + $0xc8] sm:$0xff]  ;;  %v7414_v1 = vpop.permute.xlu1 %3800 }
 0x19d   : > { %5131 = vmatmul.mubr.f32.gmra.mrb[26].mxu1 %v7336_v44  ;;  %5537 = vmatmul.mubr.f32.gmra.mrb[10].mxu0 %v3358_v52  ;;  %v3372_v44 = vld [vmem:[#allocation2 + $0xf3] sm:$0xff]  ;;  %v7416_v52 = vpop.permute.xlu0 %3795 }
 0x19e   : > { %5133 = vmatprep.mubr.f32.mxu1 %v7339_v60  ;;  %5539 = vmatprep.mubr.f32.mxu0 %v3359_v8  ;;  %v2036_v60 = vld [vmem:[#allocation2 + $0xe0] sm:$0xff] }
 0x1a1   : > { %5134 = vmatmul.mubr.f32.gmra.mrb[28].mxu1 %v7342_v31  ;;  %5540 = vmatmul.mubr.f32.gmra.mrb[12].mxu0 %v3360_v6  ;;  %v2037_v31 = vld [vmem:[#allocation2 + $0xe8] sm:$0xff] }
 0x1a2   : > { %5136 = vmatprep.mubr.f32.mxu1 %v7345_v56  ;;  %5542 = vmatprep.mubr.f32.mxu0 %v3361_v26  ;;  %v2038_v56 = vld [vmem:[#allocation2 + $0xf0] sm:$0xff]  ;;  %v7422_v26 = vpop.permute.xlu1 %3810 }
 0x1a5   : > { %5137 = vmatmul.mubr.f32.gmra.mrb[30].mxu1 %v7348_v57  ;;  %5543 = vmatmul.mubr.f32.gmra.mrb[14].mxu0 %v3362_v49  ;;  %v2039_v57 = vld [vmem:[#allocation2 + $0xf8] sm:$0xff] }
 0x1a6   : > { %5139 = vmatprep.mubr.f32.mxu1 %v7351_v16  ;;  %5545 = vmatprep.mubr.f32.mxu0 %v3363_v29  ;;  %v2040_v16 = vld [vmem:[#allocation2 + $0x100] sm:$0xff]  ;;  %v7426_v29 = vpop.permute.xlu0 %3805 }
 0x1a9   : > { %5140 = vmatmul.mubr.f32.gmra.mrb[32].mxu1 %v7354_v15  ;;  %5546 = vmatmul.mubr.f32.gmra.mrb[16].mxu0 %v3364_v53  ;;  %v2041_v15 = vld [vmem:[#allocation2 + $0x108] sm:$0xff] }
 0x1aa   : > { %5142 = vmatprep.mubr.f32.mxu1 %v1711_v20  ;;  %5548 = vmatprep.mubr.f32.mxu0 %v3365_v12 }
 0x1ad   : > { %5143 = vmatmul.mubr.f32.gmra.mrb[34].mxu1 %v1712_v36  ;;  %5549 = vmatmul.mubr.f32.gmra.mrb[18].mxu0 %v3366_v37  ;;  %v7434_v36 = vpop.permute.xlu1 %3820  ;;  %v7436_v37 = vpop.permute.xlu0 %3815 }
 0x1ae   : > { %5204 = vmatprep.mubr.f32.mxu1 %v2029_v61  ;;  %5551 = vmatprep.mubr.f32.mxu0 %v3367_v34 }
 0x1b1   : > { %5205 = vmatmul.mubr.f32.vlgmr.msra.gmra.mrb[18].mxu1 %v2030_v32  ;;  %5552 = vmatmul.mubr.f32.gmra.mrb[20].mxu0 %v3368_v0 }
 0x1b2   : > { %5207 = vmatprep.mubr.f32.mxu1 %v2031_v35  ;;  %5554 = vmatprep.mubr.f32.mxu0 %v3369_v17 }
 0x1b5   : > { %5208 = vmatmul.mubr.f32.gmra.mrb[20].mxu1 %v2032_v63  ;;  %5555 = vmatmul.mubr.f32.gmra.mrb[22].mxu0 %v3370_v55 }
 0x1b6   : > { %5210 = vmatprep.mubr.f32.mxu1 %v2033_v13  ;;  %5557 = vmatprep.mubr.f32.mxu0 %v3371_v4 }
 0x1b9   : > { %5211 = vmatmul.mubr.f32.gmra.mrb[22].mxu1 %v2034_v43  ;;  %5558 = vmatmul.mubr.f32.gmra.mrb[24].mxu0 %v3372_v44 }
 0x1ba   : > { %5213 = vmatprep.mubr.f32.mxu1 %v2035_v22  ;;  %5560 = vmatprep.mubr.f32.mxu0 %v3373_v5  ;;  %v7451_v22 = vpop.permute.xlu1 %3830 }
 0x1bd   : > { %5214 = vmatmul.mubr.f32.gmra.mrb[24].mxu1 %v2036_v60  ;;  %5561 = vmatmul.mubr.f32.gmra.mrb[26].mxu0 %v3374_v48 }
 0x1be   : > { %5216 = vmatprep.mubr.f32.mxu1 %v2037_v31  ;;  %5563 = vmatprep.mubr.f32.mxu0 %v3375_v2  ;;  %v7453_v31 = vpop.permute.xlu0 %3825 }
 0x1c1   : > { %5217 = vmatmul.mubr.f32.gmra.mrb[26].mxu1 %v2038_v56  ;;  %5564 = vmatmul.mubr.f32.gmra.mrb[28].mxu0 %v3376_v40 }
 0x1c2   : > { %5219 = vmatprep.mubr.f32.mxu1 %v2039_v57  ;;  %5566 = vmatprep.mubr.f32.mxu0 %v3377_v30 }
 0x1c5   : > { %5220 = vmatmul.mubr.f32.gmra.mrb[28].mxu1 %v2040_v16  ;;  %5567 = vmatmul.mubr.f32.gmra.mrb[30].mxu0 %v3378_v21 }
 0x1c6   : > { %5222 = vmatprep.mubr.f32.mxu1 %v2041_v15  ;;  %5569 = vmatprep.mubr.f32.mxu0 %v3379_v7 }
 0x1c9   : > { %5223 = vmatmul.mubr.f32.gmra.mrb[30].mxu1 %v2042_v39  ;;  %5570 = vmatmul.mubr.f32.gmra.mrb[32].mxu0 %v3380_v62  ;;  %v7458_v39 = vpop.permute.xlu1 %3840 }
 0x1ca   : > { %5225 = vmatprep.mubr.f32.mxu1 %v2043_v46  ;;  %5572 = vmatprep.mubr.f32.mxu0 %v3381_v14 }
 0x1cd   : > { %5226 = vmatmul.mubr.f32.gmra.mrb[32].mxu1 %v2044_v47  ;;  %5573 = vmatmul.mubr.f32.gmra.mrb[34].mxu0 %v3382_v28 }
 0x1ce   : > { %5228 = vmatprep.mubr.f32.mxu1 %v2045_v18 }
 0x1d1   : > { %5229 = vmatmul.mubr.f32.gmra.mrb[34].mxu1 %v2046_v42  ;;  %v7461_v42 = vpop.permute.xlu0 %3835 }
 0x23c   : > { %v5093_v33 = vpop.f32.mrb[0].mxu1 }
 0x23d   : > { %v1796_v41 = vpop.f32.mrb[1].mxu1 }
 0x240   : > { %v5096_v51 = vpop.f32.mrb[2].mxu1 }
 0x241   : > { %v1806_v50 = vpop.f32.mrb[3].mxu1 }
 0x244   : > { %v5099_v23 = vpop.f32.mrb[4].mxu1 }
 0x245   : > { %v1816_v10 = vpop.f32.mrb[5].mxu1 }
 0x248   : > { %v5102_v38 = vpop.f32.mrb[6].mxu1 }
 0x249   : > { %v1826_v54 = vpop.f32.mrb[7].mxu1 }
 0x24c   : > { %v7410_v27 = vpop.f32.mrb[8].mxu1 }
 0x24d   : > { %v7412_v24 = vpop.f32.mrb[9].mxu1 }
 0x250   : > { %v7418_v8 = vpop.f32.mrb[10].mxu1 }
 0x251   : > { %v7420_v6 = vpop.f32.mrb[11].mxu1 }
 0x254   : > { %v7424_v49 = vpop.f32.mrb[12].mxu1 }
 0x255   : > { %v7428_v53 = vpop.f32.mrb[13].mxu1 }
 0x258   : > { %v7430_v20 = vpop.f32.mrb[14].mxu1 }
 0x259   : > { %v7432_v12 = vpop.f32.mrb[15].mxu1 }
 0x25c   : > { %v7438_v61 = vpop.f32.mrb[16].mxu1  ;;  %v5523_v34 = vpop.f32.mrb[0].mxu0 }
 0x25d   : > { %v7447_v32 = vpop.f32.mrb[17].mxu1  ;;  %v5879_v0 = vadd.f32 %v5523_v34, %v5093_v33  ;;  %v3466_v35 = vpop.f32.mrb[1].mxu0 }
 0x25e   : > { %v5880_v17 = vadd.f32 %v3466_v35, %v1796_v41 }
 0x25f   : > { %3682 = vst [vmem:[%s7445_s8 + $0x8] sm:$0xff] %v5879_v0  ;;  %v3934_v63 = vmul.f32 %v5879_v0, %v3761_v25  ;;  %v7468_v0 = vpop.permute.xlu1 %3850 }
 0x260   : > { %3681 = vst [vmem:[%s7445_s8] sm:$0xff] %v5880_v17  ;;  %v3933_v55 = vmul.f32 %v5880_v17, %v3756_v45  ;;  %v5526_v13 = vpop.f32.mrb[2].mxu0 }
 0x261   : > { %v4012_v4 = vmul.f32 %v3934_v63, %v3934_v63  ;;  %v5881_v43 = vadd.f32 %v5526_v13, %v5096_v51  ;;  %v3476_v44 = vpop.f32.mrb[3].mxu0 }
 0x262   : > { %v3969_v5 = vadd.f32 %v3934_v63, %v3933_v55  ;;  %v4011_v60 = vmul.f32 %v3933_v55, %v3933_v55  ;;  %v5882_v48 = vadd.f32 %v3476_v44, %v1806_v50 }
 0x263   : > { %3684 = vst [vmem:[%s7445_s8 + $0x18] sm:$0xff] %v5881_v43  ;;  %v3936_v2 = vmul.f32 %v5881_v43, %v3771_v59 }
 0x264   : > { %v4047_v56 = vadd.f32 %v4012_v4, %v4011_v60  ;;  %3683 = vst [vmem:[%s7445_s8 + $0x10] sm:$0xff] %v5882_v48  ;;  %v3935_v40 = vmul.f32 %v5882_v48, %v3766_v11  ;;  %v5529_v57 = vpop.f32.mrb[4].mxu0 }
 0x265   : > { %v5883_v30 = vadd.f32 %v5529_v57, %v5099_v23  ;;  %v3486_v16 = vpop.f32.mrb[5].mxu0  ;;  %v4014_v14 = vmul.f32 %v3936_v2, %v3936_v2 }
 0x266   : > { %v3970_v21 = vadd.f32 %v3969_v5, %v3935_v40  ;;  %v4013_v15 = vmul.f32 %v3935_v40, %v3935_v40  ;;  %v5884_v7 = vadd.f32 %v3486_v16, %v1816_v10  ;;  %v7481_v40 = vpop.permute.xlu1 %3860 }
 0x267   : > { %3686 = vst [vmem:[%s7445_s8 + $0x28] sm:$0xff] %v5883_v30  ;;  %v3938_v46 = vmul.f32 %v5883_v30, %v3781_v9 }
 0x268   : > { %v4048_v62 = vadd.f32 %v4047_v56, %v4013_v15  ;;  %3685 = vst [vmem:[%s7445_s8 + $0x20] sm:$0xff] %v5884_v7  ;;  %v3937_v28 = vmul.f32 %v5884_v7, %v3776_v58  ;;  %v3971_v47 = vadd.f32 %v3970_v21, %v3936_v2  ;;  %v5532_v18 = vpop.f32.mrb[6].mxu0 }
 0x269   : > { %v5885_v25 = vadd.f32 %v5532_v18, %v5102_v38  ;;  %v3496_v45 = vpop.f32.mrb[7].mxu0  ;;  %v4016_v50 = vmul.f32 %v3938_v46, %v3938_v46 }
 0x26a   : > { %v3972_v59 = vadd.f32 %v3971_v47, %v3937_v28  ;;  %v4015_v33 = vmul.f32 %v3937_v28, %v3937_v28  ;;  %v4049_v11 = vadd.f32 %v4048_v62, %v4014_v14  ;;  %v5886_v41 = vadd.f32 %v3496_v45, %v1826_v54  ;;  %v7494_v45 = vpop.permute.xlu1 %3870 }
 0x26b   : > { %3688 = vst [vmem:[%s7445_s8 + $0x38] sm:$0xff] %v5885_v25  ;;  %v3940_v51 = vmul.f32 %v5885_v25, %v7406_v3  ;;  %v7471_v3 = vpop.permute.xlu0 %3845 }
 0x26c   : > { %v4050_v23 = vadd.f32 %v4049_v11, %v4015_v33  ;;  %3687 = vst [vmem:[%s7445_s8 + $0x30] sm:$0xff] %v5886_v41  ;;  %v3939_v9 = vmul.f32 %v5886_v41, %v7408_v19  ;;  %v3973_v58 = vadd.f32 %v3972_v59, %v3938_v46  ;;  %v5535_v10 = vpop.f32.mrb[8].mxu0 }
 0x26d   : > { %v5887_v34 = vadd.f32 %v5535_v10, %v7410_v27  ;;  %v3506_v38 = vpop.f32.mrb[9].mxu0  ;;  %v4018_v55 = vmul.f32 %v3940_v51, %v3940_v51 }
 0x26e   : > { %v3974_v35 = vadd.f32 %v3973_v58, %v3939_v9  ;;  %v4017_v17 = vmul.f32 %v3939_v9, %v3939_v9  ;;  %v4051_v54 = vadd.f32 %v4050_v23, %v4016_v50  ;;  %v5888_v63 = vadd.f32 %v3506_v38, %v7412_v24 }
 0x26f   : > { %3690 = vst [vmem:[%s7445_s8 + $0x48] sm:$0xff] %v5887_v34  ;;  %v3942_v19 = vmul.f32 %v5887_v34, %v7414_v1  ;;  %v7485_v16 = vpop.permute.xlu0 %3855 }
 0x270   : > { %v4052_v13 = vadd.f32 %v4051_v54, %v4017_v17  ;;  %3689 = vst [vmem:[%s7445_s8 + $0x40] sm:$0xff] %v5888_v63  ;;  %v3941_v27 = vmul.f32 %v5888_v63, %v7416_v52  ;;  %v3975_v4 = vadd.f32 %v3974_v35, %v3940_v51  ;;  %v5538_v43 = vpop.f32.mrb[10].mxu0  ;;  %v7506_v17 = vpop.permute.xlu1 %3880 }
 0x271   : > { %v5889_v44 = vadd.f32 %v5538_v43, %v7418_v8  ;;  %v3516_v5 = vpop.f32.mrb[11].mxu0  ;;  %v4020_v1 = vmul.f32 %v3942_v19, %v3942_v19 }
 0x272   : > { %v3976_v60 = vadd.f32 %v3975_v4, %v3941_v27  ;;  %v4019_v48 = vmul.f32 %v3941_v27, %v3941_v27  ;;  %v4053_v24 = vadd.f32 %v4052_v13, %v4018_v55  ;;  %v5890_v2 = vadd.f32 %v3516_v5, %v7420_v6 }
 0x273   : > { %3692 = vst [vmem:[%s7445_s8 + $0x58] sm:$0xff] %v5889_v44  ;;  %v3944_v56 = vmul.f32 %v5889_v44, %v7422_v26  ;;  %v7497_v41 = vpop.permute.xlu0 %3865 }
 0x274   : > { %v4054_v57 = vadd.f32 %v4053_v24, %v4019_v48  ;;  %3691 = vst [vmem:[%s7445_s8 + $0x50] sm:$0xff] %v5890_v2  ;;  %v3943_v52 = vmul.f32 %v5890_v2, %v7426_v29  ;;  %v3977_v30 = vadd.f32 %v3976_v60, %v3942_v19  ;;  %v5541_v8 = vpop.f32.mrb[12].mxu0 }
 0x275   : > { %v5891_v21 = vadd.f32 %v5541_v8, %v7424_v49  ;;  %v3526_v15 = vpop.f32.mrb[13].mxu0  ;;  %v4022_v62 = vmul.f32 %v3944_v56, %v3944_v56 }
 0x276   : > { %v3978_v6 = vadd.f32 %v3977_v30, %v3943_v52  ;;  %v4021_v7 = vmul.f32 %v3943_v52, %v3943_v52  ;;  %v4055_v14 = vadd.f32 %v4054_v57, %v4020_v1  ;;  %v5892_v26 = vadd.f32 %v3526_v15, %v7428_v53 }
 0x277   : > { %3694 = vst [vmem:[%s7445_s8 + $0x68] sm:$0xff] %v5891_v21  ;;  %v3946_v28 = vmul.f32 %v5891_v21, %v7434_v36  ;;  %v7511_v13 = vpop.permute.xlu0 %3875 }
 0x278   : > { %v4056_v46 = vadd.f32 %v4055_v14, %v4021_v7  ;;  %3693 = vst [vmem:[%s7445_s8 + $0x60] sm:$0xff] %v5892_v26  ;;  %v3945_v29 = vmul.f32 %v5892_v26, %v7436_v37  ;;  %v3979_v47 = vadd.f32 %v3978_v6, %v3944_v56  ;;  %v5544_v18 = vpop.f32.mrb[14].mxu0  ;;  %v7513_v56 = vpop.permute.xlu1 %3890 }
 0x279   : > { %v5893_v49 = vadd.f32 %v5544_v18, %v7430_v20  ;;  %v3536_v25 = vpop.f32.mrb[15].mxu0  ;;  %v4024_v51 = vmul.f32 %v3946_v28, %v3946_v28 }
 0x27a   : > { %v3980_v59 = vadd.f32 %v3979_v47, %v3945_v29  ;;  %v4023_v33 = vmul.f32 %v3945_v29, %v3945_v29  ;;  %v4057_v53 = vadd.f32 %v4056_v46, %v4022_v62  ;;  %v5894_v11 = vadd.f32 %v3536_v25, %v7432_v12 }
 0x27b   : > { %3696 = vst [vmem:[%s7445_s8 + $0x78] sm:$0xff] %v5893_v49  ;;  %v3948_v36 = vmul.f32 %v5893_v49, %v7451_v22  ;;  %v7515_v1 = vpop.permute.xlu0 %3885 }
 0x27c   : > { %v4058_v37 = vadd.f32 %v4057_v53, %v4023_v33  ;;  %3695 = vst [vmem:[%s7445_s8 + $0x70] sm:$0xff] %v5894_v11  ;;  %v3947_v20 = vmul.f32 %v5894_v11, %v7453_v31  ;;  %v3981_v50 = vadd.f32 %v3980_v59, %v3946_v28  ;;  %v5547_v23 = vpop.f32.mrb[16].mxu0 }
 0x27d   : > { %v5895_v9 = vadd.f32 %v5547_v23, %v7438_v61  ;;  %v3546_v58 = vpop.f32.mrb[17].mxu0  ;;  %v4026_v35 = vmul.f32 %v3948_v36, %v3948_v36 }
 0x27e   : > { %v3982_v10 = vadd.f32 %v3981_v50, %v3947_v20  ;;  %v4025_v34 = vmul.f32 %v3947_v20, %v3947_v20  ;;  %v4059_v12 = vadd.f32 %v4058_v37, %v4024_v51  ;;  %v5896_v38 = vadd.f32 %v3546_v58, %v7447_v32 }
 0x27f   : > { %3698 = vst [vmem:[%s7445_s8 + $0x88] sm:$0xff] %v5895_v9  ;;  %v3950_v54 = vmul.f32 %v5895_v9, %v7458_v39  ;;  %v3896_v51 = vpop.permute.xlu0 %3895 }
 0x280   : > { %v4060_v22 = vadd.f32 %v4059_v12, %v4025_v34  ;;  %3697 = vst [vmem:[%s7445_s8 + $0x80] sm:$0xff] %v5896_v38  ;;  %v3949_v31 = vmul.f32 %v5896_v38, %v7461_v42  ;;  %v3983_v63 = vadd.f32 %v3982_v10, %v3948_v36  ;;  %v5550_v55 = vpop.f32.mrb[18].mxu0  ;;  %v3901_v36 = vpop.permute.xlu1 %3900 }
 0x281   : > { %v3556_v61 = vpop.f32.mrb[19].mxu0  ;;  %v4028_v43 = vmul.f32 %v3950_v54, %v3950_v54 }
 0x282   : > { %v3984_v19 = vadd.f32 %v3983_v63, %v3949_v31  ;;  %v4027_v27 = vmul.f32 %v3949_v31, %v3949_v31  ;;  %v4061_v4 = vadd.f32 %v4060_v22, %v4026_v35 }
 0x284   : > { %v5206_v32 = vpop.f32.mrb[18].mxu1  ;;  %v4062_v44 = vadd.f32 %v4061_v4, %v4027_v27  ;;  %v3985_v5 = vadd.f32 %v3984_v19, %v3950_v54  ;;  %v5553_v60 = vpop.f32.mrb[20].mxu0 }
 0x285   : > { %v2220_v48 = vpop.f32.mrb[19].mxu1  ;;  %v5897_v39 = vadd.f32 %v5550_v55, %v5206_v32  ;;  %v3566_v24 = vpop.f32.mrb[21].mxu0 }
 0x286   : > { %v5898_v2 = vadd.f32 %v3556_v61, %v2220_v48  ;;  %v4063_v42 = vadd.f32 %v4062_v44, %v4028_v43  ;;  %v3906_v48 = vpop.permute.xlu0 %3905 }
 0x287   : > { %3700 = vst [vmem:[%s7445_s8 + $0x98] sm:$0xff] %v5897_v39  ;;  %v3952_v52 = vmul.f32 %v5897_v39, %v7468_v0 }
 0x288   : > { %v5209_v57 = vpop.f32.mrb[20].mxu1  ;;  %3699 = vst [vmem:[%s7445_s8 + $0x90] sm:$0xff] %v5898_v2  ;;  %v3951_v30 = vmul.f32 %v5898_v2, %v7471_v3  ;;  %v5556_v8 = vpop.f32.mrb[22].mxu0 }
 0x289   : > { %v2230_v21 = vpop.f32.mrb[21].mxu1  ;;  %v5899_v15 = vadd.f32 %v5553_v60, %v5209_v57  ;;  %v3576_v6 = vpop.f32.mrb[23].mxu0  ;;  %v4030_v46 = vmul.f32 %v3952_v52, %v3952_v52 }
 0x28a   : > { %v3986_v7 = vadd.f32 %v3985_v5, %v3951_v30  ;;  %v4029_v14 = vmul.f32 %v3951_v30, %v3951_v30  ;;  %v5900_v26 = vadd.f32 %v3566_v24, %v2230_v21  ;;  %v3911_v60 = vpop.permute.xlu1 %3910 }
 0x28b   : > { %3702 = vst [vmem:[%s7445_s8 + $0xa8] sm:$0xff] %v5899_v15  ;;  %v3954_v62 = vmul.f32 %v5899_v15, %v7481_v40 }
 0x28c   : > { %v4064_v28 = vadd.f32 %v4063_v42, %v4029_v14  ;;  %v5212_v29 = vpop.f32.mrb[22].mxu1  ;;  %3701 = vst [vmem:[%s7445_s8 + $0xa0] sm:$0xff] %v5900_v26  ;;  %v3953_v0 = vmul.f32 %v5900_v26, %v7485_v16  ;;  %v3987_v47 = vadd.f32 %v3986_v7, %v3952_v52  ;;  %v5559_v3 = vpop.f32.mrb[24].mxu0 }
 0x28d   : > { %v2240_v18 = vpop.f32.mrb[23].mxu1  ;;  %v5901_v49 = vadd.f32 %v5556_v8, %v5212_v29  ;;  %v3586_v25 = vpop.f32.mrb[25].mxu0  ;;  %v4032_v40 = vmul.f32 %v3954_v62, %v3954_v62 }
 0x28e   : > { %v3988_v59 = vadd.f32 %v3987_v47, %v3953_v0  ;;  %v4031_v33 = vmul.f32 %v3953_v0, %v3953_v0  ;;  %v4065_v53 = vadd.f32 %v4064_v28, %v4030_v46  ;;  %v5902_v11 = vadd.f32 %v3576_v6, %v2240_v18 }
 0x28f   : > { %3704 = vst [vmem:[%s7445_s8 + $0xb8] sm:$0xff] %v5901_v49  ;;  %v3956_v50 = vmul.f32 %v5901_v49, %v7494_v45 }
 0x290   : > { %v4066_v37 = vadd.f32 %v4065_v53, %v4031_v33  ;;  %v5215_v20 = vpop.f32.mrb[24].mxu1  ;;  %3703 = vst [vmem:[%s7445_s8 + $0xb0] sm:$0xff] %v5902_v11  ;;  %v3955_v16 = vmul.f32 %v5902_v11, %v7497_v41  ;;  %v3989_v23 = vadd.f32 %v3988_v59, %v3954_v62  ;;  %v5562_v9 = vpop.f32.mrb[26].mxu0 }
 0x291   : > { %v2250_v58 = vpop.f32.mrb[25].mxu1  ;;  %v5903_v10 = vadd.f32 %v5559_v3, %v5215_v20  ;;  %v3596_v34 = vpop.f32.mrb[27].mxu0  ;;  %v4034_v31 = vmul.f32 %v3956_v50, %v3956_v50 }
 0x292   : > { %v3990_v12 = vadd.f32 %v3989_v23, %v3955_v16  ;;  %v4033_v38 = vmul.f32 %v3955_v16, %v3955_v16  ;;  %v4067_v35 = vadd.f32 %v4066_v37, %v4032_v40  ;;  %v5904_v22 = vadd.f32 %v3586_v25, %v2250_v58  ;;  %v3921_v59 = vpop.permute.xlu1 %3920  ;;  %v3916_v33 = vpop.permute.xlu0 %3915 }
 0x293   : > { %3706 = vst [vmem:[%s7445_s8 + $0xc8] sm:$0xff] %v5903_v10  ;;  %v3958_v54 = vmul.f32 %v5903_v10, %v7506_v17 }
 0x294   : > { %v4068_v63 = vadd.f32 %v4067_v35, %v4033_v38  ;;  %v5218_v45 = vpop.f32.mrb[26].mxu1  ;;  %3705 = vst [vmem:[%s7445_s8 + $0xc0] sm:$0xff] %v5904_v22  ;;  %v3957_v55 = vmul.f32 %v5904_v22, %v7511_v13  ;;  %v3991_v41 = vadd.f32 %v3990_v12, %v3956_v50  ;;  %v5565_v61 = vpop.f32.mrb[28].mxu0 }
 0x295   : > { %v2260_v19 = vpop.f32.mrb[27].mxu1  ;;  %v5905_v27 = vadd.f32 %v5562_v9, %v5218_v45  ;;  %v3606_v4 = vpop.f32.mrb[29].mxu0  ;;  %v4036_v17 = vmul.f32 %v3958_v54, %v3958_v54 }
 0x296   : > { %v3992_v32 = vadd.f32 %v3991_v41, %v3957_v55  ;;  %v4035_v43 = vmul.f32 %v3957_v55, %v3957_v55  ;;  %v4069_v44 = vadd.f32 %v4068_v63, %v4034_v31  ;;  %v5906_v5 = vadd.f32 %v3596_v34, %v2260_v19 }
 0x297   : > { %3708 = vst [vmem:[%s7445_s8 + $0xd8] sm:$0xff] %v5905_v27  ;;  %v3960_v2 = vmul.f32 %v5905_v27, %v7513_v56  ;;  %v3931_v27 = vpop.permute.xlu1 %3930 }
 0x298   : > { %v4070_v39 = vadd.f32 %v4069_v44, %v4035_v43  ;;  %v5221_v24 = vpop.f32.mrb[28].mxu1  ;;  %3707 = vst [vmem:[%s7445_s8 + $0xd0] sm:$0xff] %v5906_v5  ;;  %v3959_v13 = vmul.f32 %v5906_v5, %v7515_v1  ;;  %v3993_v42 = vadd.f32 %v3992_v32, %v3958_v54  ;;  %v5568_v57 = vpop.f32.mrb[30].mxu0 }
 0x299   : > { %v2270_v52 = vpop.f32.mrb[29].mxu1  ;;  %v5907_v30 = vadd.f32 %v5565_v61, %v5221_v24  ;;  %v3616_v8 = vpop.f32.mrb[31].mxu0  ;;  %v4038_v26 = vmul.f32 %v3960_v2, %v3960_v2 }
 0x29a   : > { %v3994_v21 = vadd.f32 %v3993_v42, %v3959_v13  ;;  %v4037_v15 = vmul.f32 %v3959_v13, %v3959_v13  ;;  %v4071_v6 = vadd.f32 %v4070_v39, %v4036_v17  ;;  %v5908_v7 = vadd.f32 %v3606_v4, %v2270_v52  ;;  %v3926_v4 = vpop.permute.xlu0 %3925 }
 0x29b   : > { %3710 = vst [vmem:[%s7445_s8 + $0xe8] sm:$0xff] %v5907_v30  ;;  %v3962_v14 = vmul.f32 %v5907_v30, %v3901_v36 }
 0x29c   : > { %v4072_v62 = vadd.f32 %v4071_v6, %v4037_v15  ;;  %v5224_v46 = vpop.f32.mrb[30].mxu1  ;;  %3709 = vst [vmem:[%s7445_s8 + $0xe0] sm:$0xff] %v5908_v7  ;;  %v3961_v56 = vmul.f32 %v5908_v7, %v3896_v51  ;;  %v3995_v28 = vadd.f32 %v3994_v21, %v3960_v2  ;;  %v5571_v1 = vpop.f32.mrb[32].mxu0 }
 0x29d   : > { %v2280_v29 = vpop.f32.mrb[31].mxu1  ;;  %v5909_v0 = vadd.f32 %v5568_v57, %v5224_v46  ;;  %v3626_v47 = vpop.f32.mrb[33].mxu0  ;;  %v4040_v53 = vmul.f32 %v3962_v14, %v3962_v14 }
 0x29e   : > { %v3996_v3 = vadd.f32 %v3995_v28, %v3961_v56  ;;  %v4039_v18 = vmul.f32 %v3961_v56, %v3961_v56  ;;  %v4073_v49 = vadd.f32 %v4072_v62, %v4038_v26  ;;  %v5910_v25 = vadd.f32 %v3616_v8, %v2280_v29 }
 0x29f   : > { %3712 = vst [vmem:[%s7445_s8 + $0xf8] sm:$0xff] %v5909_v0  ;;  %v3964_v40 = vmul.f32 %v5909_v0, %v3911_v60 }
 0x2a0   : > { %v4074_v11 = vadd.f32 %v4073_v49, %v4039_v18  ;;  %v5227_v36 = vpop.f32.mrb[32].mxu1  ;;  %3711 = vst [vmem:[%s7445_s8 + $0xf0] sm:$0xff] %v5910_v25  ;;  %v3963_v51 = vmul.f32 %v5910_v25, %v3906_v48  ;;  %v3997_v37 = vadd.f32 %v3996_v3, %v3962_v14  ;;  %v5574_v20 = vpop.f32.mrb[34].mxu0 }
 0x2a1   : > { %v2290_v50 = vpop.f32.mrb[33].mxu1  ;;  %v5911_v16 = vadd.f32 %v5571_v1, %v5227_v36  ;;  %v3636_v23 = vpop.f32.mrb[35].mxu0  ;;  %v4042_v38 = vmul.f32 %v3964_v40, %v3964_v40 }
 0x2a2   : > { %v3998_v9 = vadd.f32 %v3997_v37, %v3963_v51  ;;  %v4041_v58 = vmul.f32 %v3963_v51, %v3963_v51  ;;  %v4075_v10 = vadd.f32 %v4074_v11, %v4040_v53  ;;  %v5912_v34 = vadd.f32 %v3626_v47, %v2290_v50 }
 0x2a3   : > { %3714 = vst [vmem:[%s7445_s8 + $0x108] sm:$0xff] %v5911_v16  ;;  %v3966_v12 = vmul.f32 %v5911_v16, %v3921_v59 }
 0x2a4   : > { %v4076_v35 = vadd.f32 %v4075_v10, %v4041_v58  ;;  %v5230_v22 = vpop.f32.mrb[34].mxu1  ;;  %3713 = vst [vmem:[%s7445_s8 + $0x100] sm:$0xff] %v5912_v34  ;;  %v3965_v54 = vmul.f32 %v5912_v34, %v3916_v33  ;;  %v3999_v31 = vadd.f32 %v3998_v9, %v3964_v40 }
 0x2a5   : > { %v2300_v63 = vpop.f32.mrb[35].mxu1  ;;  %v5913_v45 = vadd.f32 %v5574_v20, %v5230_v22  ;;  %v4044_v32 = vmul.f32 %v3966_v12, %v3966_v12 }
 0x2a6   : > { %v4000_v55 = vadd.f32 %v3999_v31, %v3965_v54  ;;  %v4043_v41 = vmul.f32 %v3965_v54, %v3965_v54  ;;  %v4077_v61 = vadd.f32 %v4076_v35, %v4042_v38  ;;  %v5914_v19 = vadd.f32 %v3636_v23, %v2300_v63 }
 0x2a7   : > { %3716 = vst [vmem:[%s7445_s8 + $0x118] sm:$0xff] %v5913_v45  ;;  %v3968_v44 = vmul.f32 %v5913_v45, %v3931_v27 }
 0x2a8   : > { %v4078_v43 = vadd.f32 %v4077_v61, %v4043_v41  ;;  %3715 = vst [vmem:[%s7445_s8 + $0x110] sm:$0xff] %v5914_v19  ;;  %v3967_v5 = vmul.f32 %v5914_v19, %v3926_v4  ;;  %v4001_v60 = vadd.f32 %v4000_v55, %v3966_v12 }
 0x2a9   : > { %v4046_v24 = vmul.f32 %v3968_v44, %v3968_v44 }
 0x2aa   : > { %v4002_v48 = vadd.f32 %v4001_v60, %v3967_v5  ;;  %v4045_v17 = vmul.f32 %v3967_v5, %v3967_v5  ;;  %v4079_v39 = vadd.f32 %v4078_v43, %v4044_v32 }
 0x2ac   : > { %v4003_v2 = vadd.f32 %v4002_v48, %v3968_v44  ;;  %v4080_v13 = vadd.f32 %v4079_v39, %v4045_v17 }
 0x2ae   : > { %v4004_v42 = vrot.slane %v4003_v2, 4  ;;  %v4081_v57 = vadd.f32 %v4080_v13, %v4046_v24 }
 0x2b0   : > { %v4005_v52 = vadd.f32 %v4004_v42, %v4003_v2  ;;  %v4082_v30 = vrot.slane %v4081_v57, 4 }
 0x2b2   : > { %v4006_v8 = vrot.slane %v4005_v52, 2  ;;  %v4083_v21 = vadd.f32 %v4082_v30, %v4081_v57 }
 0x2b4   : > { %v4007_v15 = vadd.f32 %v4006_v8, %v4005_v52  ;;  %v4084_v6 = vrot.slane %v4083_v21, 2 }
 0x2b6   : > { %v4008_v7 = vrot.slane %v4007_v15, 1  ;;  %v4085_v14 = vadd.f32 %v4084_v6, %v4083_v21 }
 0x2b8   : > { %v4009_v26 = vadd.f32 %v4008_v7, %v4007_v15  ;;  %v4086_v62 = vrot.slane %v4085_v14, 1 }
 0x2ba   : > { %4010 = vst [vmem:[%s292_s10] sm:$0x1] %v4009_v26  ;;  %v4087_v46 = vadd.f32 %v4086_v62, %v4085_v14 }
 0x2bc   : > { %4088 = vst [vmem:[%s295_s14] sm:$0x1] %v4087_v46 }
 0x2bd PF: > { %s18_s24 = sadd.s32 1, %s6186_s24  }
 0x2be   : > { %p15_p4 = scmp.ge.s32.totalorder %s18_s24, 4  }
 0x2c0   :  { %17 = sbr.rel (!%p15_p4) target bundleno = 1 (0x1), region = 102 }

</bundles_post_ra>
